<compile_context>
chip_gen: v7x
topology: tpu7x:2x2x1
jax: 0.10.0
libtpu: 0.0.40
codegen_flags: <defaults>
</compile_context>

<pallas_src>
import math

import jax
import jax.numpy as jnp
import numpy as np
from jax.experimental import pallas as pl
from jax.experimental.pallas import tpu as pltpu


def _node_mixing_kernel(x_ref, ids_ref, w_ref, out_ref):
    # x_ref:   (Bt, N, T*W) f32  VMEM  -- x with (T, W) merged, lane-dense.
    # ids_ref: (2, Bt, N, T*W) i32 VMEM -- plane 0: entryid, plane 1: jobid,
    #          both pre-repeated over W along the lane axis, i.e.
    #          ids[..., q] is the id at time t = q // W.
    # w_ref:   (N, N) f32 SMEM -- MaskLinear.full_weight (its bias is unused).
    # out_ref: (Bt, N, T*W) f32 VMEM.
    x = x_ref[...]                          # (Bt, K, TW) f32
    entry = ids_ref[0]                      # (Bt, K, TW) i32
    job = ids_ref[1]                        # (Bt, K, TW) i32

    Bt, K, TW = x.shape
    L = K                                   # out nodes == in nodes == num_hnodes
    C = K                                   # entryid indexes columns of full_weight

    # --- job-compatibility mask ------------------------------------------
    # mask[b, k, l, q] = (job[b,k,t] == job[b,l,t]) & (job[b,k,t] != 0)
    #                    & (job[b,l,t] != 0),   with t = q // W.
    jk = job[:, :, None, :]                 # (Bt, K, 1, TW)  source node k
    jl = job[:, None, :, :]                 # (Bt, 1, L, TW)  output node l
    mask = (jk == jl) & (jk != 0) & (jl != 0)          # (Bt, K, L, TW) bool

    # --- entryid gather on the VPU -----------------------------------------
    # gathered[b, k, l, q] = full_weight[l, entry[b,k,t(q)]]
    # Unrolled select chain over the C = 8 columns: per column c, build the
    # length-L column vector from SMEM scalars (sublane-iota selects on one
    # tiny vreg), then select it into the (Bt,K,L,TW) working set where
    # entry == c.  Out-of-range entryid (unlike torch.index_select) yields 0.
    e4 = entry[:, :, None, :]               # (Bt, K, 1, TW)
    l_iota = jax.lax.broadcasted_iota(jnp.int32, (L, 1), 0)
    gathered = jnp.zeros((Bt, K, L, TW), jnp.float32)
    for c in range(C):
        col = jnp.zeros((L, 1), jnp.float32)
        for l in range(L):
            col = jnp.where(l_iota == l, w_ref[l, c], col)   # scalar-splat select
        gathered = jnp.where(e4 == c, col[None, None, :, :], gathered)

    coeff = jnp.where(mask, gathered, 0.0)                   # (Bt, K, L, TW) f32

    # --- K = 8 contraction on the VPU ---------------------------------------
    # y[b, l, q] = sum_k coeff[b, k, l, q] * x[b, k, q]
    # axis=1 is a leading (non-tiled) dim -> plain vreg adds, no XLU reduce.
    y = jnp.sum(coeff * x[:, :, None, :], axis=1)            # (Bt, L, TW) f32

    # --- epilogue: ReLU + residual, lane-dense store (unmasked vst) ----------
    # Dropout is eval-mode identity.
    # TODO(synk): training-mode dropout (pltpu.prng_seed/prng_random_bits) not implemented.
    out_ref[...] = x + jnp.maximum(y, 0.0)


def node_mixing_res_block(x, entryid, jobid, rackid, full_weight):
    """Forward of NodeMixingResBlock (eval mode).

    x:           (B, N, T, W) float
    entryid:     (B, N, T)    int   (values in [0, N))
    jobid:       (B, N, T)    int   (0 = "no job")
    rackid:      unused by the reference forward
    full_weight: (N, N)       float (MaskLinear.full_weight; its bias is unused)
    """
    del rackid  # unused in the reference forward
    B, N, T, Wd = x.shape
    TW = T * Wd

    # Free reshape only (contiguous trailing-dim merge): x and the output stay
    # lane-dense (last dim T*W) without any HBM transpose pass.
    x2 = x.reshape(B, N, TW).astype(jnp.float32)

    # One packed int input instead of three: entryid / jobid stacked and
    # repeated over W along the lane axis (ids[..., q] is the id at t = q//W).
    # This is a few-KiB fused XLA op in the wrapper; it removes two separate
    # HBM->VMEM DMAs and all in-kernel cross-lane id expansion.
    ids = jnp.stack([entryid.astype(jnp.int32), jobid.astype(jnp.int32)], axis=0)
    ids = jnp.repeat(ids, Wd, axis=-1)                        # (2, B, N, TW)

    w = full_weight.astype(jnp.float32)                       # (N, N) -> SMEM

    # Batch tile: whole batch in one grid step for small (latency-bound)
    # problems; for larger batches tile B so blocks + in-kernel temporaries
    # stay well inside scoped VMEM (32 MiB on v7x) and the "parallel" grid
    # axis lets v7x's two TensorCores split the work.
    per_b_bytes = (2 * N * TW            # x block + out block
                   + 2 * N * TW          # packed ids block
                   + 8 * N * N * TW) * 4  # in-kernel (K, L, TW) f32 temporaries
    budget = 8 * 1024 * 1024
    b_tile = B
    if B * per_b_bytes > budget:
        fitting = [d for d in range(1, B + 1)
                   if B % d == 0 and d * per_b_bytes <= budget]
        b_tile = max(fitting) if fitting else 1
    elif B >= 8 and B % 2 == 0:
        b_tile = B // 2                    # >= 2 parallel steps for v7x's 2 TCs
    grid = (B // b_tile,)

    out2 = pl.pallas_call(
        _node_mixing_kernel,
        out_shape=jax.ShapeDtypeStruct((B, N, TW), jnp.float32),
        grid=grid,
        in_specs=[
            pl.BlockSpec((b_tile, N, TW), lambda i: (i, 0, 0)),       # x
            pl.BlockSpec((2, b_tile, N, TW), lambda i: (0, i, 0, 0)),  # ids
            pl.BlockSpec(memory_space=pltpu.MemorySpace.SMEM),         # full_weight
        ],
        out_specs=pl.BlockSpec((b_tile, N, TW), lambda i: (i, 0, 0)),
        input_output_aliases={0: 0},       # x2 -> out (same shape/dtype, x2 dead)
        cost_estimate=pl.CostEstimate(
            flops=2 * B * N * N * TW,
            transcendentals=0,
            bytes_accessed=4 * (x2.size + ids.size + w.size + B * N * TW)),
        compiler_params=pltpu.CompilerParams(
            dimension_semantics=("parallel",)),
    )(x2, ids, w)

    # Free reshape back to the module's (B, N, T, W) layout.
    return out2.reshape(B, N, T, Wd)


def reference(x, entryid, jobid, full_weight):
    """Pure-JAX f32 replica of the PyTorch forward (correctness check)."""
    inp = jnp.transpose(x, (0, 2, 3, 1))                      # (B,T,W,N)
    wg = full_weight[:, entryid]                              # (L,B,K,T)
    m0 = ((jobid[:, :, None, :] == jobid[:, None, :, :]) &
          (jobid[:, :, None, :] != 0) &
          (jobid[:, None, :, :] != 0)).astype(x.dtype)        # (B,L,K,T)
    mask = jnp.transpose(m0, (1, 0, 2, 3))                    # (L,B,K,T)
    mw = wg * mask
    y = jnp.einsum('bijk,lbki->bijl', inp, mw)
    y = jnp.maximum(y, 0.0)
    y = jnp.transpose(y, (0, 3, 1, 2))
    return x + y


if __name__ == "__main__":
    # Small shapes consistent with the module: in_dim = out_dim = num_hnodes = N.
    B, N, T, Wd = 2, 8, 8, 16            # x: (batch, nodes, time_win, width)

    key = jax.random.PRNGKey(0)
    kx, kw, ke, kj, kr = jax.random.split(key, 5)

    x = jax.random.normal(kx, (B, N, T, Wd), dtype=jnp.float32)

    # kaiming_uniform_(a=sqrt(5)) == uniform(+-1/sqrt(fan_in)), fan_in = in_dim = N.
    bound = 1.0 / math.sqrt(N)
    full_weight = jax.random.uniform(kw, (N, N), dtype=jnp.float32,
                                     minval=-bound, maxval=bound)

    entryid = jax.random.randint(ke, (B, N, T), 0, N, dtype=jnp.int32)
    jobid = jax.random.randint(kj, (B, N, T), 0, 3, dtype=jnp.int32)   # includes 0s
    rackid = jax.random.randint(kr, (B, N, T), 0, 4, dtype=jnp.int32)  # unused

    ref = reference(x, entryid, jobid, full_weight)

    out = node_mixing_res_block(x, entryid, jobid, rackid, full_weight)
    out = jax.block_until_ready(out)

    # Pure f32 VPU path: matches the f32 reference to rounding-order noise.
    np.testing.assert_allclose(np.asarray(out), np.asarray(ref),
                               rtol=1e-5, atol=1e-5)

    print("KERNEL_OK")
</pallas_src>

<mosaic_0001>
module attributes {stable_mosaic.version = 11 : i64} {
  func.func @_node_mixing_kernel(%arg0: i32, %arg1: memref<2x8x128xf32, #tpu.memory_space<vmem>>, %arg2: memref<2x2x8x128xi32, #tpu.memory_space<vmem>>, %arg3: memref<8x8xf32, #tpu.memory_space<smem>>, %arg4: memref<2x8x128xf32, #tpu.memory_space<vmem>>) attributes {dimension_semantics = [#tpu.dimension_semantics<parallel>], iteration_bounds = array<i64: 1>, scalar_prefetch = 0 : i64, scratch_operands = 0 : i64, tpu.core_type = #tpu.core_type<tc>, window_params = [{transform_indices = @transform_0, window_bounds = array<i64: 2, 8, 128>}, {transform_indices = @transform_1, window_bounds = array<i64: 2, 2, 8, 128>}, {transform_indices = @transform_2, window_bounds = array<i64: 8, 8>}, {transform_indices = @transform_3, window_bounds = array<i64: 2, 8, 128>}]} {
    %c0 = arith.constant 0 : index
    %c0_0 = arith.constant 0 : index
    %c0_1 = arith.constant 0 : index
    %0 = vector.load %arg1[%c0, %c0_0, %c0_1] : memref<2x8x128xf32, #tpu.memory_space<vmem>>, vector<2x8x128xf32>
    %c0_2 = arith.constant 0 : index
    %c0_3 = arith.constant 0 : index
    %c0_4 = arith.constant 0 : index
    %c0_5 = arith.constant 0 : index
    %1 = vector.load %arg2[%c0_2, %c0_3, %c0_4, %c0_5] : memref<2x2x8x128xi32, #tpu.memory_space<vmem>>, vector<1x2x8x128xi32>
    %2 = vector.shape_cast %1 : vector<1x2x8x128xi32> to vector<2x8x128xi32>
    %c1 = arith.constant 1 : index
    %c0_6 = arith.constant 0 : index
    %c0_7 = arith.constant 0 : index
    %c0_8 = arith.constant 0 : index
    %3 = vector.load %arg2[%c1, %c0_6, %c0_7, %c0_8] : memref<2x2x8x128xi32, #tpu.memory_space<vmem>>, vector<1x2x8x128xi32>
    %4 = vector.shape_cast %3 : vector<1x2x8x128xi32> to vector<2x8x128xi32>
    %5 = vector.shape_cast %4 : vector<2x8x128xi32> to vector<2x8x1x128xi32>
    %6 = vector.shape_cast %4 : vector<2x8x128xi32> to vector<2x1x8x128xi32>
    %7 = vector.broadcast %5 : vector<2x8x1x128xi32> to vector<2x8x8x128xi32>
    %8 = vector.broadcast %6 : vector<2x1x8x128xi32> to vector<2x8x8x128xi32>
    %9 = arith.cmpi eq, %7, %8 : vector<2x8x8x128xi32>
    %c0_i32 = arith.constant 0 : i32
    %10 = vector.broadcast %c0_i32 : i32 to vector<2x8x1x128xi32>
    %11 = arith.cmpi ne, %5, %10 : vector<2x8x1x128xi32>
    %12 = vector.broadcast %11 : vector<2x8x1x128xi1> to vector<2x8x8x128xi1>
    %13 = arith.andi %9, %12 : vector<2x8x8x128xi1>
    %c0_i32_9 = arith.constant 0 : i32
    %14 = vector.broadcast %c0_i32_9 : i32 to vector<2x1x8x128xi32>
    %15 = arith.cmpi ne, %6, %14 : vector<2x1x8x128xi32>
    %16 = vector.broadcast %15 : vector<2x1x8x128xi1> to vector<2x8x8x128xi1>
    %17 = arith.andi %13, %16 : vector<2x8x8x128xi1>
    %18 = vector.shape_cast %2 : vector<2x8x128xi32> to vector<2x8x1x128xi32>
    %19 = tpu.iota {dimensions = array<i32: 0>} : vector<8x1xi32>
    %cst = arith.constant 0.000000e+00 : f32
    %20 = vector.broadcast %cst : f32 to vector<2x8x8x128xf32>
    %cst_10 = arith.constant 0.000000e+00 : f32
    %21 = vector.broadcast %cst_10 : f32 to vector<8x1xf32>
    %c0_i32_11 = arith.constant 0 : i32
    %22 = vector.broadcast %c0_i32_11 : i32 to vector<8x1xi32>
    %23 = arith.cmpi eq, %19, %22 : vector<8x1xi32>
    %c0_12 = arith.constant 0 : index
    %c0_13 = arith.constant 0 : index
    %24 = memref.load %arg3[%c0_12, %c0_13] : memref<8x8xf32, #tpu.memory_space<smem>>
    %25 = vector.broadcast %24 : f32 to vector<8x1xf32>
    %26 = arith.select %23, %25, %21 : vector<8x1xi1>, vector<8x1xf32>
    %c1_i32 = arith.constant 1 : i32
    %27 = vector.broadcast %c1_i32 : i32 to vector<8x1xi32>
    %28 = arith.cmpi eq, %19, %27 : vector<8x1xi32>
    %c1_14 = arith.constant 1 : index
    %c0_15 = arith.constant 0 : index
    %29 = memref.load %arg3[%c1_14, %c0_15] : memref<8x8xf32, #tpu.memory_space<smem>>
    %30 = vector.broadcast %29 : f32 to vector<8x1xf32>
    %31 = arith.select %28, %30, %26 : vector<8x1xi1>, vector<8x1xf32>
    %c2_i32 = arith.constant 2 : i32
    %32 = vector.broadcast %c2_i32 : i32 to vector<8x1xi32>
    %33 = arith.cmpi eq, %19, %32 : vector<8x1xi32>
    %c2 = arith.constant 2 : index
    %c0_16 = arith.constant 0 : index
    %34 = memref.load %arg3[%c2, %c0_16] : memref<8x8xf32, #tpu.memory_space<smem>>
    %35 = vector.broadcast %34 : f32 to vector<8x1xf32>
    %36 = arith.select %33, %35, %31 : vector<8x1xi1>, vector<8x1xf32>
    %c3_i32 = arith.constant 3 : i32
    %37 = vector.broadcast %c3_i32 : i32 to vector<8x1xi32>
    %38 = arith.cmpi eq, %19, %37 : vector<8x1xi32>
    %c3 = arith.constant 3 : index
    %c0_17 = arith.constant 0 : index
    %39 = memref.load %arg3[%c3, %c0_17] : memref<8x8xf32, #tpu.memory_space<smem>>
    %40 = vector.broadcast %39 : f32 to vector<8x1xf32>
    %41 = arith.select %38, %40, %36 : vector<8x1xi1>, vector<8x1xf32>
    %c4_i32 = arith.constant 4 : i32
    %42 = vector.broadcast %c4_i32 : i32 to vector<8x1xi32>
    %43 = arith.cmpi eq, %19, %42 : vector<8x1xi32>
    %c4 = arith.constant 4 : index
    %c0_18 = arith.constant 0 : index
    %44 = memref.load %arg3[%c4, %c0_18] : memref<8x8xf32, #tpu.memory_space<smem>>
    %45 = vector.broadcast %44 : f32 to vector<8x1xf32>
    %46 = arith.select %43, %45, %41 : vector<8x1xi1>, vector<8x1xf32>
    %c5_i32 = arith.constant 5 : i32
    %47 = vector.broadcast %c5_i32 : i32 to vector<8x1xi32>
    %48 = arith.cmpi eq, %19, %47 : vector<8x1xi32>
    %c5 = arith.constant 5 : index
    %c0_19 = arith.constant 0 : index
    %49 = memref.load %arg3[%c5, %c0_19] : memref<8x8xf32, #tpu.memory_space<smem>>
    %50 = vector.broadcast %49 : f32 to vector<8x1xf32>
    %51 = arith.select %48, %50, %46 : vector<8x1xi1>, vector<8x1xf32>
    %c6_i32 = arith.constant 6 : i32
    %52 = vector.broadcast %c6_i32 : i32 to vector<8x1xi32>
    %53 = arith.cmpi eq, %19, %52 : vector<8x1xi32>
    %c6 = arith.constant 6 : index
    %c0_20 = arith.constant 0 : index
    %54 = memref.load %arg3[%c6, %c0_20] : memref<8x8xf32, #tpu.memory_space<smem>>
    %55 = vector.broadcast %54 : f32 to vector<8x1xf32>
    %56 = arith.select %53, %55, %51 : vector<8x1xi1>, vector<8x1xf32>
    %c7_i32 = arith.constant 7 : i32
    %57 = vector.broadcast %c7_i32 : i32 to vector<8x1xi32>
    %58 = arith.cmpi eq, %19, %57 : vector<8x1xi32>
    %c7 = arith.constant 7 : index
    %c0_21 = arith.constant 0 : index
    %59 = memref.load %arg3[%c7, %c0_21] : memref<8x8xf32, #tpu.memory_space<smem>>
    %60 = vector.broadcast %59 : f32 to vector<8x1xf32>
    %61 = arith.select %58, %60, %56 : vector<8x1xi1>, vector<8x1xf32>
    %c0_i32_22 = arith.constant 0 : i32
    %62 = vector.broadcast %c0_i32_22 : i32 to vector<2x8x1x128xi32>
    %63 = arith.cmpi eq, %18, %62 : vector<2x8x1x128xi32>
    %64 = vector.shape_cast %61 : vector<8x1xf32> to vector<1x1x8x1xf32>
    %65 = vector.shape_cast %63 : vector<2x8x1x128xi1> to vector<2x8x1x128xi1>
    %66 = vector.broadcast %65 : vector<2x8x1x128xi1> to vector<2x8x8x128xi1>
    %67 = vector.shape_cast %64 : vector<1x1x8x1xf32> to vector<1x1x8x1xf32>
    %68 = vector.broadcast %67 : vector<1x1x8x1xf32> to vector<2x8x8x128xf32>
    %69 = arith.select %66, %68, %20 : vector<2x8x8x128xi1>, vector<2x8x8x128xf32>
    %cst_23 = arith.constant 0.000000e+00 : f32
    %70 = vector.broadcast %cst_23 : f32 to vector<8x1xf32>
    %c0_i32_24 = arith.constant 0 : i32
    %71 = vector.broadcast %c0_i32_24 : i32 to vector<8x1xi32>
    %72 = arith.cmpi eq, %19, %71 : vector<8x1xi32>
    %c0_25 = arith.constant 0 : index
    %c1_26 = arith.constant 1 : index
    %73 = memref.load %arg3[%c0_25, %c1_26] : memref<8x8xf32, #tpu.memory_space<smem>>
    %74 = vector.broadcast %73 : f32 to vector<8x1xf32>
    %75 = arith.select %72, %74, %70 : vector<8x1xi1>, vector<8x1xf32>
    %c1_i32_27 = arith.constant 1 : i32
    %76 = vector.broadcast %c1_i32_27 : i32 to vector<8x1xi32>
    %77 = arith.cmpi eq, %19, %76 : vector<8x1xi32>
    %c1_28 = arith.constant 1 : index
    %c1_29 = arith.constant 1 : index
    %78 = memref.load %arg3[%c1_28, %c1_29] : memref<8x8xf32, #tpu.memory_space<smem>>
    %79 = vector.broadcast %78 : f32 to vector<8x1xf32>
    %80 = arith.select %77, %79, %75 : vector<8x1xi1>, vector<8x1xf32>
    %c2_i32_30 = arith.constant 2 : i32
    %81 = vector.broadcast %c2_i32_30 : i32 to vector<8x1xi32>
    %82 = arith.cmpi eq, %19, %81 : vector<8x1xi32>
    %c2_31 = arith.constant 2 : index
    %c1_32 = arith.constant 1 : index
    %83 = memref.load %arg3[%c2_31, %c1_32] : memref<8x8xf32, #tpu.memory_space<smem>>
    %84 = vector.broadcast %83 : f32 to vector<8x1xf32>
    %85 = arith.select %82, %84, %80 : vector<8x1xi1>, vector<8x1xf32>
    %c3_i32_33 = arith.constant 3 : i32
    %86 = vector.broadcast %c3_i32_33 : i32 to vector<8x1xi32>
    %87 = arith.cmpi eq, %19, %86 : vector<8x1xi32>
    %c3_34 = arith.constant 3 : index
    %c1_35 = arith.constant 1 : index
    %88 = memref.load %arg3[%c3_34, %c1_35] : memref<8x8xf32, #tpu.memory_space<smem>>
    %89 = vector.broadcast %88 : f32 to vector<8x1xf32>
    %90 = arith.select %87, %89, %85 : vector<8x1xi1>, vector<8x1xf32>
    %c4_i32_36 = arith.constant 4 : i32
    %91 = vector.broadcast %c4_i32_36 : i32 to vector<8x1xi32>
    %92 = arith.cmpi eq, %19, %91 : vector<8x1xi32>
    %c4_37 = arith.constant 4 : index
    %c1_38 = arith.constant 1 : index
    %93 = memref.load %arg3[%c4_37, %c1_38] : memref<8x8xf32, #tpu.memory_space<smem>>
    %94 = vector.broadcast %93 : f32 to vector<8x1xf32>
    %95 = arith.select %92, %94, %90 : vector<8x1xi1>, vector<8x1xf32>
    %c5_i32_39 = arith.constant 5 : i32
    %96 = vector.broadcast %c5_i32_39 : i32 to vector<8x1xi32>
    %97 = arith.cmpi eq, %19, %96 : vector<8x1xi32>
    %c5_40 = arith.constant 5 : index
    %c1_41 = arith.constant 1 : index
    %98 = memref.load %arg3[%c5_40, %c1_41] : memref<8x8xf32, #tpu.memory_space<smem>>
    %99 = vector.broadcast %98 : f32 to vector<8x1xf32>
    %100 = arith.select %97, %99, %95 : vector<8x1xi1>, vector<8x1xf32>
    %c6_i32_42 = arith.constant 6 : i32
    %101 = vector.broadcast %c6_i32_42 : i32 to vector<8x1xi32>
    %102 = arith.cmpi eq, %19, %101 : vector<8x1xi32>
    %c6_43 = arith.constant 6 : index
    %c1_44 = arith.constant 1 : index
    %103 = memref.load %arg3[%c6_43, %c1_44] : memref<8x8xf32, #tpu.memory_space<smem>>
    %104 = vector.broadcast %103 : f32 to vector<8x1xf32>
    %105 = arith.select %102, %104, %100 : vector<8x1xi1>, vector<8x1xf32>
    %c7_i32_45 = arith.constant 7 : i32
    %106 = vector.broadcast %c7_i32_45 : i32 to vector<8x1xi32>
    %107 = arith.cmpi eq, %19, %106 : vector<8x1xi32>
    %c7_46 = arith.constant 7 : index
    %c1_47 = arith.constant 1 : index
    %108 = memref.load %arg3[%c7_46, %c1_47] : memref<8x8xf32, #tpu.memory_space<smem>>
    %109 = vector.broadcast %108 : f32 to vector<8x1xf32>
    %110 = arith.select %107, %109, %105 : vector<8x1xi1>, vector<8x1xf32>
    %c1_i32_48 = arith.constant 1 : i32
    %111 = vector.broadcast %c1_i32_48 : i32 to vector<2x8x1x128xi32>
    %112 = arith.cmpi eq, %18, %111 : vector<2x8x1x128xi32>
    %113 = vector.shape_cast %110 : vector<8x1xf32> to vector<1x1x8x1xf32>
    %114 = vector.shape_cast %112 : vector<2x8x1x128xi1> to vector<2x8x1x128xi1>
    %115 = vector.broadcast %114 : vector<2x8x1x128xi1> to vector<2x8x8x128xi1>
    %116 = vector.shape_cast %113 : vector<1x1x8x1xf32> to vector<1x1x8x1xf32>
    %117 = vector.broadcast %116 : vector<1x1x8x1xf32> to vector<2x8x8x128xf32>
    %118 = arith.select %115, %117, %69 : vector<2x8x8x128xi1>, vector<2x8x8x128xf32>
    %cst_49 = arith.constant 0.000000e+00 : f32
    %119 = vector.broadcast %cst_49 : f32 to vector<8x1xf32>
    %c0_i32_50 = arith.constant 0 : i32
    %120 = vector.broadcast %c0_i32_50 : i32 to vector<8x1xi32>
    %121 = arith.cmpi eq, %19, %120 : vector<8x1xi32>
    %c0_51 = arith.constant 0 : index
    %c2_52 = arith.constant 2 : index
    %122 = memref.load %arg3[%c0_51, %c2_52] : memref<8x8xf32, #tpu.memory_space<smem>>
    %123 = vector.broadcast %122 : f32 to vector<8x1xf32>
    %124 = arith.select %121, %123, %119 : vector<8x1xi1>, vector<8x1xf32>
    %c1_i32_53 = arith.constant 1 : i32
    %125 = vector.broadcast %c1_i32_53 : i32 to vector<8x1xi32>
    %126 = arith.cmpi eq, %19, %125 : vector<8x1xi32>
    %c1_54 = arith.constant 1 : index
    %c2_55 = arith.constant 2 : index
    %127 = memref.load %arg3[%c1_54, %c2_55] : memref<8x8xf32, #tpu.memory_space<smem>>
    %128 = vector.broadcast %127 : f32 to vector<8x1xf32>
    %129 = arith.select %126, %128, %124 : vector<8x1xi1>, vector<8x1xf32>
    %c2_i32_56 = arith.constant 2 : i32
    %130 = vector.broadcast %c2_i32_56 : i32 to vector<8x1xi32>
    %131 = arith.cmpi eq, %19, %130 : vector<8x1xi32>
    %c2_57 = arith.constant 2 : index
    %c2_58 = arith.constant 2 : index
    %132 = memref.load %arg3[%c2_57, %c2_58] : memref<8x8xf32, #tpu.memory_space<smem>>
    %133 = vector.broadcast %132 : f32 to vector<8x1xf32>
    %134 = arith.select %131, %133, %129 : vector<8x1xi1>, vector<8x1xf32>
    %c3_i32_59 = arith.constant 3 : i32
    %135 = vector.broadcast %c3_i32_59 : i32 to vector<8x1xi32>
    %136 = arith.cmpi eq, %19, %135 : vector<8x1xi32>
    %c3_60 = arith.constant 3 : index
    %c2_61 = arith.constant 2 : index
    %137 = memref.load %arg3[%c3_60, %c2_61] : memref<8x8xf32, #tpu.memory_space<smem>>
    %138 = vector.broadcast %137 : f32 to vector<8x1xf32>
    %139 = arith.select %136, %138, %134 : vector<8x1xi1>, vector<8x1xf32>
    %c4_i32_62 = arith.constant 4 : i32
    %140 = vector.broadcast %c4_i32_62 : i32 to vector<8x1xi32>
    %141 = arith.cmpi eq, %19, %140 : vector<8x1xi32>
    %c4_63 = arith.constant 4 : index
    %c2_64 = arith.constant 2 : index
    %142 = memref.load %arg3[%c4_63, %c2_64] : memref<8x8xf32, #tpu.memory_space<smem>>
    %143 = vector.broadcast %142 : f32 to vector<8x1xf32>
    %144 = arith.select %141, %143, %139 : vector<8x1xi1>, vector<8x1xf32>
    %c5_i32_65 = arith.constant 5 : i32
    %145 = vector.broadcast %c5_i32_65 : i32 to vector<8x1xi32>
    %146 = arith.cmpi eq, %19, %145 : vector<8x1xi32>
    %c5_66 = arith.constant 5 : index
    %c2_67 = arith.constant 2 : index
    %147 = memref.load %arg3[%c5_66, %c2_67] : memref<8x8xf32, #tpu.memory_space<smem>>
    %148 = vector.broadcast %147 : f32 to vector<8x1xf32>
    %149 = arith.select %146, %148, %144 : vector<8x1xi1>, vector<8x1xf32>
    %c6_i32_68 = arith.constant 6 : i32
    %150 = vector.broadcast %c6_i32_68 : i32 to vector<8x1xi32>
    %151 = arith.cmpi eq, %19, %150 : vector<8x1xi32>
    %c6_69 = arith.constant 6 : index
    %c2_70 = arith.constant 2 : index
    %152 = memref.load %arg3[%c6_69, %c2_70] : memref<8x8xf32, #tpu.memory_space<smem>>
    %153 = vector.broadcast %152 : f32 to vector<8x1xf32>
    %154 = arith.select %151, %153, %149 : vector<8x1xi1>, vector<8x1xf32>
    %c7_i32_71 = arith.constant 7 : i32
    %155 = vector.broadcast %c7_i32_71 : i32 to vector<8x1xi32>
    %156 = arith.cmpi eq, %19, %155 : vector<8x1xi32>
    %c7_72 = arith.constant 7 : index
    %c2_73 = arith.constant 2 : index
    %157 = memref.load %arg3[%c7_72, %c2_73] : memref<8x8xf32, #tpu.memory_space<smem>>
    %158 = vector.broadcast %157 : f32 to vector<8x1xf32>
    %159 = arith.select %156, %158, %154 : vector<8x1xi1>, vector<8x1xf32>
    %c2_i32_74 = arith.constant 2 : i32
    %160 = vector.broadcast %c2_i32_74 : i32 to vector<2x8x1x128xi32>
    %161 = arith.cmpi eq, %18, %160 : vector<2x8x1x128xi32>
    %162 = vector.shape_cast %159 : vector<8x1xf32> to vector<1x1x8x1xf32>
    %163 = vector.shape_cast %161 : vector<2x8x1x128xi1> to vector<2x8x1x128xi1>
    %164 = vector.broadcast %163 : vector<2x8x1x128xi1> to vector<2x8x8x128xi1>
    %165 = vector.shape_cast %162 : vector<1x1x8x1xf32> to vector<1x1x8x1xf32>
    %166 = vector.broadcast %165 : vector<1x1x8x1xf32> to vector<2x8x8x128xf32>
    %167 = arith.select %164, %166, %118 : vector<2x8x8x128xi1>, vector<2x8x8x128xf32>
    %cst_75 = arith.constant 0.000000e+00 : f32
    %168 = vector.broadcast %cst_75 : f32 to vector<8x1xf32>
    %c0_i32_76 = arith.constant 0 : i32
    %169 = vector.broadcast %c0_i32_76 : i32 to vector<8x1xi32>
    %170 = arith.cmpi eq, %19, %169 : vector<8x1xi32>
    %c0_77 = arith.constant 0 : index
    %c3_78 = arith.constant 3 : index
    %171 = memref.load %arg3[%c0_77, %c3_78] : memref<8x8xf32, #tpu.memory_space<smem>>
    %172 = vector.broadcast %171 : f32 to vector<8x1xf32>
    %173 = arith.select %170, %172, %168 : vector<8x1xi1>, vector<8x1xf32>
    %c1_i32_79 = arith.constant 1 : i32
    %174 = vector.broadcast %c1_i32_79 : i32 to vector<8x1xi32>
    %175 = arith.cmpi eq, %19, %174 : vector<8x1xi32>
    %c1_80 = arith.constant 1 : index
    %c3_81 = arith.constant 3 : index
    %176 = memref.load %arg3[%c1_80, %c3_81] : memref<8x8xf32, #tpu.memory_space<smem>>
    %177 = vector.broadcast %176 : f32 to vector<8x1xf32>
    %178 = arith.select %175, %177, %173 : vector<8x1xi1>, vector<8x1xf32>
    %c2_i32_82 = arith.constant 2 : i32
    %179 = vector.broadcast %c2_i32_82 : i32 to vector<8x1xi32>
    %180 = arith.cmpi eq, %19, %179 : vector<8x1xi32>
    %c2_83 = arith.constant 2 : index
    %c3_84 = arith.constant 3 : index
    %181 = memref.load %arg3[%c2_83, %c3_84] : memref<8x8xf32, #tpu.memory_space<smem>>
    %182 = vector.broadcast %181 : f32 to vector<8x1xf32>
    %183 = arith.select %180, %182, %178 : vector<8x1xi1>, vector<8x1xf32>
    %c3_i32_85 = arith.constant 3 : i32
    %184 = vector.broadcast %c3_i32_85 : i32 to vector<8x1xi32>
    %185 = arith.cmpi eq, %19, %184 : vector<8x1xi32>
    %c3_86 = arith.constant 3 : index
    %c3_87 = arith.constant 3 : index
    %186 = memref.load %arg3[%c3_86, %c3_87] : memref<8x8xf32, #tpu.memory_space<smem>>
    %187 = vector.broadcast %186 : f32 to vector<8x1xf32>
    %188 = arith.select %185, %187, %183 : vector<8x1xi1>, vector<8x1xf32>
    %c4_i32_88 = arith.constant 4 : i32
    %189 = vector.broadcast %c4_i32_88 : i32 to vector<8x1xi32>
    %190 = arith.cmpi eq, %19, %189 : vector<8x1xi32>
    %c4_89 = arith.constant 4 : index
    %c3_90 = arith.constant 3 : index
    %191 = memref.load %arg3[%c4_89, %c3_90] : memref<8x8xf32, #tpu.memory_space<smem>>
    %192 = vector.broadcast %191 : f32 to vector<8x1xf32>
    %193 = arith.select %190, %192, %188 : vector<8x1xi1>, vector<8x1xf32>
    %c5_i32_91 = arith.constant 5 : i32
    %194 = vector.broadcast %c5_i32_91 : i32 to vector<8x1xi32>
    %195 = arith.cmpi eq, %19, %194 : vector<8x1xi32>
    %c5_92 = arith.constant 5 : index
    %c3_93 = arith.constant 3 : index
    %196 = memref.load %arg3[%c5_92, %c3_93] : memref<8x8xf32, #tpu.memory_space<smem>>
    %197 = vector.broadcast %196 : f32 to vector<8x1xf32>
    %198 = arith.select %195, %197, %193 : vector<8x1xi1>, vector<8x1xf32>
    %c6_i32_94 = arith.constant 6 : i32
    %199 = vector.broadcast %c6_i32_94 : i32 to vector<8x1xi32>
    %200 = arith.cmpi eq, %19, %199 : vector<8x1xi32>
    %c6_95 = arith.constant 6 : index
    %c3_96 = arith.constant 3 : index
    %201 = memref.load %arg3[%c6_95, %c3_96] : memref<8x8xf32, #tpu.memory_space<smem>>
    %202 = vector.broadcast %201 : f32 to vector<8x1xf32>
    %203 = arith.select %200, %202, %198 : vector<8x1xi1>, vector<8x1xf32>
    %c7_i32_97 = arith.constant 7 : i32
    %204 = vector.broadcast %c7_i32_97 : i32 to vector<8x1xi32>
    %205 = arith.cmpi eq, %19, %204 : vector<8x1xi32>
    %c7_98 = arith.constant 7 : index
    %c3_99 = arith.constant 3 : index
    %206 = memref.load %arg3[%c7_98, %c3_99] : memref<8x8xf32, #tpu.memory_space<smem>>
    %207 = vector.broadcast %206 : f32 to vector<8x1xf32>
    %208 = arith.select %205, %207, %203 : vector<8x1xi1>, vector<8x1xf32>
    %c3_i32_100 = arith.constant 3 : i32
    %209 = vector.broadcast %c3_i32_100 : i32 to vector<2x8x1x128xi32>
    %210 = arith.cmpi eq, %18, %209 : vector<2x8x1x128xi32>
    %211 = vector.shape_cast %208 : vector<8x1xf32> to vector<1x1x8x1xf32>
    %212 = vector.shape_cast %210 : vector<2x8x1x128xi1> to vector<2x8x1x128xi1>
    %213 = vector.broadcast %212 : vector<2x8x1x128xi1> to vector<2x8x8x128xi1>
    %214 = vector.shape_cast %211 : vector<1x1x8x1xf32> to vector<1x1x8x1xf32>
    %215 = vector.broadcast %214 : vector<1x1x8x1xf32> to vector<2x8x8x128xf32>
    %216 = arith.select %213, %215, %167 : vector<2x8x8x128xi1>, vector<2x8x8x128xf32>
    %cst_101 = arith.constant 0.000000e+00 : f32
    %217 = vector.broadcast %cst_101 : f32 to vector<8x1xf32>
    %c0_i32_102 = arith.constant 0 : i32
    %218 = vector.broadcast %c0_i32_102 : i32 to vector<8x1xi32>
    %219 = arith.cmpi eq, %19, %218 : vector<8x1xi32>
    %c0_103 = arith.constant 0 : index
    %c4_104 = arith.constant 4 : index
    %220 = memref.load %arg3[%c0_103, %c4_104] : memref<8x8xf32, #tpu.memory_space<smem>>
    %221 = vector.broadcast %220 : f32 to vector<8x1xf32>
    %222 = arith.select %219, %221, %217 : vector<8x1xi1>, vector<8x1xf32>
    %c1_i32_105 = arith.constant 1 : i32
    %223 = vector.broadcast %c1_i32_105 : i32 to vector<8x1xi32>
    %224 = arith.cmpi eq, %19, %223 : vector<8x1xi32>
    %c1_106 = arith.constant 1 : index
    %c4_107 = arith.constant 4 : index
    %225 = memref.load %arg3[%c1_106, %c4_107] : memref<8x8xf32, #tpu.memory_space<smem>>
    %226 = vector.broadcast %225 : f32 to vector<8x1xf32>
    %227 = arith.select %224, %226, %222 : vector<8x1xi1>, vector<8x1xf32>
    %c2_i32_108 = arith.constant 2 : i32
    %228 = vector.broadcast %c2_i32_108 : i32 to vector<8x1xi32>
    %229 = arith.cmpi eq, %19, %228 : vector<8x1xi32>
    %c2_109 = arith.constant 2 : index
    %c4_110 = arith.constant 4 : index
    %230 = memref.load %arg3[%c2_109, %c4_110] : memref<8x8xf32, #tpu.memory_space<smem>>
    %231 = vector.broadcast %230 : f32 to vector<8x1xf32>
    %232 = arith.select %229, %231, %227 : vector<8x1xi1>, vector<8x1xf32>
    %c3_i32_111 = arith.constant 3 : i32
    %233 = vector.broadcast %c3_i32_111 : i32 to vector<8x1xi32>
    %234 = arith.cmpi eq, %19, %233 : vector<8x1xi32>
    %c3_112 = arith.constant 3 : index
    %c4_113 = arith.constant 4 : index
    %235 = memref.load %arg3[%c3_112, %c4_113] : memref<8x8xf32, #tpu.memory_space<smem>>
    %236 = vector.broadcast %235 : f32 to vector<8x1xf32>
    %237 = arith.select %234, %236, %232 : vector<8x1xi1>, vector<8x1xf32>
    %c4_i32_114 = arith.constant 4 : i32
    %238 = vector.broadcast %c4_i32_114 : i32 to vector<8x1xi32>
    %239 = arith.cmpi eq, %19, %238 : vector<8x1xi32>
    %c4_115 = arith.constant 4 : index
    %c4_116 = arith.constant 4 : index
    %240 = memref.load %arg3[%c4_115, %c4_116] : memref<8x8xf32, #tpu.memory_space<smem>>
    %241 = vector.broadcast %240 : f32 to vector<8x1xf32>
    %242 = arith.select %239, %241, %237 : vector<8x1xi1>, vector<8x1xf32>
    %c5_i32_117 = arith.constant 5 : i32
    %243 = vector.broadcast %c5_i32_117 : i32 to vector<8x1xi32>
    %244 = arith.cmpi eq, %19, %243 : vector<8x1xi32>
    %c5_118 = arith.constant 5 : index
    %c4_119 = arith.constant 4 : index
    %245 = memref.load %arg3[%c5_118, %c4_119] : memref<8x8xf32, #tpu.memory_space<smem>>
    %246 = vector.broadcast %245 : f32 to vector<8x1xf32>
    %247 = arith.select %244, %246, %242 : vector<8x1xi1>, vector<8x1xf32>
    %c6_i32_120 = arith.constant 6 : i32
    %248 = vector.broadcast %c6_i32_120 : i32 to vector<8x1xi32>
    %249 = arith.cmpi eq, %19, %248 : vector<8x1xi32>
    %c6_121 = arith.constant 6 : index
    %c4_122 = arith.constant 4 : index
    %250 = memref.load %arg3[%c6_121, %c4_122] : memref<8x8xf32, #tpu.memory_space<smem>>
    %251 = vector.broadcast %250 : f32 to vector<8x1xf32>
    %252 = arith.select %249, %251, %247 : vector<8x1xi1>, vector<8x1xf32>
    %c7_i32_123 = arith.constant 7 : i32
    %253 = vector.broadcast %c7_i32_123 : i32 to vector<8x1xi32>
    %254 = arith.cmpi eq, %19, %253 : vector<8x1xi32>
    %c7_124 = arith.constant 7 : index
    %c4_125 = arith.constant 4 : index
    %255 = memref.load %arg3[%c7_124, %c4_125] : memref<8x8xf32, #tpu.memory_space<smem>>
    %256 = vector.broadcast %255 : f32 to vector<8x1xf32>
    %257 = arith.select %254, %256, %252 : vector<8x1xi1>, vector<8x1xf32>
    %c4_i32_126 = arith.constant 4 : i32
    %258 = vector.broadcast %c4_i32_126 : i32 to vector<2x8x1x128xi32>
    %259 = arith.cmpi eq, %18, %258 : vector<2x8x1x128xi32>
    %260 = vector.shape_cast %257 : vector<8x1xf32> to vector<1x1x8x1xf32>
    %261 = vector.shape_cast %259 : vector<2x8x1x128xi1> to vector<2x8x1x128xi1>
    %262 = vector.broadcast %261 : vector<2x8x1x128xi1> to vector<2x8x8x128xi1>
    %263 = vector.shape_cast %260 : vector<1x1x8x1xf32> to vector<1x1x8x1xf32>
    %264 = vector.broadcast %263 : vector<1x1x8x1xf32> to vector<2x8x8x128xf32>
    %265 = arith.select %262, %264, %216 : vector<2x8x8x128xi1>, vector<2x8x8x128xf32>
    %cst_127 = arith.constant 0.000000e+00 : f32
    %266 = vector.broadcast %cst_127 : f32 to vector<8x1xf32>
    %c0_i32_128 = arith.constant 0 : i32
    %267 = vector.broadcast %c0_i32_128 : i32 to vector<8x1xi32>
    %268 = arith.cmpi eq, %19, %267 : vector<8x1xi32>
    %c0_129 = arith.constant 0 : index
    %c5_130 = arith.constant 5 : index
    %269 = memref.load %arg3[%c0_129, %c5_130] : memref<8x8xf32, #tpu.memory_space<smem>>
    %270 = vector.broadcast %269 : f32 to vector<8x1xf32>
    %271 = arith.select %268, %270, %266 : vector<8x1xi1>, vector<8x1xf32>
    %c1_i32_131 = arith.constant 1 : i32
    %272 = vector.broadcast %c1_i32_131 : i32 to vector<8x1xi32>
    %273 = arith.cmpi eq, %19, %272 : vector<8x1xi32>
    %c1_132 = arith.constant 1 : index
    %c5_133 = arith.constant 5 : index
    %274 = memref.load %arg3[%c1_132, %c5_133] : memref<8x8xf32, #tpu.memory_space<smem>>
    %275 = vector.broadcast %274 : f32 to vector<8x1xf32>
    %276 = arith.select %273, %275, %271 : vector<8x1xi1>, vector<8x1xf32>
    %c2_i32_134 = arith.constant 2 : i32
    %277 = vector.broadcast %c2_i32_134 : i32 to vector<8x1xi32>
    %278 = arith.cmpi eq, %19, %277 : vector<8x1xi32>
    %c2_135 = arith.constant 2 : index
    %c5_136 = arith.constant 5 : index
    %279 = memref.load %arg3[%c2_135, %c5_136] : memref<8x8xf32, #tpu.memory_space<smem>>
    %280 = vector.broadcast %279 : f32 to vector<8x1xf32>
    %281 = arith.select %278, %280, %276 : vector<8x1xi1>, vector<8x1xf32>
    %c3_i32_137 = arith.constant 3 : i32
    %282 = vector.broadcast %c3_i32_137 : i32 to vector<8x1xi32>
    %283 = arith.cmpi eq, %19, %282 : vector<8x1xi32>
    %c3_138 = arith.constant 3 : index
    %c5_139 = arith.constant 5 : index
    %284 = memref.load %arg3[%c3_138, %c5_139] : memref<8x8xf32, #tpu.memory_space<smem>>
    %285 = vector.broadcast %284 : f32 to vector<8x1xf32>
    %286 = arith.select %283, %285, %281 : vector<8x1xi1>, vector<8x1xf32>
    %c4_i32_140 = arith.constant 4 : i32
    %287 = vector.broadcast %c4_i32_140 : i32 to vector<8x1xi32>
    %288 = arith.cmpi eq, %19, %287 : vector<8x1xi32>
    %c4_141 = arith.constant 4 : index
    %c5_142 = arith.constant 5 : index
    %289 = memref.load %arg3[%c4_141, %c5_142] : memref<8x8xf32, #tpu.memory_space<smem>>
    %290 = vector.broadcast %289 : f32 to vector<8x1xf32>
    %291 = arith.select %288, %290, %286 : vector<8x1xi1>, vector<8x1xf32>
    %c5_i32_143 = arith.constant 5 : i32
    %292 = vector.broadcast %c5_i32_143 : i32 to vector<8x1xi32>
    %293 = arith.cmpi eq, %19, %292 : vector<8x1xi32>
    %c5_144 = arith.constant 5 : index
    %c5_145 = arith.constant 5 : index
    %294 = memref.load %arg3[%c5_144, %c5_145] : memref<8x8xf32, #tpu.memory_space<smem>>
    %295 = vector.broadcast %294 : f32 to vector<8x1xf32>
    %296 = arith.select %293, %295, %291 : vector<8x1xi1>, vector<8x1xf32>
    %c6_i32_146 = arith.constant 6 : i32
    %297 = vector.broadcast %c6_i32_146 : i32 to vector<8x1xi32>
    %298 = arith.cmpi eq, %19, %297 : vector<8x1xi32>
    %c6_147 = arith.constant 6 : index
    %c5_148 = arith.constant 5 : index
    %299 = memref.load %arg3[%c6_147, %c5_148] : memref<8x8xf32, #tpu.memory_space<smem>>
    %300 = vector.broadcast %299 : f32 to vector<8x1xf32>
    %301 = arith.select %298, %300, %296 : vector<8x1xi1>, vector<8x1xf32>
    %c7_i32_149 = arith.constant 7 : i32
    %302 = vector.broadcast %c7_i32_149 : i32 to vector<8x1xi32>
    %303 = arith.cmpi eq, %19, %302 : vector<8x1xi32>
    %c7_150 = arith.constant 7 : index
    %c5_151 = arith.constant 5 : index
    %304 = memref.load %arg3[%c7_150, %c5_151] : memref<8x8xf32, #tpu.memory_space<smem>>
    %305 = vector.broadcast %304 : f32 to vector<8x1xf32>
    %306 = arith.select %303, %305, %301 : vector<8x1xi1>, vector<8x1xf32>
    %c5_i32_152 = arith.constant 5 : i32
    %307 = vector.broadcast %c5_i32_152 : i32 to vector<2x8x1x128xi32>
    %308 = arith.cmpi eq, %18, %307 : vector<2x8x1x128xi32>
    %309 = vector.shape_cast %306 : vector<8x1xf32> to vector<1x1x8x1xf32>
    %310 = vector.shape_cast %308 : vector<2x8x1x128xi1> to vector<2x8x1x128xi1>
    %311 = vector.broadcast %310 : vector<2x8x1x128xi1> to vector<2x8x8x128xi1>
    %312 = vector.shape_cast %309 : vector<1x1x8x1xf32> to vector<1x1x8x1xf32>
    %313 = vector.broadcast %312 : vector<1x1x8x1xf32> to vector<2x8x8x128xf32>
    %314 = arith.select %311, %313, %265 : vector<2x8x8x128xi1>, vector<2x8x8x128xf32>
    %cst_153 = arith.constant 0.000000e+00 : f32
    %315 = vector.broadcast %cst_153 : f32 to vector<8x1xf32>
    %c0_i32_154 = arith.constant 0 : i32
    %316 = vector.broadcast %c0_i32_154 : i32 to vector<8x1xi32>
    %317 = arith.cmpi eq, %19, %316 : vector<8x1xi32>
    %c0_155 = arith.constant 0 : index
    %c6_156 = arith.constant 6 : index
    %318 = memref.load %arg3[%c0_155, %c6_156] : memref<8x8xf32, #tpu.memory_space<smem>>
    %319 = vector.broadcast %318 : f32 to vector<8x1xf32>
    %320 = arith.select %317, %319, %315 : vector<8x1xi1>, vector<8x1xf32>
    %c1_i32_157 = arith.constant 1 : i32
    %321 = vector.broadcast %c1_i32_157 : i32 to vector<8x1xi32>
    %322 = arith.cmpi eq, %19, %321 : vector<8x1xi32>
    %c1_158 = arith.constant 1 : index
    %c6_159 = arith.constant 6 : index
    %323 = memref.load %arg3[%c1_158, %c6_159] : memref<8x8xf32, #tpu.memory_space<smem>>
    %324 = vector.broadcast %323 : f32 to vector<8x1xf32>
    %325 = arith.select %322, %324, %320 : vector<8x1xi1>, vector<8x1xf32>
    %c2_i32_160 = arith.constant 2 : i32
    %326 = vector.broadcast %c2_i32_160 : i32 to vector<8x1xi32>
    %327 = arith.cmpi eq, %19, %326 : vector<8x1xi32>
    %c2_161 = arith.constant 2 : index
    %c6_162 = arith.constant 6 : index
    %328 = memref.load %arg3[%c2_161, %c6_162] : memref<8x8xf32, #tpu.memory_space<smem>>
    %329 = vector.broadcast %328 : f32 to vector<8x1xf32>
    %330 = arith.select %327, %329, %325 : vector<8x1xi1>, vector<8x1xf32>
    %c3_i32_163 = arith.constant 3 : i32
    %331 = vector.broadcast %c3_i32_163 : i32 to vector<8x1xi32>
    %332 = arith.cmpi eq, %19, %331 : vector<8x1xi32>
    %c3_164 = arith.constant 3 : index
    %c6_165 = arith.constant 6 : index
    %333 = memref.load %arg3[%c3_164, %c6_165] : memref<8x8xf32, #tpu.memory_space<smem>>
    %334 = vector.broadcast %333 : f32 to vector<8x1xf32>
    %335 = arith.select %332, %334, %330 : vector<8x1xi1>, vector<8x1xf32>
    %c4_i32_166 = arith.constant 4 : i32
    %336 = vector.broadcast %c4_i32_166 : i32 to vector<8x1xi32>
    %337 = arith.cmpi eq, %19, %336 : vector<8x1xi32>
    %c4_167 = arith.constant 4 : index
    %c6_168 = arith.constant 6 : index
    %338 = memref.load %arg3[%c4_167, %c6_168] : memref<8x8xf32, #tpu.memory_space<smem>>
    %339 = vector.broadcast %338 : f32 to vector<8x1xf32>
    %340 = arith.select %337, %339, %335 : vector<8x1xi1>, vector<8x1xf32>
    %c5_i32_169 = arith.constant 5 : i32
    %341 = vector.broadcast %c5_i32_169 : i32 to vector<8x1xi32>
    %342 = arith.cmpi eq, %19, %341 : vector<8x1xi32>
    %c5_170 = arith.constant 5 : index
    %c6_171 = arith.constant 6 : index
    %343 = memref.load %arg3[%c5_170, %c6_171] : memref<8x8xf32, #tpu.memory_space<smem>>
    %344 = vector.broadcast %343 : f32 to vector<8x1xf32>
    %345 = arith.select %342, %344, %340 : vector<8x1xi1>, vector<8x1xf32>
    %c6_i32_172 = arith.constant 6 : i32
    %346 = vector.broadcast %c6_i32_172 : i32 to vector<8x1xi32>
    %347 = arith.cmpi eq, %19, %346 : vector<8x1xi32>
    %c6_173 = arith.constant 6 : index
    %c6_174 = arith.constant 6 : index
    %348 = memref.load %arg3[%c6_173, %c6_174] : memref<8x8xf32, #tpu.memory_space<smem>>
    %349 = vector.broadcast %348 : f32 to vector<8x1xf32>
    %350 = arith.select %347, %349, %345 : vector<8x1xi1>, vector<8x1xf32>
    %c7_i32_175 = arith.constant 7 : i32
    %351 = vector.broadcast %c7_i32_175 : i32 to vector<8x1xi32>
    %352 = arith.cmpi eq, %19, %351 : vector<8x1xi32>
    %c7_176 = arith.constant 7 : index
    %c6_177 = arith.constant 6 : index
    %353 = memref.load %arg3[%c7_176, %c6_177] : memref<8x8xf32, #tpu.memory_space<smem>>
    %354 = vector.broadcast %353 : f32 to vector<8x1xf32>
    %355 = arith.select %352, %354, %350 : vector<8x1xi1>, vector<8x1xf32>
    %c6_i32_178 = arith.constant 6 : i32
    %356 = vector.broadcast %c6_i32_178 : i32 to vector<2x8x1x128xi32>
    %357 = arith.cmpi eq, %18, %356 : vector<2x8x1x128xi32>
    %358 = vector.shape_cast %355 : vector<8x1xf32> to vector<1x1x8x1xf32>
    %359 = vector.shape_cast %357 : vector<2x8x1x128xi1> to vector<2x8x1x128xi1>
    %360 = vector.broadcast %359 : vector<2x8x1x128xi1> to vector<2x8x8x128xi1>
    %361 = vector.shape_cast %358 : vector<1x1x8x1xf32> to vector<1x1x8x1xf32>
    %362 = vector.broadcast %361 : vector<1x1x8x1xf32> to vector<2x8x8x128xf32>
    %363 = arith.select %360, %362, %314 : vector<2x8x8x128xi1>, vector<2x8x8x128xf32>
    %cst_179 = arith.constant 0.000000e+00 : f32
    %364 = vector.broadcast %cst_179 : f32 to vector<8x1xf32>
    %c0_i32_180 = arith.constant 0 : i32
    %365 = vector.broadcast %c0_i32_180 : i32 to vector<8x1xi32>
    %366 = arith.cmpi eq, %19, %365 : vector<8x1xi32>
    %c0_181 = arith.constant 0 : index
    %c7_182 = arith.constant 7 : index
    %367 = memref.load %arg3[%c0_181, %c7_182] : memref<8x8xf32, #tpu.memory_space<smem>>
    %368 = vector.broadcast %367 : f32 to vector<8x1xf32>
    %369 = arith.select %366, %368, %364 : vector<8x1xi1>, vector<8x1xf32>
    %c1_i32_183 = arith.constant 1 : i32
    %370 = vector.broadcast %c1_i32_183 : i32 to vector<8x1xi32>
    %371 = arith.cmpi eq, %19, %370 : vector<8x1xi32>
    %c1_184 = arith.constant 1 : index
    %c7_185 = arith.constant 7 : index
    %372 = memref.load %arg3[%c1_184, %c7_185] : memref<8x8xf32, #tpu.memory_space<smem>>
    %373 = vector.broadcast %372 : f32 to vector<8x1xf32>
    %374 = arith.select %371, %373, %369 : vector<8x1xi1>, vector<8x1xf32>
    %c2_i32_186 = arith.constant 2 : i32
    %375 = vector.broadcast %c2_i32_186 : i32 to vector<8x1xi32>
    %376 = arith.cmpi eq, %19, %375 : vector<8x1xi32>
    %c2_187 = arith.constant 2 : index
    %c7_188 = arith.constant 7 : index
    %377 = memref.load %arg3[%c2_187, %c7_188] : memref<8x8xf32, #tpu.memory_space<smem>>
    %378 = vector.broadcast %377 : f32 to vector<8x1xf32>
    %379 = arith.select %376, %378, %374 : vector<8x1xi1>, vector<8x1xf32>
    %c3_i32_189 = arith.constant 3 : i32
    %380 = vector.broadcast %c3_i32_189 : i32 to vector<8x1xi32>
    %381 = arith.cmpi eq, %19, %380 : vector<8x1xi32>
    %c3_190 = arith.constant 3 : index
    %c7_191 = arith.constant 7 : index
    %382 = memref.load %arg3[%c3_190, %c7_191] : memref<8x8xf32, #tpu.memory_space<smem>>
    %383 = vector.broadcast %382 : f32 to vector<8x1xf32>
    %384 = arith.select %381, %383, %379 : vector<8x1xi1>, vector<8x1xf32>
    %c4_i32_192 = arith.constant 4 : i32
    %385 = vector.broadcast %c4_i32_192 : i32 to vector<8x1xi32>
    %386 = arith.cmpi eq, %19, %385 : vector<8x1xi32>
    %c4_193 = arith.constant 4 : index
    %c7_194 = arith.constant 7 : index
    %387 = memref.load %arg3[%c4_193, %c7_194] : memref<8x8xf32, #tpu.memory_space<smem>>
    %388 = vector.broadcast %387 : f32 to vector<8x1xf32>
    %389 = arith.select %386, %388, %384 : vector<8x1xi1>, vector<8x1xf32>
    %c5_i32_195 = arith.constant 5 : i32
    %390 = vector.broadcast %c5_i32_195 : i32 to vector<8x1xi32>
    %391 = arith.cmpi eq, %19, %390 : vector<8x1xi32>
    %c5_196 = arith.constant 5 : index
    %c7_197 = arith.constant 7 : index
    %392 = memref.load %arg3[%c5_196, %c7_197] : memref<8x8xf32, #tpu.memory_space<smem>>
    %393 = vector.broadcast %392 : f32 to vector<8x1xf32>
    %394 = arith.select %391, %393, %389 : vector<8x1xi1>, vector<8x1xf32>
    %c6_i32_198 = arith.constant 6 : i32
    %395 = vector.broadcast %c6_i32_198 : i32 to vector<8x1xi32>
    %396 = arith.cmpi eq, %19, %395 : vector<8x1xi32>
    %c6_199 = arith.constant 6 : index
    %c7_200 = arith.constant 7 : index
    %397 = memref.load %arg3[%c6_199, %c7_200] : memref<8x8xf32, #tpu.memory_space<smem>>
    %398 = vector.broadcast %397 : f32 to vector<8x1xf32>
    %399 = arith.select %396, %398, %394 : vector<8x1xi1>, vector<8x1xf32>
    %c7_i32_201 = arith.constant 7 : i32
    %400 = vector.broadcast %c7_i32_201 : i32 to vector<8x1xi32>
    %401 = arith.cmpi eq, %19, %400 : vector<8x1xi32>
    %c7_202 = arith.constant 7 : index
    %c7_203 = arith.constant 7 : index
    %402 = memref.load %arg3[%c7_202, %c7_203] : memref<8x8xf32, #tpu.memory_space<smem>>
    %403 = vector.broadcast %402 : f32 to vector<8x1xf32>
    %404 = arith.select %401, %403, %399 : vector<8x1xi1>, vector<8x1xf32>
    %c7_i32_204 = arith.constant 7 : i32
    %405 = vector.broadcast %c7_i32_204 : i32 to vector<2x8x1x128xi32>
    %406 = arith.cmpi eq, %18, %405 : vector<2x8x1x128xi32>
    %407 = vector.shape_cast %404 : vector<8x1xf32> to vector<1x1x8x1xf32>
    %408 = vector.shape_cast %406 : vector<2x8x1x128xi1> to vector<2x8x1x128xi1>
    %409 = vector.broadcast %408 : vector<2x8x1x128xi1> to vector<2x8x8x128xi1>
    %410 = vector.shape_cast %407 : vector<1x1x8x1xf32> to vector<1x1x8x1xf32>
    %411 = vector.broadcast %410 : vector<1x1x8x1xf32> to vector<2x8x8x128xf32>
    %412 = arith.select %409, %411, %363 : vector<2x8x8x128xi1>, vector<2x8x8x128xf32>
    %cst_205 = arith.constant 0.000000e+00 : f32
    %413 = vector.broadcast %cst_205 : f32 to vector<2x8x8x128xf32>
    %414 = arith.select %17, %412, %413 : vector<2x8x8x128xi1>, vector<2x8x8x128xf32>
    %415 = vector.shape_cast %0 : vector<2x8x128xf32> to vector<2x8x1x128xf32>
    %416 = vector.broadcast %415 : vector<2x8x1x128xf32> to vector<2x8x8x128xf32>
    %417 = arith.mulf %414, %416 : vector<2x8x8x128xf32>
    %cst_206 = arith.constant dense<0.000000e+00> : vector<2x8x128xf32>
    %418 = vector.multi_reduction <add>, %417, %cst_206 [1] : vector<2x8x8x128xf32> to vector<2x8x128xf32>
    %cst_207 = arith.constant 0.000000e+00 : f32
    %419 = vector.broadcast %cst_207 : f32 to vector<2x8x128xf32>
    %420 = arith.maximumf %418, %419 : vector<2x8x128xf32>
    %421 = arith.addf %0, %420 : vector<2x8x128xf32>
    %c0_208 = arith.constant 0 : index
    %c0_209 = arith.constant 0 : index
    %c0_210 = arith.constant 0 : index
    %422 = vector.load %arg4[%c0_208, %c0_209, %c0_210] : memref<2x8x128xf32, #tpu.memory_space<vmem>>, vector<2x8x128xf32>
    tpu.vector_store %arg4[%c0_208, %c0_209, %c0_210], %421 {strides = array<i32>} : memref<2x8x128xf32, #tpu.memory_space<vmem>>, vector<2x8x128xf32>,
    return
  }
  func.func @transform_0(%arg0: i32) -> (i32, i32, i32) {
    %c0_i32 = arith.constant 0 : i32
    %c0_i32_0 = arith.constant 0 : i32
    %c0_i32_1 = arith.constant 0 : i32
    return %arg0, %c0_i32, %c0_i32_0 : i32, i32, i32
  }
  func.func @transform_1(%arg0: i32) -> (i32, i32, i32, i32) {
    %c0_i32 = arith.constant 0 : i32
    %c0_i32_0 = arith.constant 0 : i32
    %c0_i32_1 = arith.constant 0 : i32
    %c0_i32_2 = arith.constant 0 : i32
    return %c0_i32, %arg0, %c0_i32_0, %c0_i32_1 : i32, i32, i32, i32
  }
  func.func @transform_2(%arg0: i32) -> (i32, i32) {
    %c0_i32 = arith.constant 0 : i32
    %c0_i32_0 = arith.constant 0 : i32
    %c0_i32_1 = arith.constant 0 : i32
    return %c0_i32, %c0_i32_0 : i32, i32
  }
  func.func @transform_3(%arg0: i32) -> (i32, i32, i32) {
    %c0_i32 = arith.constant 0 : i32
    %c0_i32_0 = arith.constant 0 : i32
    %c0_i32_1 = arith.constant 0 : i32
    return %arg0, %c0_i32, %c0_i32_0 : i32, i32, i32
  }
}

</mosaic_0001>

<bundles_post_ra>
// kernel: tpu_custom_call.1
= control target key start
LH: loop header
LB: loop body
LE: loop exit
PB: predicated region body
PF: predicated region fallthrough
CT: control target
= control target key end

     0   :  { %8 = vsyncpa [#allocation3], 0  ;;  %s5418_s0 = inlined_call_operand.hbm [shape: f32[2,8,128], index: 0, kind: input, shape index: {}, may-alias: {0,3}]   ;;  %s5419_s1 = inlined_call_operand.vmem [shape: s32[2,2,8,128], index: 1, kind: input, shape index: {}]   ;;  %s5420_s2 = inlined_call_operand.hbm [shape: f32[8,8], index: 2, kind: input, shape index: {}]   ;;  %s5421_s3 = inlined_call_operand.hbm [shape: f32[2,8,128], index: 3, kind: output, shape index: {}, may-alias: {0,3}]  }
   0x1   :  { %9 = vsyncpa [#allocation5], 0 }
   0x2   :  { %10 = vsyncpa [#allocation4], 0  ;;  %s2089_s12 = smov [#allocation2]   ;;  %s2029_s16 = scalar_lea.hbm %s5418_s0, 256 }
   0x3   :  { %s16_s13 = sshll.u32 %s2089_s12, 4  ;;  %p2030_p0 = scmp.ne.s32.totalorder %s5418_s0, %s2029_s16  ;;  %s17_s13 = int_to_ptr.vmem [resolvable:$true] %s16_s13 }
   0x4   :  { %p2033_p1 = scmp.lt.u32.totalorder %s2029_s16, %s5418_s0 }
   0x6   :  { %p2035_p2 = pnand %p2033_p1, %p2030_p0 }
   0x8   :  { %2038 = shalt.err (!%p2035_p2)
}
   0x9   :  { %s2039_s21 = scalar_lea.vmem %s17_s13, 256  ;;  %p2044_p4 = scmp.lt.s32.totalorder %s17_s13, %s17_s13 }
   0xa   :  { %p2040_p3 = scmp.ne.s32.totalorder %s17_s13, %s2039_s21  ;;  %p2045_p5 = scmp.lt.s32.totalorder %s2039_s21, %s2039_s21 }
   0xc   :  { %p2046_p6 = por %p2045_p5, %p2044_p4 }
   0xe   :  { %p2047_p7 = pnand %p2046_p6, %p2040_p3 }
  0x10   :  { %2050 = shalt.err (!%p2047_p7)
}
  0x11   :  { %s2090_s22 = smov 128   ;;  %s2091_s23 = smov 8  }
  0x12   :  { %22 = dma.hbm_to_vmem [thread:$0]  %s5418_s0, 256, %s17_s13, [#allocation3], %s2090_s22, %s2090_s22, %s2091_s23  }
  0x13   :  { %s2051_s28 = scalar_lea.hbm %s5420_s2, 128 }
  0x14   :  { %p2052_p8 = scmp.ne.s32.totalorder %s5420_s2, %s2051_s28  ;;  %p2055_p9 = scmp.lt.u32.totalorder %s2051_s28, %s5420_s2 }
  0x16   :  { %p2057_p10 = pnand %p2055_p9, %p2052_p8 }
  0x18   :  { %2060 = shalt.err (!%p2057_p10)
}
  0x19   :  { %s2092_s6 = smov [#allocation6]  }
  0x1a   :  { %32 = dma.hbm_to_smem %s5420_s2, 128, %s2092_s6, [#allocation5]  }
  0x1b   :  { %2083 = dma.done.wait [#allocation3], 256  }
  0x1c   :  { %2084 = vsyncadd [#allocation3], 4294967040 }
  0x1d   :  { %2085 = dma.done.wait [#allocation5], 128  }
  0x1e   :  { %2086 = vsyncadd [#allocation5], 4294967168 }
  0x1f   :  { %39 = sfence }
  0x20   :  { %v2093_v0 = vmov 1966171168   ;;  %v51_v2 = vlaneseq  ;;  %v1949_v5 = vld [vmem:[%s5419_s1 + $0x10] sm:$0xff]  ;;  %v1950_v6 = vld [vmem:[%s5419_s1 + $0x18] sm:$0xff]  ;;  %v42_v14 = vld [vmem:[%s5419_s1] sm:$0xff]  ;;  %s2270_s15 = sld [smem:[#allocation6]] }
  0x21   :  { %v49_v1 = vunpack.c.l.s4 %v2093_v0  ;;  %v47_v7 = vcombine.high %v1949_v5, %v1949_v5  ;;  %v96_v8 = vcombine.high %v1950_v6, %v1950_v6  ;;  %v43_v15 = vld [vmem:[%s5419_s1 + $0x8] sm:$0xff]  ;;  %v375_v16 = vcombine.high %v42_v14, %v42_v14  ;;  %s2277_s16 = sld [smem:[#allocation6 + $0x80]]  ;;  %s2535_s25 = sld [smem:[#allocation6 + $0x1]] }
  0x22   :  { %v2143_v4 = vshrl.u32 %v51_v2, 7  ;;  %v424_v19 = vcombine.high %v43_v15, %v43_v15  ;;  %s2284_s17 = sld [smem:[#allocation6 + $0x100]]  ;;  %v5440_v59 = vmov 0   ;;  %s2549_s26 = sld [smem:[#allocation6 + $0x81]] }
  0x23   :  { %v50_v3 = vunpack.c.0.s8 %v49_v1  ;;  %s2291_s18 = sld [smem:[#allocation6 + $0x180]]  ;;  %s2563_s27 = sld [smem:[#allocation6 + $0x101]] }
  0x24   :  { %v2171_v24 = vsub.s32 0, %v2143_v4  ;;  %vm5425_vm2 = vcmp.eq.s32.totalorder %v2143_v4, 3  ;;  %vm5424_vm12 = vcmp.eq.s32.totalorder %v2143_v4, 4  ;;  %s2306_s19 = sld [smem:[#allocation6 + $0x200]]  ;;  %s2577_s28 = sld [smem:[#allocation6 + $0x181]] }
  0x25   :  { %v2152_v9 = vsub.s32 %v50_v3, %v2143_v4  ;;  %s2369_s20 = sld [smem:[#allocation6 + $0x280]]  ;;  %s2587_s29 = sld [smem:[#allocation6 + $0x201]] }
  0x26   :  { %5613 = vst [vmem:[#allocation14_spill] sm:$0xff] %v2171_v24  ;;  %v477_v58 = vstv %s2270_s15  ;;  %s2400_s21 = sld [smem:[#allocation6 + $0x300]]  ;;  %s2601_s30 = sld [smem:[#allocation6 + $0x281]] }
  0x27   :  { %5610 = vst [vmem:[#allocation11_spill] sm:$0xff] %v2152_v9  ;;  %v54_v10 = vrot.slane %v1949_v5, %v2152_v9  ;;  %v61_v11 = vrot.slane %v47_v7, %v2152_v9  ;;  %v103_v12 = vrot.slane %v1950_v6, %v2152_v9  ;;  %v110_v13 = vrot.slane %v96_v8, %v2152_v9  ;;  %s2415_s24 = sld [smem:[#allocation6 + $0x380]]  ;;  %s2636_s4 = sld [smem:[#allocation6 + $0x301]] }
  0x28   :  { %v2177_v26 = vrot.slane %v42_v14, %v2152_v9  ;;  %v2180_v27 = vrot.slane %v375_v16, %v2152_v9  ;;  %v2183_v28 = vrot.slane %v43_v15, %v2152_v9  ;;  %v2195_v32 = vrot.slane %v424_v19, %v2152_v9  ;;  %s2649_s5 = sld [smem:[#allocation6 + $0x381]]  ;;  %s2769_s6 = sld [smem:[#allocation6 + $0x2]] }
  0x29   :  { %v62_v17 = vcombine.high %v54_v10, %v54_v10  ;;  %v63_v18 = vcombine.high %v61_v11, %v61_v11  ;;  %v2165_v20 = vrot.slane %v54_v10, %v2152_v9  ;;  %v111_v21 = vcombine.high %v103_v12, %v103_v12  ;;  %s2783_s7 = sld [smem:[#allocation6 + $0x82]]  ;;  %s3099_s12 = sld [smem:[#allocation6 + $0x3]] }
  0x2a   :  { %v112_v22 = vcombine.high %v110_v13, %v110_v13  ;;  %v2168_v23 = vrot.slane %v103_v12, %v2152_v9  ;;  %v2174_v25 = vrot.slane %v61_v11, %v2152_v9  ;;  %v2192_v31 = vrot.slane %v110_v13, %v2152_v9  ;;  %s2797_s8 = sld [smem:[#allocation6 + $0x102]]  ;;  %s3113_s13 = sld [smem:[#allocation6 + $0x83]] }
  0x2b   :  { %5611 = vst [vmem:[#allocation12_spill] sm:$0xff] %v2165_v20  ;;  %v2186_v29 = vrot.slane %v62_v17, %v2152_v9  ;;  %v2189_v30 = vrot.slane %v63_v18, %v2152_v9  ;;  %v2199_v33 = vcombine.high %v2165_v20, %v2165_v20  ;;  %v2206_v35 = vrot.slane %v111_v21, %v2152_v9  ;;  %s2811_s0 = sld [smem:[#allocation6 + $0x182]]  ;;  %s3127_s14 = sld [smem:[#allocation6 + $0x103]] }
  0x2c   :  { %5612 = vst [vmem:[#allocation13_spill] sm:$0xff] %v2168_v23  ;;  %5614 = vst [vmem:[#allocation15_spill] sm:$0xff] %v2174_v25  ;;  %v2203_v34 = vcombine.high %v2174_v25, %v2174_v25  ;;  %v2209_v36 = vrot.slane %v112_v22, %v2152_v9  ;;  %v2221_v39 = vcombine.high %v2168_v23, %v2168_v23  ;;  %vm225_vm0 = vcmp.ne.s32.totalorder %v2165_v20, 0  ;;  %s2821_s9 = sld [smem:[#allocation6 + $0x202]]  ;;  %s3141_s15 = sld [smem:[#allocation6 + $0x183]] }
  0x2d   :  { %5615 = vst [vmem:[#allocation16_spill] sm:$0xff] %v2186_v29  ;;  %5616 = vst [vmem:[#allocation17_spill] sm:$0xff] %v2189_v30  ;;  %v2213_v37 = vcombine.high %v2186_v29, %v2186_v29  ;;  %v2217_v38 = vcombine.high %v2189_v30, %v2189_v30  ;;  %v2225_v40 = vcombine.high %v2192_v31, %v2192_v31  ;;  %vm226_vm1 = vcmp.ne.s32.totalorder %v2186_v29, 0  ;;  %s2835_s10 = sld [smem:[#allocation6 + $0x282]] }
  0x2e   :  { %5617 = vst [vmem:[#allocation18_spill] sm:$0xff] %v2192_v31  ;;  %5618 = vst [vmem:[#allocation19_spill] sm:$0xff] %v2199_v33  ;;  %v2229_v41 = vcombine.high %v2206_v35, %v2206_v35  ;;  %v2233_v42 = vcombine.high %v2209_v36, %v2209_v36  ;;  %vm227_vm3 = vcmp.ne.s32.totalorder %v2199_v33, 0  ;;  %vm229_vm5 = vcmp.ne.s32.totalorder %v2174_v25, 0  ;;  %s2870_s11 = sld [smem:[#allocation6 + $0x302]] }
  0x2f   :  { %5619 = vst [vmem:[#allocation20_spill] sm:$0xff] %v2203_v34  ;;  %5620 = vst [vmem:[#allocation21_spill] sm:$0xff] %v2206_v35  ;;  %vm228_vm4 = vcmp.ne.s32.totalorder %v2213_v37, 0  ;;  %vm230_vm6 = vcmp.ne.s32.totalorder %v2189_v30, 0  ;;  %vm231_vm8 = vcmp.ne.s32.totalorder %v2203_v34, 0  ;;  %vm232_vm9 = vcmp.ne.s32.totalorder %v2217_v38, 0 }
  0x30   :  { %5621 = vst [vmem:[#allocation22_spill] sm:$0xff] %v2209_v36  ;;  %5622 = vst [vmem:[#allocation23_spill] sm:$0xff] %v2213_v37  ;;  %vm235_vm13 = vcmp.ne.s32.totalorder %v2221_v39, 0  ;;  %vm236_vm14 = vcmp.ne.s32.totalorder %v2229_v41, 0  ;;  %vm237_vm15 = vcmp.ne.s32.totalorder %v2192_v31, 0  ;;  %vm238_vm7 = vcmp.ne.s32.totalorder %v2209_v36, 0 }
  0x31   :  { %5623 = vst [vmem:[#allocation24_spill] sm:$0xff] %v2217_v38  ;;  %5624 = vst [vmem:[#allocation25_spill] sm:$0xff] %v2221_v39  ;;  %vm239_vm10 = vcmp.ne.s32.totalorder %v2225_v40, 0  ;;  %vm240_vm11 = vcmp.ne.s32.totalorder %v2233_v42, 0  ;;  %v2298_v60 = vsel %vm225_vm0, 1, %v5440_v59  ;;  %v2303_v61 = vsel %vm226_vm1, 1, %v5440_v59 }
  0x32   :  { %5625 = vst [vmem:[#allocation26_spill] sm:$0xff] %v2225_v40  ;;  %5626 = vst [vmem:[#allocation27_spill] sm:$0xff] %v2229_v41  ;;  %v2311_v62 = vsel %vm227_vm3, 1, %v5440_v59  ;;  %v2316_v63 = vsel %vm228_vm4, 1, %v5440_v59  ;;  %v2321_v0 = vsel %vm229_vm5, 1, %v5440_v59  ;;  %v2326_v1 = vsel %vm230_vm6, 1, %v5440_v59 }
  0x33   :  { %5627 = vst [vmem:[#allocation28_spill] sm:$0xff] %v2233_v42  ;;  %5628 = vst [vmem:[#allocation29_spill] sm:$0xff] %v2298_v60  ;;  %v2331_v2 = vsel %vm231_vm8, 1, %v5440_v59  ;;  %v2336_v3 = vsel %vm232_vm9, 1, %v5440_v59  ;;  %vm5636_vm0 = vcmp.ne.s32.totalorder %v2168_v23, 0  ;;  %vm5638_vm1 = vcmp.ne.s32.totalorder %v2206_v35, 0 }
  0x34   :  { %5629 = vst [vmem:[#allocation30_spill] sm:$0xff] %v2303_v61  ;;  %5630 = vst [vmem:[#allocation31_spill] sm:$0xff] %v2311_v62  ;;  %v2341_v5 = vsel %vm5636_vm0, 1, %v5440_v59  ;;  %v2346_v6 = vsel %vm5638_vm1, 1, %v5440_v59  ;;  %v2351_v7 = vsel %vm235_vm13, 1, %v5440_v59  ;;  %v2356_v8 = vsel %vm236_vm14, 1, %v5440_v59 }
  0x35   :  { %5631 = vst [vmem:[#allocation32_spill] sm:$0xff] %v2316_v63  ;;  %5632 = vst [vmem:[#allocation33_spill] sm:$0xff] %v2321_v0  ;;  %v2361_v10 = vsel %vm237_vm15, 1, %v5440_v59  ;;  %v2366_v11 = vsel %vm238_vm7, 1, %v5440_v59  ;;  %vm5423_vm3 = vcmp.eq.s32.totalorder %v2143_v4, 5  ;;  %v2374_v12 = vsel %vm239_vm10, 1, %v5440_v59 }
  0x36   :  { %5633 = vst [vmem:[#allocation34_spill] sm:$0xff] %v2326_v1  ;;  %5634 = vst [vmem:[#allocation35_spill] sm:$0xff] %v2331_v2  ;;  %v2379_v13 = vsel %vm240_vm11, 1, %v5440_v59  ;;  %v481_v57 = vstv %s2277_s16  ;;  %vm5422_vm4 = vcmp.eq.s32.totalorder %v2143_v4, 6  ;;  %vm5646_vm5 = vcmp.eq.s32.totalorder %v2143_v4, 0  ;;  %s2883_s2 = sld [smem:[#allocation6 + $0x382]] }
  0x37   :  { %5635 = vst [vmem:[#allocation36_spill] sm:$0xff] %v2336_v3  ;;  %5637 = vst [vmem:[#allocation37_spill] sm:$0xff] %v2341_v5  ;;  %v478_v49 = vsel %vm5646_vm5, %v477_v58, 0.0  ;;  %v485_v19 = vstv %s2284_s17  ;;  %v390_v21 = vcombine.high %v2177_v26, %v2177_v26  ;;  %vm5647_vm6 = vcmp.eq.s32.totalorder %v2143_v4, 1  ;;  %s3151_s16 = sld [smem:[#allocation6 + $0x203]] }
  0x38   :  { %5639 = vst [vmem:[#allocation38_spill] sm:$0xff] %v2346_v6  ;;  %5640 = vst [vmem:[#allocation39_spill] sm:$0xff] %v2351_v7  ;;  %v482_v22 = vsel %vm5647_vm6, %v481_v57, %v478_v49  ;;  %v489_v48 = vstv %s2291_s18  ;;  %v493_v55 = vstv %s2306_s19  ;;  %v391_v54 = vcombine.high %v2180_v27, %v2180_v27  ;;  %s3165_s17 = sld [smem:[#allocation6 + $0x283]] }
  0x39   :  { %5641 = vst [vmem:[#allocation40_spill] sm:$0xff] %v2356_v8  ;;  %5642 = vst [vmem:[#allocation41_spill] sm:$0xff] %v2361_v10  ;;  %v2421_v53 = vrot.slane %v2177_v26, %v2152_v9  ;;  %v439_v58 = vcombine.high %v2183_v28, %v2183_v28  ;;  %vm5648_vm7 = vcmp.eq.s32.totalorder %v2143_v4, 2  ;;  %vm5443_vm8 = vcmp.eq.s32.totalorder %v2143_v4, 7  ;;  %s3200_s18 = sld [smem:[#allocation6 + $0x303]] }
  0x3a   :  { %5643 = vst [vmem:[#allocation42_spill] sm:$0xff] %v2366_v11  ;;  %5644 = vst [vmem:[#allocation43_spill] sm:$0xff] %v2374_v12  ;;  %v486_v50 = vsel %vm5648_vm7, %v485_v19, %v482_v22  ;;  %v440_v52 = vcombine.high %v2195_v32, %v2195_v32  ;;  %v2438_v56 = vrot.slane %v2180_v27, %v2152_v9  ;;  %v497_v49 = vstv %s2369_s20  ;;  %s3213_s19 = sld [smem:[#allocation6 + $0x383]]  ;;  %s3349_s20 = sld [smem:[#allocation6 + $0x4]] }
  0x3b   :  { %5645 = vst [vmem:[#allocation44_spill] sm:$0xff] %v2379_v13  ;;  %v490_v26 = vsel %vm5425_vm2, %v489_v48, %v486_v50  ;;  %v2442_v19 = vrot.slane %v2183_v28, %v2152_v9  ;;  %v2452_v48 = vrot.slane %v390_v21, %v2152_v9  ;;  %v2456_v27 = vrot.slane %v2195_v32, %v2152_v9 }
  0x3c   :  { %5649 = vst [vmem:[#allocation45_spill] sm:$0xff] %v2438_v56  ;;  %v494_v22 = vsel %vm5424_vm12, %v493_v55, %v490_v26  ;;  %v2459_v28 = vrot.slane %v391_v54, %v2152_v9  ;;  %v2463_v50 = vcombine.high %v2421_v53, %v2421_v53  ;;  %v2467_v55 = vcombine.high %v2438_v56, %v2438_v56 }
  0x3d   :  { %5650 = vst [vmem:[#allocation46_spill] sm:$0xff] %v2442_v19  ;;  %5651 = vst [vmem:[#allocation47_spill] sm:$0xff] %v2456_v27  ;;  %v2470_v26 = vrot.slane %v439_v58, %v2152_v9  ;;  %v2474_v21 = vcombine.high %v2452_v48, %v2452_v48  ;;  %v2477_v32 = vrot.slane %v440_v52, %v2152_v9  ;;  %v501_v51 = vstv %s2400_s21  ;;  %s3363_s21 = sld [smem:[#allocation6 + $0x84]] }
  0x3e   :  { %5652 = vst [vmem:[#allocation48_spill] sm:$0xff] %v2459_v28  ;;  %5653 = vst [vmem:[#allocation49_spill] sm:$0xff] %v2463_v50  ;;  %v498_v54 = vsel %vm5423_vm3, %v497_v49, %v494_v22  ;;  %v2488_v58 = vcombine.high %v2459_v28, %v2459_v28  ;;  %v2492_v47 = vcombine.high %v2442_v19, %v2442_v19  ;;  %v505_v18 = vstv %s2415_s24  ;;  %s3377_s24 = sld [smem:[#allocation6 + $0x104]] }
  0x3f   :  { %5654 = vst [vmem:[#allocation50_spill] sm:$0xff] %v2467_v55  ;;  %5655 = vst [vmem:[#allocation51_spill] sm:$0xff] %v2470_v26  ;;  %v2496_v52 = vcombine.high %v2456_v27, %v2456_v27  ;;  %v2500_v49 = vcombine.high %v2470_v26, %v2470_v26  ;;  %v2504_v22 = vcombine.high %v2477_v32, %v2477_v32  ;;  %vm507_vm9 = vcmp.eq.s32.totalorder %v2421_v53, 0 }
  0x40   :  { %5656 = vst [vmem:[#allocation52_spill] sm:$0xff] %v2474_v21  ;;  %5657 = vst [vmem:[#allocation53_spill] sm:$0xff] %v2477_v32  ;;  %v502_v57 = vsel %vm5422_vm4, %v501_v51, %v498_v54  ;;  %vm508_vm10 = vcmp.eq.s32.totalorder %v2452_v48, 0  ;;  %vm509_vm11 = vcmp.eq.s32.totalorder %v2463_v50, 0  ;;  %vm510_vm13 = vcmp.eq.s32.totalorder %v2474_v21, 0 }
  0x41   :  { %5658 = vst [vmem:[#allocation54_spill] sm:$0xff] %v2488_v58  ;;  %5659 = vst [vmem:[#allocation55_spill] sm:$0xff] %v2492_v47  ;;  %vm511_vm14 = vcmp.eq.s32.totalorder %v2438_v56, 0  ;;  %vm512_vm15 = vcmp.eq.s32.totalorder %v2459_v28, 0  ;;  %vm513_vm0 = vcmp.eq.s32.totalorder %v2467_v55, 0  ;;  %vm515_vm5 = vcmp.eq.s32.totalorder %v2442_v19, 0 }
  0x42   :  { %5660 = vst [vmem:[#allocation56_spill] sm:$0xff] %v2496_v52  ;;  %5661 = vst [vmem:[#allocation57_spill] sm:$0xff] %v2500_v49  ;;  %vm516_vm6 = vcmp.eq.s32.totalorder %v2470_v26, 0  ;;  %vm517_vm7 = vcmp.eq.s32.totalorder %v2492_v47, 0  ;;  %v2522_v51 = vsel %vm5443_vm8, %v505_v18, %v502_v57  ;;  %vm518_vm4 = vcmp.eq.s32.totalorder %v2500_v49, 0 }
  0x43   :  { %5662 = vst [vmem:[#allocation58_spill] sm:$0xff] %v2504_v22  ;;  %vm519_vm3 = vcmp.eq.s32.totalorder %v2456_v27, 0  ;;  %vm520_vm12 = vcmp.eq.s32.totalorder %v2477_v32, 0  ;;  %vm521_vm2 = vcmp.eq.s32.totalorder %v2496_v52, 0  ;;  %vm522_vm1 = vcmp.eq.s32.totalorder %v2504_v22, 0 }
  0x44   :  { %v523_v54 = vsel %vm507_vm9, 1, %v5440_v59  ;;  %v524_v17 = vsel %vm508_vm10, 1, %v5440_v59  ;;  %v525_v18 = vsel %vm509_vm11, 1, %v5440_v59  ;;  %v526_v57 = vsel %vm510_vm13, 1, %v5440_v59 }
  0x45   :  { %v527_v46 = vsel %vm511_vm14, 1, %v5440_v59  ;;  %v528_v16 = vsel %vm512_vm15, 1, %v5440_v59  ;;  %v529_v45 = vsel %vm513_vm0, 1, %v5440_v59  ;;  %vm5663_vm9 = vcmp.eq.s32.totalorder %v2488_v58, 0 }
  0x46   :  { %v530_v15 = vsel %vm5663_vm9, 1, %v5440_v59  ;;  %v531_v44 = vsel %vm515_vm5, 1, %v5440_v59  ;;  %v532_v14 = vsel %vm516_vm6, 1, %v5440_v59  ;;  %v533_v43 = vsel %vm517_vm7, 1, %v5440_v59 }
  0x47   :  { %v534_v13 = vsel %vm518_vm4, 1, %v5440_v59  ;;  %v535_v42 = vsel %vm519_vm3, 1, %v5440_v59  ;;  %v536_v9 = vsel %vm520_vm12, 1, %v5440_v59  ;;  %v537_v12 = vsel %vm521_vm2, 1, %v5440_v59 }
  0x48   :  { %v538_v40 = vsel %vm522_vm1, 1, %v5440_v59  ;;  %v542_v11 = vrot.slane %v523_v54, %v2171_v24  ;;  %v546_v36 = vrot.slane %v524_v17, %v2171_v24  ;;  %v550_v3 = vrot.slane %v525_v18, %v2171_v24 }
  0x49   :  { %v554_v38 = vrot.slane %v526_v57, %v2171_v24  ;;  %v558_v2 = vrot.slane %v527_v46, %v2171_v24  ;;  %v562_v34 = vrot.slane %v528_v16, %v2171_v24  ;;  %v566_v1 = vrot.slane %v529_v45, %v2171_v24 }
  0x4a   :  { %v570_v30 = vrot.slane %v530_v15, %v2171_v24  ;;  %v574_v59 = vrot.slane %v531_v44, %v2171_v24  ;;  %v578_v54 = vrot.slane %v532_v14, %v2171_v24  ;;  %v582_v17 = vrot.slane %v533_v43, %v2171_v24 }
  0x4b   :  { %v586_v18 = vrot.slane %v534_v13, %v2171_v24  ;;  %v590_v57 = vrot.slane %v535_v42, %v2171_v24  ;;  %v594_v46 = vrot.slane %v536_v9, %v2171_v24  ;;  %v598_v45 = vrot.slane %v537_v12, %v2171_v24 }
  0x4c   :  { %v602_v44 = vrot.slane %v538_v40, %v2171_v24  ;;  %vm2605_vm2 = vcmp.eq.s32.totalorder %v542_v11, 1  ;;  %vm2609_vm12 = vcmp.eq.s32.totalorder %v546_v36, 1  ;;  %vm2613_vm3 = vcmp.eq.s32.totalorder %v550_v3, 1 }
  0x4d   :  { %vm2617_vm4 = vcmp.eq.s32.totalorder %v554_v38, 1  ;;  %vm2621_vm10 = vcmp.eq.s32.totalorder %v558_v2, 1  ;;  %vm2625_vm11 = vcmp.eq.s32.totalorder %v562_v34, 1  ;;  %v5674_v40 = vmov 0 }
  0x4e   :  { %v5675_v40 = vsel %vm2625_vm11, 4294967295, %v5674_v40  ;;  %vm2629_vm13 = vcmp.eq.s32.totalorder %v566_v1, 1  ;;  %v5676_v36 = vmov 0  ;;  %v636_v3 = vstv %s2535_s25  ;;  %s3391_s25 = sld [smem:[#allocation6 + $0x184]] }
  0x4f   :  { %v5677_v36 = vsel %vm2629_vm13, 4294967295, %v5676_v36  ;;  %v639_v11 = vstv %s2549_s26  ;;  %v642_v12 = vstv %s2563_s27  ;;  %vm2638_vm14 = vcmp.eq.s32.totalorder %v570_v30, 1  ;;  %s3401_s26 = sld [smem:[#allocation6 + $0x204]] }
  0x50   :  { %v5678_v38 = vmov 0  ;;  %vm2642_vm15 = vcmp.eq.s32.totalorder %v574_v59, 1  ;;  %v5680_v2 = vmov 0  ;;  %vm5682_vm0 = vcmp.eq.s32.totalorder %v2143_v4, 0  ;;  %s3415_s27 = sld [smem:[#allocation6 + $0x284]] }
  0x51   :  { %v5679_v38 = vsel %vm2638_vm14, 4294967295, %v5678_v38  ;;  %v5681_v2 = vsel %vm2642_vm15, 4294967295, %v5680_v2  ;;  %v637_v34 = vsel %vm5682_vm0, %v636_v3, 0.0  ;;  %v645_v1 = vstv %s2577_s28  ;;  %s3450_s28 = sld [smem:[#allocation6 + $0x304]] }
  0x52   :  { %vm2651_vm1 = vcmp.eq.s32.totalorder %v578_v54, 1  ;;  %v5683_v14 = vmov 0  ;;  %vm2655_vm5 = vcmp.eq.s32.totalorder %v582_v17, 1  ;;  %v5685_v30 = vmov 0 }
  0x53   :  { %v5684_v14 = vsel %vm2651_vm1, 4294967295, %v5683_v14  ;;  %v5686_v30 = vsel %vm2655_vm5, 4294967295, %v5685_v30  ;;  %vm5687_vm6 = vcmp.eq.s32.totalorder %v2143_v4, 1  ;;  %v648_v16 = vstv %s2587_s29  ;;  %s3463_s29 = sld [smem:[#allocation6 + $0x384]] }
  0x54   :  { %v640_v59 = vsel %vm5687_vm6, %v639_v11, %v637_v34  ;;  %vm2662_vm7 = vcmp.eq.s32.totalorder %v586_v18, 1  ;;  %v5688_v10 = vmov 0  ;;  %vm2666_vm9 = vcmp.eq.s32.totalorder %v590_v57, 1 }
  0x55   :  { %v5689_v10 = vsel %vm2662_vm7, 4294967295, %v5688_v10  ;;  %v5690_v3 = vmov 0  ;;  %vm2670_vm0 = vcmp.eq.s32.totalorder %v594_v46, 1  ;;  %v5692_v54 = vmov 0 }
  0x56   :  { %v5691_v3 = vsel %vm2666_vm9, 4294967295, %v5690_v3  ;;  %v5693_v54 = vsel %vm2670_vm0, 4294967295, %v5692_v54  ;;  %vm5694_vm8 = vcmp.eq.s32.totalorder %v2143_v4, 2  ;;  %vm2676_vm5 = vcmp.eq.s32.totalorder %v598_v45, 1 }
  0x57   :  { %v643_v17 = vsel %vm5694_vm8, %v642_v12, %v640_v59  ;;  %v5695_v31 = vmov 0  ;;  %vm2680_vm6 = vcmp.eq.s32.totalorder %v602_v44, 1  ;;  %v5697_v18 = vmov 0 }
  0x58   :  { %v5696_v31 = vsel %vm2676_vm5, 4294967295, %v5695_v31  ;;  %v5698_v18 = vsel %vm2680_vm6, 4294967295, %v5697_v18  ;;  %vm5699_vm9 = vcmp.eq.s32.totalorder %v2143_v4, 3  ;;  %vm5700_vm8 = vcmp.eq.s32.totalorder %v2143_v4, 4 }
  0x59   :  { %v646_v46 = vsel %vm5699_vm9, %v645_v1, %v643_v17  ;;  %v651_v12 = vstv %s2601_s30  ;;  %vm5703_vm14 = vcmp.eq.s32.totalorder %v2143_v4, 5  ;;  %v657_v45 = vstv %s2649_s5  ;;  %s3695_s30 = sld [smem:[#allocation6 + $0x5]] }
  0x5a   :  { %v649_v44 = vsel %vm5700_vm8, %v648_v16, %v646_v46  ;;  %v654_v46 = vstv %s2636_s4  ;;  %vm5704_vm1 = vcmp.eq.s32.totalorder %v2143_v4, 6  ;;  %vm665_vm15 = vcmp.eq.s32.totalorder %v2467_v55, 1  ;;  %s3709_s4 = sld [smem:[#allocation6 + $0x85]] }
  0x5b   :  { %v652_v34 = vsel %vm5703_vm14, %v651_v12, %v649_v44  ;;  %vm668_vm7 = vcmp.eq.s32.totalorder %v2470_v26, 1  ;;  %vm670_vm14 = vcmp.eq.s32.totalorder %v2500_v49, 1  ;;  %vm671_vm9 = vcmp.eq.s32.totalorder %v2456_v27, 1  ;;  %s3723_s5 = sld [smem:[#allocation6 + $0x105]] }
  0x5c   :  { %v655_v44 = vsel %vm5704_vm1, %v654_v46, %v652_v34  ;;  %vm673_vm0 = vcmp.eq.s32.totalorder %v2496_v52, 1  ;;  %vm5705_vm5 = vcmp.eq.s32.totalorder %v2143_v4, 7  ;;  %v5706_v34 = vmov 0  }
  0x5d   :  { %v2760_v12 = vsel %vm5705_vm5, %v657_v45, %v655_v44  ;;  %vm5707_vm13 = vcmp.eq.s32.totalorder %v2421_v53, 1  ;;  %vm5708_vm8 = vcmp.eq.s32.totalorder %v2452_v48, 1  ;;  %vm5709_vm1 = vcmp.eq.s32.totalorder %v2463_v50, 1 }
  0x5e   :  { %v675_v46 = vsel %vm5707_vm13, 1, %v5706_v34  ;;  %v676_v17 = vsel %vm5708_vm8, 1, %v5706_v34  ;;  %v677_v59 = vsel %vm5709_vm1, 1, %v5706_v34  ;;  %vm5710_vm5 = vcmp.eq.s32.totalorder %v2474_v21, 1 }
  0x5f   :  { %v678_v45 = vsel %vm5710_vm5, 1, %v5706_v34  ;;  %vm5711_vm6 = vcmp.eq.s32.totalorder %v2438_v56, 1  ;;  %vm5712_vm13 = vcmp.eq.s32.totalorder %v2459_v28, 1  ;;  %v681_v16 = vsel %vm665_vm15, 1, %v5706_v34 }
  0x60   :  { %v679_v44 = vsel %vm5711_vm6, 1, %v5706_v34  ;;  %v680_v1 = vsel %vm5712_vm13, 1, %v5706_v34  ;;  %vm5713_vm8 = vcmp.eq.s32.totalorder %v2488_v58, 1  ;;  %vm5714_vm1 = vcmp.eq.s32.totalorder %v2442_v19, 1 }
  0x61   :  { %v682_v11 = vsel %vm5713_vm8, 1, %v5706_v34  ;;  %v683_v57 = vsel %vm5714_vm1, 1, %v5706_v34  ;;  %v684_v8 = vsel %vm668_vm7, 1, %v5706_v34  ;;  %vm5715_vm6 = vcmp.eq.s32.totalorder %v2492_v47, 1 }
  0x62   :  { %v685_v41 = vsel %vm5715_vm6, 1, %v5706_v34  ;;  %v686_v7 = vsel %vm670_vm14, 1, %v5706_v34  ;;  %v687_v39 = vsel %vm671_vm9, 1, %v5706_v34  ;;  %vm5716_vm15 = vcmp.eq.s32.totalorder %v2477_v32, 1 }
  0x63   :  { %v688_v6 = vsel %vm5716_vm15, 1, %v5706_v34  ;;  %v689_v35 = vsel %vm673_vm0, 1, %v5706_v34  ;;  %vm5717_vm7 = vcmp.eq.s32.totalorder %v2504_v22, 1  ;;  %v694_v23 = vrot.slane %v675_v46, %v2171_v24 }
  0x64   :  { %v690_v5 = vsel %vm5717_vm7, 1, %v5706_v34  ;;  %v698_v0 = vrot.slane %v676_v17, %v2171_v24  ;;  %v702_v25 = vrot.slane %v677_v59, %v2171_v24  ;;  %v706_v63 = vrot.slane %v678_v45, %v2171_v24 }
  0x65   :  { %v710_v37 = vrot.slane %v679_v44, %v2171_v24  ;;  %v714_v62 = vrot.slane %v680_v1, %v2171_v24  ;;  %v718_v33 = vrot.slane %v681_v16, %v2171_v24  ;;  %v722_v61 = vrot.slane %v682_v11, %v2171_v24 }
  0x66   :  { %v726_v29 = vrot.slane %v683_v57, %v2171_v24  ;;  %v730_v46 = vrot.slane %v684_v8, %v2171_v24  ;;  %v734_v17 = vrot.slane %v685_v41, %v2171_v24  ;;  %v738_v59 = vrot.slane %v686_v7, %v2171_v24 }
  0x67   :  { %v742_v45 = vrot.slane %v687_v39, %v2171_v24  ;;  %v746_v44 = vrot.slane %v688_v6, %v2171_v24  ;;  %v750_v1 = vrot.slane %v689_v35, %v2171_v24  ;;  %v754_v57 = vrot.slane %v690_v5, %v2171_v24 }
  0x68   :  { %vm2839_vm0 = vcmp.eq.s32.totalorder %v694_v23, 1  ;;  %vm2843_vm9 = vcmp.eq.s32.totalorder %v698_v0, 1  ;;  %vm2847_vm14 = vcmp.eq.s32.totalorder %v702_v25, 1  ;;  %vm2851_vm5 = vcmp.eq.s32.totalorder %v706_v63, 1 }
  0x69   :  { %vm2855_vm13 = vcmp.eq.s32.totalorder %v710_v37, 1  ;;  %vm2859_vm8 = vcmp.eq.s32.totalorder %v714_v62, 1  ;;  %v5728_v23 = vmov 0  ;;  %vm2863_vm1 = vcmp.eq.s32.totalorder %v718_v33, 1 }
  0x6a   :  { %v5729_v23 = vsel %vm2859_vm8, 4294967295, %v5728_v23  ;;  %v5730_v0 = vmov 0  ;;  %v788_v25 = vstv %s2769_s6  ;;  %v791_v5 = vstv %s2783_s7  ;;  %s3737_s6 = sld [smem:[#allocation6 + $0x185]] }
  0x6b   :  { %v5731_v0 = vsel %vm2863_vm1, 4294967295, %v5730_v0  ;;  %v794_v6 = vstv %s2797_s8  ;;  %vm2872_vm6 = vcmp.eq.s32.totalorder %v722_v61, 1  ;;  %v5732_v63 = vmov 0  ;;  %s3747_s7 = sld [smem:[#allocation6 + $0x205]] }
  0x6c   :  { %v5733_v63 = vsel %vm2872_vm6, 4294967295, %v5732_v63  ;;  %vm2876_vm15 = vcmp.eq.s32.totalorder %v726_v29, 1  ;;  %v5734_v37 = vmov 0  ;;  %vm5736_vm7 = vcmp.eq.s32.totalorder %v2143_v4, 0  ;;  %s3761_s8 = sld [smem:[#allocation6 + $0x285]] }
  0x6d   :  { %v5735_v37 = vsel %vm2876_vm15, 4294967295, %v5734_v37  ;;  %v789_v62 = vsel %vm5736_vm7, %v788_v25, 0.0  ;;  %v797_v33 = vstv %s2811_s0  ;;  %vm2885_vm1 = vcmp.eq.s32.totalorder %v730_v46, 1  ;;  %s3796_s0 = sld [smem:[#allocation6 + $0x305]] }
  0x6e   :  { %v5737_v8 = vmov 0  ;;  %vm2889_vm8 = vcmp.eq.s32.totalorder %v734_v17, 1  ;;  %v5739_v61 = vmov 0  ;;  %vm5741_vm6 = vcmp.eq.s32.totalorder %v2143_v4, 1 }
  0x6f   :  { %v5738_v8 = vsel %vm2885_vm1, 4294967295, %v5737_v8  ;;  %v5740_v61 = vsel %vm2889_vm8, 4294967295, %v5739_v61  ;;  %v792_v29 = vsel %vm5741_vm6, %v791_v5, %v789_v62  ;;  %v800_v16 = vstv %s2821_s9  ;;  %s3809_s9 = sld [smem:[#allocation6 + $0x385]] }
  0x70   :  { %vm2896_vm15 = vcmp.eq.s32.totalorder %v738_v59, 1  ;;  %vm2900_vm7 = vcmp.eq.s32.totalorder %v742_v45, 1  ;;  %vm2904_vm11 = vcmp.eq.s32.totalorder %v746_v44, 1  ;;  %v5746_v46 = vmov 0 }
  0x71   :  { %v5747_v46 = vsel %vm2904_vm11, 4294967295, %v5746_v46  ;;  %vm5748_vm1 = vcmp.eq.s32.totalorder %v2143_v4, 2  ;;  %vm2910_vm8 = vcmp.eq.s32.totalorder %v750_v1, 1  ;;  %vm2914_vm6 = vcmp.eq.s32.totalorder %v754_v57, 1 }
  0x72   :  { %v795_v17 = vsel %vm5748_vm1, %v794_v6, %v792_v29  ;;  %v5753_v45 = vsel %vm2605_vm2, %v2522_v51, 0.0  ;;  %vm5754_vm11 = vcmp.eq.s32.totalorder %v2143_v4, 3  ;;  %v5755_v1 = vsel %vm2609_vm12, %v2522_v51, 0.0 }
  0x73   :  { %v2925_v44 = vsel %vm2839_vm0, %v2760_v12, %v5753_v45  ;;  %v798_v5 = vsel %vm5754_vm11, %v797_v33, %v795_v17  ;;  %v2936_v57 = vsel %vm2843_vm9, %v2760_v12, %v5755_v1  ;;  %v5756_v15 = vsel %vm2613_vm3, %v2522_v51, 0.0 }
  0x74   :  { %v2945_v11 = vsel %vm2847_vm14, %v2760_v12, %v5756_v15  ;;  %vm5757_vm2 = vcmp.eq.s32.totalorder %v2143_v4, 4  ;;  %v803_v6 = vstv %s2835_s10  ;;  %v5758_v41 = vsel %vm2617_vm4, %v2522_v51, 0.0  ;;  %s3945_s10 = sld [smem:[#allocation6 + $0x6]] }
  0x75   :  { %v801_v43 = vsel %vm5757_vm2, %v800_v16, %v798_v5  ;;  %v2957_v13 = vsel %vm2851_vm5, %v2760_v12, %v5758_v41  ;;  %v5759_v7 = vsel %vm2621_vm10, %v2522_v51, 0.0  ;;  %vm5760_vm12 = vnez %v5675_v40 }
  0x76   :  { %v2966_v62 = vsel %vm2855_vm13, %v2760_v12, %v5759_v7  ;;  %v5761_v9 = vsel %vm5760_vm12, %v2522_v51, 0.0  ;;  %vm5762_vm3 = vnez %v5729_v23  ;;  %vm5763_vm4 = vnez %v5677_v36 }
  0x77   :  { %v2975_v39 = vsel %vm5762_vm3, %v2760_v12, %v5761_v9  ;;  %v5764_v42 = vsel %vm5763_vm4, %v2522_v51, 0.0  ;;  %vm5765_vm10 = vnez %v5731_v0  ;;  %vm5766_vm11 = vnez %v5679_v38 }
  0x78   :  { %v2984_v33 = vsel %vm5765_vm10, %v2760_v12, %v5764_v42  ;;  %v5767_v40 = vsel %vm5766_vm11, %v2522_v51, 0.0  ;;  %vm5768_vm0 = vnez %v5733_v63  ;;  %vm5769_vm9 = vnez %v5681_v2 }
  0x79   :  { %v2993_v35 = vsel %vm5768_vm0, %v2760_v12, %v5767_v40  ;;  %v5770_v36 = vsel %vm5769_vm9, %v2522_v51, 0.0  ;;  %vm5771_vm14 = vnez %v5735_v37  ;;  %vm5772_vm5 = vnez %v5684_v14 }
  0x7a   :  { %v3002_v23 = vsel %vm5771_vm14, %v2760_v12, %v5770_v36  ;;  %v5773_v38 = vsel %vm5772_vm5, %v2522_v51, 0.0  ;;  %vm5774_vm13 = vnez %v5738_v8  ;;  %vm5775_vm1 = vnez %v5686_v30 }
  0x7b   :  { %v3011_v0 = vsel %vm5774_vm13, %v2760_v12, %v5773_v38  ;;  %v5776_v2 = vsel %vm5775_vm1, %v2522_v51, 0.0  ;;  %vm5777_vm2 = vnez %v5740_v61  ;;  %vm5778_vm12 = vnez %v5689_v10 }
  0x7c   :  { %v3020_v63 = vsel %vm5777_vm2, %v2760_v12, %v5776_v2  ;;  %v5779_v14 = vsel %vm5778_vm12, %v2522_v51, 0.0  ;;  %vm5780_vm3 = vnez %v5691_v3  ;;  %vm5782_vm4 = vcmp.eq.s32.totalorder %v2143_v4, 5 }
  0x7d   :  { %v3029_v37 = vsel %vm2896_vm15, %v2760_v12, %v5779_v14  ;;  %v5781_v30 = vsel %vm5780_vm3, %v2522_v51, 0.0  ;;  %v804_v61 = vsel %vm5782_vm4, %v803_v6, %v801_v43  ;;  %v806_v10 = vstv %s2870_s11  ;;  %s3959_s11 = sld [smem:[#allocation6 + $0x86]] }
  0x7e   :  { %v3038_v8 = vsel %vm2900_vm7, %v2760_v12, %v5781_v30  ;;  %vm5783_vm10 = vnez %v5693_v54  ;;  %vm5785_vm15 = vnez %v5747_v46  ;;  %vm5786_vm11 = vnez %v5696_v31 }
  0x7f   :  { %v5784_v29 = vsel %vm5783_vm10, %v2522_v51, 0.0  ;;  %v5787_v3 = vsel %vm5786_vm11, %v2522_v51, 0.0  ;;  %vm5788_vm7 = vnez %v5698_v18  ;;  %v809_v46 = vstv %s2883_s2  ;;  %s3973_s2 = sld [smem:[#allocation6 + $0x106]] }
  0x80   :  { %v3050_v60 = vsel %vm5785_vm15, %v2760_v12, %v5784_v29  ;;  %v3059_v16 = vsel %vm2910_vm8, %v2760_v12, %v5787_v3  ;;  %v5789_v54 = vsel %vm5788_vm7, %v2522_v51, 0.0  ;;  %vm811_vm0 = vcmp.eq.s32.totalorder %v2421_v53, 2 }
  0x81   :  { %v3068_v25 = vsel %vm2914_vm6, %v2760_v12, %v5789_v54  ;;  %vm812_vm9 = vcmp.eq.s32.totalorder %v2452_v48, 2  ;;  %vm813_vm14 = vcmp.eq.s32.totalorder %v2463_v50, 2  ;;  %vm814_vm5 = vcmp.eq.s32.totalorder %v2474_v21, 2 }
  0x82   :  { %vm5790_vm8 = vcmp.eq.s32.totalorder %v2143_v4, 6  ;;  %vm815_vm13 = vcmp.eq.s32.totalorder %v2438_v56, 2  ;;  %vm816_vm1 = vcmp.eq.s32.totalorder %v2459_v28, 2  ;;  %vm817_vm2 = vcmp.eq.s32.totalorder %v2467_v55, 2 }
  0x83   :  { %v807_v20 = vsel %vm5790_vm8, %v806_v10, %v804_v61  ;;  %vm819_vm12 = vcmp.eq.s32.totalorder %v2442_v19, 2  ;;  %vm820_vm3 = vcmp.eq.s32.totalorder %v2470_v26, 2  ;;  %vm821_vm4 = vcmp.eq.s32.totalorder %v2492_v47, 2 }
  0x84   :  { %vm822_vm10 = vcmp.eq.s32.totalorder %v2500_v49, 2  ;;  %vm823_vm15 = vcmp.eq.s32.totalorder %v2456_v27, 2  ;;  %vm824_vm11 = vcmp.eq.s32.totalorder %v2477_v32, 2  ;;  %vm825_vm7 = vcmp.eq.s32.totalorder %v2496_v52, 2 }
  0x85   :  { %vm5791_vm8 = vcmp.eq.s32.totalorder %v2143_v4, 7  ;;  %vm826_vm6 = vcmp.eq.s32.totalorder %v2504_v22, 2  ;;  %v827_v51 = vsel %vm811_vm0, 1, %v5706_v34  ;;  %v828_v18 = vsel %vm812_vm9, 1, %v5706_v34 }
  0x86   :  { %v3090_v31 = vsel %vm5791_vm8, %v809_v46, %v807_v20  ;;  %v829_v12 = vsel %vm813_vm14, 1, %v5706_v34  ;;  %v830_v17 = vsel %vm814_vm5, 1, %v5706_v34  ;;  %v831_v59 = vsel %vm815_vm13, 1, %v5706_v34 }
  0x87   :  { %v832_v45 = vsel %vm816_vm1, 1, %v5706_v34  ;;  %v833_v5 = vsel %vm817_vm2, 1, %v5706_v34  ;;  %vm5792_vm0 = vcmp.eq.s32.totalorder %v2488_v58, 2  ;;  %v835_v15 = vsel %vm819_vm12, 1, %v5706_v34 }
  0x88   :  { %v834_v1 = vsel %vm5792_vm0, 1, %v5706_v34  ;;  %v836_v43 = vsel %vm820_vm3, 1, %v5706_v34  ;;  %v837_v6 = vsel %vm821_vm4, 1, %v5706_v34  ;;  %v838_v41 = vsel %vm822_vm10, 1, %v5706_v34 }
  0x89   :  { %v839_v7 = vsel %vm823_vm15, 1, %v5706_v34  ;;  %v840_v9 = vsel %vm824_vm11, 1, %v5706_v34  ;;  %v841_v42 = vsel %vm825_vm7, 1, %v5706_v34  ;;  %v842_v40 = vsel %vm826_vm6, 1, %v5706_v34 }
  0x8a   :  { %v846_v36 = vrot.slane %v827_v51, %v2171_v24  ;;  %v850_v38 = vrot.slane %v828_v18, %v2171_v24  ;;  %v854_v2 = vrot.slane %v829_v12, %v2171_v24  ;;  %v858_v14 = vrot.slane %v830_v17, %v2171_v24 }
  0x8b   :  { %v862_v30 = vrot.slane %v831_v59, %v2171_v24  ;;  %v866_v61 = vrot.slane %v832_v45, %v2171_v24  ;;  %v870_v10 = vrot.slane %v833_v5, %v2171_v24  ;;  %v874_v29 = vrot.slane %v834_v1, %v2171_v24 }
  0x8c   :  { %v878_v3 = vrot.slane %v835_v15, %v2171_v24  ;;  %v882_v54 = vrot.slane %v836_v43, %v2171_v24  ;;  %v886_v46 = vrot.slane %v837_v6, %v2171_v24  ;;  %v890_v20 = vrot.slane %v838_v41, %v2171_v24 }
  0x8d   :  { %v894_v51 = vrot.slane %v839_v7, %v2171_v24  ;;  %v898_v18 = vrot.slane %v840_v9, %v2171_v24  ;;  %v902_v12 = vrot.slane %v841_v42, %v2171_v24  ;;  %v906_v17 = vrot.slane %v842_v40, %v2171_v24 }
  0x8e   :  { %vm3169_vm9 = vcmp.eq.s32.totalorder %v846_v36, 1  ;;  %vm3173_vm14 = vcmp.eq.s32.totalorder %v850_v38, 1  ;;  %vm3177_vm5 = vcmp.eq.s32.totalorder %v854_v2, 1  ;;  %vm3181_vm13 = vcmp.eq.s32.totalorder %v858_v14, 1 }
  0x8f   :  { %vm3185_vm1 = vcmp.eq.s32.totalorder %v862_v30, 1  ;;  %vm3189_vm2 = vcmp.eq.s32.totalorder %v866_v61, 1  ;;  %v5803_v43 = vmov 0  ;;  %vm3193_vm6 = vcmp.eq.s32.totalorder %v870_v10, 1 }
  0x90   :  { %v5804_v43 = vsel %vm3189_vm2, 4294967295, %v5803_v43  ;;  %v5805_v6 = vmov 0  ;;  %v940_v41 = vstv %s3099_s12  ;;  %v943_v7 = vstv %s3113_s13  ;;  %s3987_s12 = sld [smem:[#allocation6 + $0x186]] }
  0x91   :  { %v5806_v6 = vsel %vm3193_vm6, 4294967295, %v5805_v6  ;;  %v946_v9 = vstv %s3127_s14  ;;  %vm3202_vm12 = vcmp.eq.s32.totalorder %v874_v29, 1  ;;  %v5807_v42 = vmov 0  ;;  %s3997_s13 = sld [smem:[#allocation6 + $0x206]] }
  0x92   :  { %v5808_v42 = vsel %vm3202_vm12, 4294967295, %v5807_v42  ;;  %vm3206_vm3 = vcmp.eq.s32.totalorder %v878_v3, 1  ;;  %v5809_v40 = vmov 0  ;;  %vm5811_vm4 = vcmp.eq.s32.totalorder %v2143_v4, 0  ;;  %s4011_s14 = sld [smem:[#allocation6 + $0x286]] }
  0x93   :  { %v5810_v40 = vsel %vm3206_vm3, 4294967295, %v5809_v40  ;;  %v941_v36 = vsel %vm5811_vm4, %v940_v41, 0.0  ;;  %v949_v38 = vstv %s3141_s15  ;;  %vm3215_vm10 = vcmp.eq.s32.totalorder %v882_v54, 1  ;;  %s4046_s15 = sld [smem:[#allocation6 + $0x306]] }
  0x94   :  { %v5812_v2 = vmov 0  ;;  %vm3219_vm15 = vcmp.eq.s32.totalorder %v886_v46, 1  ;;  %v5814_v14 = vmov 0  ;;  %vm5816_vm11 = vcmp.eq.s32.totalorder %v2143_v4, 1 }
  0x95   :  { %v5813_v2 = vsel %vm3215_vm10, 4294967295, %v5812_v2  ;;  %v5815_v14 = vsel %vm3219_vm15, 4294967295, %v5814_v14  ;;  %v944_v30 = vsel %vm5816_vm11, %v943_v7, %v941_v36  ;;  %v952_v61 = vstv %s3151_s16  ;;  %s4059_s16 = sld [smem:[#allocation6 + $0x386]] }
  0x96   :  { %vm3226_vm7 = vcmp.eq.s32.totalorder %v890_v20, 1  ;;  %v5817_v10 = vmov 0  ;;  %vm3230_vm8 = vcmp.eq.s32.totalorder %v894_v51, 1  ;;  %v5819_v29 = vmov 0 }
  0x97   :  { %v5818_v10 = vsel %vm3226_vm7, 4294967295, %v5817_v10  ;;  %v5820_v29 = vsel %vm3230_vm8, 4294967295, %v5819_v29  ;;  %vm3234_vm0 = vcmp.eq.s32.totalorder %v898_v18, 1  ;;  %v5821_v3 = vmov 0 }
  0x98   :  { %v5822_v3 = vsel %vm3234_vm0, 4294967295, %v5821_v3  ;;  %vm5823_vm4 = vcmp.eq.s32.totalorder %v2143_v4, 2  ;;  %vm3240_vm15 = vcmp.eq.s32.totalorder %v902_v12, 1  ;;  %v5824_v46 = vmov 0 }
  0x99   :  { %v947_v54 = vsel %vm5823_vm4, %v946_v9, %v944_v30  ;;  %v5825_v46 = vsel %vm3240_vm15, 4294967295, %v5824_v46  ;;  %vm3244_vm11 = vcmp.eq.s32.totalorder %v906_v17, 1  ;;  %v5826_v20 = vmov 0 }
  0x9a   :  { %v5827_v20 = vsel %vm3244_vm11, 4294967295, %v5826_v20  ;;  %vm5828_vm8 = vcmp.eq.s32.totalorder %v2143_v4, 3  ;;  %vm5829_vm4 = vcmp.eq.s32.totalorder %v2143_v4, 4  ;;  %v955_v7 = vstv %s3165_s17  ;;  %s4291_s17 = sld [smem:[#allocation6 + $0x7]] }
  0x9b   :  { %v950_v18 = vsel %vm5828_vm8, %v949_v38, %v947_v54  ;;  %vm5832_vm3 = vcmp.eq.s32.totalorder %v2143_v4, 5  ;;  %v958_v36 = vstv %s3200_s18  ;;  %v961_v54 = vstv %s3213_s19  ;;  %s4305_s18 = sld [smem:[#allocation6 + $0x87]] }
  0x9c   :  { %v953_v41 = vsel %vm5829_vm4, %v952_v61, %v950_v18  ;;  %vm5833_vm0 = vcmp.eq.s32.totalorder %v2143_v4, 6  ;;  %vm969_vm12 = vcmp.eq.s32.totalorder %v2467_v55, 3  ;;  %vm972_vm4 = vcmp.eq.s32.totalorder %v2470_v26, 3  ;;  %s4319_s19 = sld [smem:[#allocation6 + $0x107]] }
  0x9d   :  { %v956_v38 = vsel %vm5832_vm3, %v955_v7, %v953_v41  ;;  %vm974_vm7 = vcmp.eq.s32.totalorder %v2500_v49, 3  ;;  %vm975_vm8 = vcmp.eq.s32.totalorder %v2456_v27, 3  ;;  %vm977_vm10 = vcmp.eq.s32.totalorder %v2496_v52, 3 }
  0x9e   :  { %v959_v41 = vsel %vm5833_vm0, %v958_v36, %v956_v38  ;;  %vm5834_vm15 = vcmp.eq.s32.totalorder %v2143_v4, 7  ;;  %vm5835_vm6 = vcmp.eq.s32.totalorder %v2421_v53, 3  ;;  %vm5836_vm3 = vcmp.eq.s32.totalorder %v2452_v48, 3 }
  0x9f   :  { %v3340_v7 = vsel %vm5834_vm15, %v961_v54, %v959_v41  ;;  %v979_v36 = vsel %vm5835_vm6, 1, %v5706_v34  ;;  %v980_v38 = vsel %vm5836_vm3, 1, %v5706_v34  ;;  %vm5837_vm0 = vcmp.eq.s32.totalorder %v2463_v50, 3 }
  0xa0   :  { %v981_v61 = vsel %vm5837_vm0, 1, %v5706_v34  ;;  %vm5838_vm15 = vcmp.eq.s32.totalorder %v2474_v21, 3  ;;  %vm5839_vm11 = vcmp.eq.s32.totalorder %v2438_v56, 3  ;;  %vm5840_vm6 = vcmp.eq.s32.totalorder %v2459_v28, 3 }
  0xa1   :  { %v982_v54 = vsel %vm5838_vm15, 1, %v5706_v34  ;;  %v983_v41 = vsel %vm5839_vm11, 1, %v5706_v34  ;;  %v984_v30 = vsel %vm5840_vm6, 1, %v5706_v34  ;;  %v985_v18 = vsel %vm969_vm12, 1, %v5706_v34 }
  0xa2   :  { %vm5841_vm3 = vcmp.eq.s32.totalorder %v2488_v58, 3  ;;  %vm5842_vm0 = vcmp.eq.s32.totalorder %v2442_v19, 3  ;;  %v988_v12 = vsel %vm972_vm4, 1, %v5706_v34  ;;  %vm5843_vm11 = vcmp.eq.s32.totalorder %v2492_v47, 3 }
  0xa3   :  { %v986_v9 = vsel %vm5841_vm3, 1, %v5706_v34  ;;  %v987_v17 = vsel %vm5842_vm0, 1, %v5706_v34  ;;  %v989_v51 = vsel %vm5843_vm11, 1, %v5706_v34  ;;  %v990_v55 = vsel %vm974_vm7, 1, %v5706_v34 }
  0xa4   :  { %v991_v58 = vsel %vm975_vm8, 1, %v5706_v34  ;;  %vm5844_vm12 = vcmp.eq.s32.totalorder %v2477_v32, 3  ;;  %v993_v26 = vsel %vm977_vm10, 1, %v5706_v34  ;;  %vm5845_vm4 = vcmp.eq.s32.totalorder %v2504_v22, 3  ;;  %v5918_v22 = vld [vmem:[#allocation52_spill] sm:$0xff] }
  0xa5   :  { %v992_v19 = vsel %vm5844_vm12, 1, %v5706_v34  ;;  %v994_v47 = vsel %vm5845_vm4, 1, %v5706_v34  ;;  %v998_v49 = vrot.slane %v979_v36, %v2171_v24  ;;  %v1002_v28 = vrot.slane %v980_v38, %v2171_v24 }
  0xa6   :  { %v1006_v27 = vrot.slane %v981_v61, %v2171_v24  ;;  %v1010_v32 = vrot.slane %v982_v54, %v2171_v24  ;;  %v1014_v56 = vrot.slane %v983_v41, %v2171_v24  ;;  %v1018_v21 = vrot.slane %v984_v30, %v2171_v24 }
  0xa7   :  { %v1022_v52 = vrot.slane %v985_v18, %v2171_v24  ;;  %v1026_v50 = vrot.slane %v986_v9, %v2171_v24  ;;  %v1030_v34 = vrot.slane %v987_v17, %v2171_v24  ;;  %v1034_v36 = vrot.slane %v988_v12, %v2171_v24 }
  0xa8   :  { %v1038_v38 = vrot.slane %v989_v51, %v2171_v24  ;;  %v1042_v61 = vrot.slane %v990_v55, %v2171_v24  ;;  %v1046_v54 = vrot.slane %v991_v58, %v2171_v24  ;;  %v1050_v41 = vrot.slane %v992_v19, %v2171_v24 }
  0xa9   :  { %v1054_v30 = vrot.slane %v993_v26, %v2171_v24  ;;  %v1058_v17 = vrot.slane %v994_v47, %v2171_v24  ;;  %vm3419_vm10 = vcmp.eq.s32.totalorder %v998_v49, 1  ;;  %vm3423_vm7 = vcmp.eq.s32.totalorder %v1002_v28, 1 }
  0xaa   :  { %vm3427_vm8 = vcmp.eq.s32.totalorder %v1006_v27, 1  ;;  %vm3431_vm15 = vcmp.eq.s32.totalorder %v1010_v32, 1  ;;  %vm3435_vm6 = vcmp.eq.s32.totalorder %v1014_v56, 1  ;;  %vm3439_vm3 = vcmp.eq.s32.totalorder %v1018_v21, 1 }
  0xab   :  { %v5856_v47 = vmov 0  ;;  %vm3443_vm0 = vcmp.eq.s32.totalorder %v1022_v52, 1  ;;  %v5858_v28 = vmov 0  ;;  %v1092_v27 = vstv %s3349_s20  ;;  %s4333_s20 = sld [smem:[#allocation6 + $0x187]] }
  0xac   :  { %v5857_v47 = vsel %vm3439_vm3, 4294967295, %v5856_v47  ;;  %v5859_v28 = vsel %vm3443_vm0, 4294967295, %v5858_v28  ;;  %v1095_v58 = vstv %s3363_s21  ;;  %v1098_v49 = vstv %s3377_s24  ;;  %s4343_s21 = sld [smem:[#allocation6 + $0x207]] }
  0xad   :  { %vm3452_vm11 = vcmp.eq.s32.totalorder %v1026_v50, 1  ;;  %v5860_v32 = vmov 0  ;;  %vm3456_vm12 = vcmp.eq.s32.totalorder %v1030_v34, 1  ;;  %v5862_v56 = vmov 0  ;;  %s4357_s24 = sld [smem:[#allocation6 + $0x287]] }
  0xae   :  { %v5861_v32 = vsel %vm3452_vm11, 4294967295, %v5860_v32  ;;  %v5863_v56 = vsel %vm3456_vm12, 4294967295, %v5862_v56  ;;  %vm5864_vm4 = vcmp.eq.s32.totalorder %v2143_v4, 0  ;;  %v1101_v52 = vstv %s3391_s25  ;;  %s4392_s25 = sld [smem:[#allocation6 + $0x307]] }
  0xaf   :  { %v1093_v21 = vsel %vm5864_vm4, %v1092_v27, 0.0  ;;  %vm3465_vm0 = vcmp.eq.s32.totalorder %v1034_v36, 1  ;;  %v5865_v12 = vmov 0  ;;  %vm3469_vm3 = vcmp.eq.s32.totalorder %v1038_v38, 1 }
  0xb0   :  { %v5866_v12 = vsel %vm3465_vm0, 4294967295, %v5865_v12  ;;  %v5867_v50 = vmov 0  ;;  %vm5869_vm11 = vcmp.eq.s32.totalorder %v2143_v4, 1  ;;  %v1104_v18 = vstv %s3401_s26  ;;  %s4405_s26 = sld [smem:[#allocation6 + $0x387]] }
  0xb1   :  { %v5868_v50 = vsel %vm3469_vm3, 4294967295, %v5867_v50  ;;  %v1096_v34 = vsel %vm5869_vm11, %v1095_v58, %v1093_v21  ;;  %vm3476_vm12 = vcmp.eq.s32.totalorder %v1042_v61, 1  ;;  %vm3480_vm4 = vcmp.eq.s32.totalorder %v1046_v54, 1  ;;  %v5926_v58 = vld [vmem:[#allocation55_spill] sm:$0xff]  ;;  %v5930_v21 = vld [vmem:[#allocation56_spill] sm:$0xff] }
  0xb2   :  { %vm3484_vm2 = vcmp.eq.s32.totalorder %v1050_v41, 1  ;;  %vm5876_vm0 = vcmp.eq.s32.totalorder %v2143_v4, 2  ;;  %vm3490_vm3 = vcmp.eq.s32.totalorder %v1054_v30, 1  ;;  %vm3494_vm11 = vcmp.eq.s32.totalorder %v1058_v17, 1 }
  0xb3   :  { %v1099_v38 = vsel %vm5876_vm0, %v1098_v49, %v1096_v34  ;;  %v5881_v54 = vsel %vm3169_vm9, %v3090_v31, %v2925_v44  ;;  %vm5882_vm0 = vcmp.eq.s32.totalorder %v2143_v4, 3  ;;  %v5883_v17 = vsel %vm3173_vm14, %v3090_v31, %v2936_v57  ;;  %v5927_v49 = vld [vmem:[#allocation57_spill] sm:$0xff] }
  0xb4   :  { %v3506_v41 = vsel %vm3419_vm10, %v3340_v7, %v5881_v54  ;;  %v1102_v30 = vsel %vm5882_vm0, %v1101_v52, %v1099_v38  ;;  %v3518_v59 = vsel %vm3423_vm7, %v3340_v7, %v5883_v17  ;;  %v5884_v44 = vsel %vm3177_vm5, %v3090_v31, %v2945_v11 }
  0xb5   :  { %v3528_v9 = vsel %vm3427_vm8, %v3340_v7, %v5884_v44  ;;  %vm5885_vm9 = vcmp.eq.s32.totalorder %v2143_v4, 4  ;;  %v1107_v57 = vstv %s3415_s27  ;;  %v5886_v51 = vsel %vm3181_vm13, %v3090_v31, %v2957_v13 }
  0xb6   :  { %v1105_v45 = vsel %vm5885_vm9, %v1104_v18, %v1102_v30  ;;  %v3541_v5 = vsel %vm3431_vm15, %v3340_v7, %v5886_v51  ;;  %v5887_v11 = vsel %vm3185_vm1, %v3090_v31, %v2966_v62  ;;  %vm5888_vm14 = vnez %v5804_v43 }
  0xb7   :  { %v3551_v55 = vsel %vm3435_vm6, %v3340_v7, %v5887_v11  ;;  %v5889_v13 = vsel %vm5888_vm14, %v3090_v31, %v2975_v39  ;;  %vm5890_vm5 = vnez %v5857_v47  ;;  %vm5891_vm13 = vnez %v5806_v6  ;;  %v5924_v47 = vld [vmem:[#allocation46_spill] sm:$0xff] }
  0xb8   :  { %v3561_v1 = vsel %vm5890_vm5, %v3340_v7, %v5889_v13  ;;  %v5892_v62 = vsel %vm5891_vm13, %v3090_v31, %v2984_v33  ;;  %vm5893_vm1 = vnez %v5859_v28  ;;  %vm5894_vm10 = vnez %v5808_v42  ;;  %v5925_v28 = vld [vmem:[#allocation51_spill] sm:$0xff] }
  0xb9   :  { %v3571_v15 = vsel %vm5893_vm1, %v3340_v7, %v5892_v62  ;;  %v5895_v39 = vsel %vm5894_vm10, %v3090_v31, %v2993_v35  ;;  %vm5896_vm7 = vnez %v5861_v32  ;;  %vm5897_vm8 = vnez %v5810_v40  ;;  %v5928_v32 = vld [vmem:[#allocation47_spill] sm:$0xff] }
  0xba   :  { %v3581_v43 = vsel %vm5896_vm7, %v3340_v7, %v5895_v39  ;;  %v5898_v33 = vsel %vm5897_vm8, %v3090_v31, %v3002_v23  ;;  %vm5899_vm15 = vnez %v5863_v56  ;;  %vm5900_vm6 = vnez %v5813_v2  ;;  %v5929_v56 = vld [vmem:[#allocation53_spill] sm:$0xff]  ;;  %v5935_v39 = vld [vmem:[#allocation14_spill] sm:$0xff] }
  0xbb   :  { %v3591_v6 = vsel %vm5899_vm15, %v3340_v7, %v5898_v33  ;;  %v5901_v35 = vsel %vm5900_vm6, %v3090_v31, %v3011_v0  ;;  %vm5902_vm0 = vnez %v5866_v12  ;;  %vm5903_vm9 = vnez %v5815_v14  ;;  %v5932_v12 = vld [vmem:[#allocation58_spill] sm:$0xff] }
  0xbc   :  { %v3601_v42 = vsel %vm5902_vm0, %v3340_v7, %v5901_v35  ;;  %v5904_v23 = vsel %vm5903_vm9, %v3090_v31, %v3020_v63  ;;  %vm5905_vm14 = vnez %v5868_v50  ;;  %vm5906_vm5 = vnez %v5818_v10 }
  0xbd   :  { %v3611_v40 = vsel %vm5905_vm14, %v3340_v7, %v5904_v23  ;;  %v5907_v0 = vsel %vm5906_vm5, %v3090_v31, %v3029_v37  ;;  %vm5908_vm13 = vnez %v5820_v29  ;;  %vm5910_vm1 = vcmp.eq.s32.totalorder %v2143_v4, 5 }
  0xbe   :  { %v3621_v2 = vsel %vm3476_vm12, %v3340_v7, %v5907_v0  ;;  %v5909_v63 = vsel %vm5908_vm13, %v3090_v31, %v3038_v8  ;;  %v1108_v10 = vsel %vm5910_vm1, %v1107_v57, %v1105_v45  ;;  %v1110_v19 = vstv %s3450_s28 }
  0xbf   :  { %v3631_v14 = vsel %vm3480_vm4, %v3340_v7, %v5909_v63  ;;  %vm5911_vm10 = vnez %v5822_v3  ;;  %vm5913_vm12 = vnez %v5825_v46  ;;  %vm5915_vm4 = vnez %v5827_v20  ;;  %v5920_v20 = vld [vmem:[#allocation45_spill] sm:$0xff] }
  0xc0   :  { %v5912_v24 = vsel %vm5911_vm10, %v3090_v31, %v3050_v60  ;;  %v5914_v8 = vsel %vm5913_vm12, %v3090_v31, %v3059_v16  ;;  %v5916_v60 = vsel %vm5915_vm4, %v3090_v31, %v3068_v25  ;;  %v1113_v26 = vstv %s3463_s29  ;;  %v5917_v16 = vld [vmem:[#allocation49_spill] sm:$0xff]  ;;  %v5921_v25 = vld [vmem:[#allocation48_spill] sm:$0xff]  ;;  %v5922_v31 = vld [vmem:[#allocation50_spill] sm:$0xff] }
  0xc1   :  { %v3644_v37 = vsel %vm3484_vm2, %v3340_v7, %v5912_v24  ;;  %v3654_v29 = vsel %vm3490_vm3, %v3340_v7, %v5914_v8  ;;  %v3664_v3 = vsel %vm3494_vm11, %v3340_v7, %v5916_v60  ;;  %vm1115_vm2 = vcmp.eq.s32.totalorder %v2421_v53, 4  ;;  %v5923_v7 = vld [vmem:[#allocation54_spill] sm:$0xff] }
  0xc2   :  { %vm1116_vm7 = vcmp.eq.s32.totalorder %v2452_v48, 4  ;;  %vm1117_vm8 = vcmp.eq.s32.totalorder %v5917_v16, 4  ;;  %vm1118_vm3 = vcmp.eq.s32.totalorder %v5918_v22, 4  ;;  %vm5919_vm15 = vcmp.eq.s32.totalorder %v2143_v4, 6 }
  0xc3   :  { %v1111_v46 = vsel %vm5919_vm15, %v1110_v19, %v1108_v10  ;;  %vm1119_vm6 = vcmp.eq.s32.totalorder %v5920_v20, 4  ;;  %vm1120_vm0 = vcmp.eq.s32.totalorder %v5921_v25, 4  ;;  %vm1121_vm9 = vcmp.eq.s32.totalorder %v5922_v31, 4 }
  0xc4   :  { %vm1123_vm14 = vcmp.eq.s32.totalorder %v5924_v47, 4  ;;  %vm1124_vm5 = vcmp.eq.s32.totalorder %v5925_v28, 4  ;;  %vm1125_vm13 = vcmp.eq.s32.totalorder %v5926_v58, 4  ;;  %vm1126_vm1 = vcmp.eq.s32.totalorder %v5927_v49, 4 }
  0xc5   :  { %vm1127_vm10 = vcmp.eq.s32.totalorder %v5928_v32, 4  ;;  %vm1128_vm12 = vcmp.eq.s32.totalorder %v5929_v56, 4  ;;  %vm1129_vm4 = vcmp.eq.s32.totalorder %v5930_v21, 4  ;;  %vm5931_vm15 = vcmp.eq.s32.totalorder %v2143_v4, 7 }
  0xc6   :  { %v3686_v52 = vsel %vm5931_vm15, %v1113_v26, %v1111_v46  ;;  %vm1130_vm11 = vcmp.eq.s32.totalorder %v5932_v12, 4  ;;  %v5933_v50 = vmov 0  }
  0xc7   :  { %v1131_v34 = vsel %vm1115_vm2, 1, %v5933_v50  ;;  %v1132_v18 = vsel %vm1116_vm7, 1, %v5933_v50  ;;  %v1133_v27 = vsel %vm1117_vm8, 1, %v5933_v50  ;;  %v1134_v36 = vsel %vm1118_vm3, 1, %v5933_v50 }
  0xc8   :  { %v1135_v38 = vsel %vm1119_vm6, 1, %v5933_v50  ;;  %v1136_v61 = vsel %vm1120_vm0, 1, %v5933_v50  ;;  %v1137_v54 = vsel %vm1121_vm9, 1, %v5933_v50  ;;  %vm5934_vm2 = vcmp.eq.s32.totalorder %v5923_v7, 4 }
  0xc9   :  { %v1138_v30 = vsel %vm5934_vm2, 1, %v5933_v50  ;;  %v1139_v17 = vsel %vm1123_vm14, 1, %v5933_v50  ;;  %v1140_v44 = vsel %vm1124_vm5, 1, %v5933_v50  ;;  %v1141_v45 = vsel %vm1125_vm13, 1, %v5933_v50 }
  0xca   :  { %v1142_v57 = vsel %vm1126_vm1, 1, %v5933_v50  ;;  %v1143_v51 = vsel %vm1127_vm10, 1, %v5933_v50  ;;  %v1144_v11 = vsel %vm1128_vm12, 1, %v5933_v50  ;;  %v1145_v13 = vsel %vm1129_vm4, 1, %v5933_v50 }
  0xcb   :  { %v1146_v62 = vsel %vm1130_vm11, 1, %v5933_v50  ;;  %v1150_v33 = vrot.slane %v1131_v34, %v5935_v39  ;;  %v1154_v35 = vrot.slane %v1132_v18, %v5935_v39  ;;  %v1158_v23 = vrot.slane %v1133_v27, %v5935_v39 }
  0xcc   :  { %v1162_v0 = vrot.slane %v1134_v36, %v5935_v39  ;;  %v1166_v63 = vrot.slane %v1135_v38, %v5935_v39  ;;  %v1170_v10 = vrot.slane %v1136_v61, %v5935_v39  ;;  %v1174_v19 = vrot.slane %v1137_v54, %v5935_v39 }
  0xcd   :  { %v1178_v24 = vrot.slane %v1138_v30, %v5935_v39  ;;  %v1182_v8 = vrot.slane %v1139_v17, %v5935_v39  ;;  %v1186_v60 = vrot.slane %v1140_v44, %v5935_v39  ;;  %v1190_v26 = vrot.slane %v1141_v45, %v5935_v39 }
  0xce   :  { %v1194_v46 = vrot.slane %v1142_v57, %v5935_v39  ;;  %v1198_v34 = vrot.slane %v1143_v51, %v5935_v39  ;;  %v1202_v18 = vrot.slane %v1144_v11, %v5935_v39  ;;  %v1206_v27 = vrot.slane %v1145_v13, %v5935_v39 }
  0xcf   :  { %v1210_v36 = vrot.slane %v1146_v62, %v5935_v39  ;;  %vm3765_vm7 = vcmp.eq.s32.totalorder %v1150_v33, 1  ;;  %vm3769_vm8 = vcmp.eq.s32.totalorder %v1154_v35, 1  ;;  %vm3773_vm3 = vcmp.eq.s32.totalorder %v1158_v23, 1 }
  0xd0   :  { %vm3777_vm6 = vcmp.eq.s32.totalorder %v1162_v0, 1  ;;  %vm3781_vm0 = vcmp.eq.s32.totalorder %v1166_v63, 1  ;;  %vm3785_vm9 = vcmp.eq.s32.totalorder %v1170_v10, 1  ;;  %v5946_v44 = vmov 0 }
  0xd1   :  { %v5947_v44 = vsel %vm3785_vm9, 4294967295, %v5946_v44  ;;  %vm3789_vm11 = vcmp.eq.s32.totalorder %v1174_v19, 1  ;;  %v5948_v45 = vmov 0  ;;  %v1244_v57 = vstv %s3695_s30 }
  0xd2   :  { %v5949_v45 = vsel %vm3789_vm11, 4294967295, %v5948_v45  ;;  %v1247_v51 = vstv %s3709_s4  ;;  %v1250_v11 = vstv %s3723_s5  ;;  %vm3798_vm14 = vcmp.eq.s32.totalorder %v1178_v24, 1 }
  0xd3   :  { %v5950_v13 = vmov 0  ;;  %vm3802_vm5 = vcmp.eq.s32.totalorder %v1182_v8, 1  ;;  %v5952_v62 = vmov 0  ;;  %vm5954_vm13 = vcmp.eq.s32.totalorder %v2143_v4, 0 }
  0xd4   :  { %v5951_v13 = vsel %vm3798_vm14, 4294967295, %v5950_v13  ;;  %v5953_v62 = vsel %vm3802_vm5, 4294967295, %v5952_v62  ;;  %v1245_v33 = vsel %vm5954_vm13, %v1244_v57, 0.0  ;;  %v1253_v35 = vstv %s3737_s6 }
  0xd5   :  { %vm3811_vm1 = vcmp.eq.s32.totalorder %v1186_v60, 1  ;;  %v5955_v23 = vmov 0  ;;  %vm3815_vm10 = vcmp.eq.s32.totalorder %v1190_v26, 1  ;;  %v5957_v0 = vmov 0 }
  0xd6   :  { %v5956_v23 = vsel %vm3811_vm1, 4294967295, %v5955_v23  ;;  %v5958_v0 = vsel %vm3815_vm10, 4294967295, %v5957_v0  ;;  %vm5959_vm12 = vcmp.eq.s32.totalorder %v2143_v4, 1  ;;  %v1256_v10 = vstv %s3747_s7 }
  0xd7   :  { %v1248_v63 = vsel %vm5959_vm12, %v1247_v51, %v1245_v33  ;;  %vm3822_vm4 = vcmp.eq.s32.totalorder %v1194_v46, 1  ;;  %v5960_v19 = vmov 0  ;;  %vm3826_vm15 = vcmp.eq.s32.totalorder %v1198_v34, 1 }
  0xd8   :  { %v5961_v19 = vsel %vm3822_vm4, 4294967295, %v5960_v19  ;;  %v5962_v24 = vmov 0  ;;  %vm3830_vm2 = vcmp.eq.s32.totalorder %v1202_v18, 1  ;;  %v5964_v8 = vmov 0 }
  0xd9   :  { %v5963_v24 = vsel %vm3826_vm15, 4294967295, %v5962_v24  ;;  %v5965_v8 = vsel %vm3830_vm2, 4294967295, %v5964_v8  ;;  %vm5966_vm13 = vcmp.eq.s32.totalorder %v2143_v4, 2  ;;  %vm3836_vm10 = vcmp.eq.s32.totalorder %v1206_v27, 1 }
  0xda   :  { %v1251_v60 = vsel %vm5966_vm13, %v1250_v11, %v1248_v63  ;;  %v5967_v26 = vmov 0  ;;  %vm3840_vm12 = vcmp.eq.s32.totalorder %v1210_v36, 1  ;;  %v5969_v46 = vmov 0 }
  0xdb   :  { %v5968_v26 = vsel %vm3836_vm10, 4294967295, %v5967_v26  ;;  %v5970_v46 = vsel %vm3840_vm12, 4294967295, %v5969_v46  ;;  %vm5971_vm15 = vcmp.eq.s32.totalorder %v2143_v4, 3  ;;  %vm5972_vm13 = vcmp.eq.s32.totalorder %v2143_v4, 4 }
  0xdc   :  { %v1254_v18 = vsel %vm5971_vm15, %v1253_v35, %v1251_v60  ;;  %v1259_v51 = vstv %s3761_s8  ;;  %vm5975_vm5 = vcmp.eq.s32.totalorder %v2143_v4, 5  ;;  %v1262_v33 = vstv %s3796_s0 }
  0xdd   :  { %v1257_v57 = vsel %vm5972_vm13, %v1256_v10, %v1254_v18  ;;  %v1265_v60 = vstv %s3809_s9  ;;  %vm5976_vm2 = vcmp.eq.s32.totalorder %v2143_v4, 6  ;;  %vm1273_vm14 = vcmp.eq.s32.totalorder %v5922_v31, 5 }
  0xde   :  { %v1260_v35 = vsel %vm5975_vm5, %v1259_v51, %v1257_v57  ;;  %vm1276_vm13 = vcmp.eq.s32.totalorder %v5925_v28, 5  ;;  %vm1278_vm4 = vcmp.eq.s32.totalorder %v5927_v49, 5  ;;  %vm1279_vm15 = vcmp.eq.s32.totalorder %v5928_v32, 5 }
  0xdf   :  { %v1263_v57 = vsel %vm5976_vm2, %v1262_v33, %v1260_v35  ;;  %vm1281_vm1 = vcmp.eq.s32.totalorder %v5930_v21, 5  ;;  %vm5977_vm10 = vcmp.eq.s32.totalorder %v2143_v4, 7  ;;  %vm5978_vm11 = vcmp.eq.s32.totalorder %v2421_v53, 5 }
  0xe0   :  { %v3936_v51 = vsel %vm5977_vm10, %v1265_v60, %v1263_v57  ;;  %v1283_v33 = vsel %vm5978_vm11, 1, %v5933_v50  ;;  %vm5979_vm5 = vcmp.eq.s32.totalorder %v2452_v48, 5  ;;  %vm5980_vm2 = vcmp.eq.s32.totalorder %v5917_v16, 5 }
  0xe1   :  { %v1284_v35 = vsel %vm5979_vm5, 1, %v5933_v50  ;;  %v1285_v10 = vsel %vm5980_vm2, 1, %v5933_v50  ;;  %vm5981_vm10 = vcmp.eq.s32.totalorder %v5918_v22, 5  ;;  %vm5982_vm12 = vcmp.eq.s32.totalorder %v5920_v20, 5 }
  0xe2   :  { %v1286_v60 = vsel %vm5981_vm10, 1, %v5933_v50  ;;  %v1287_v57 = vsel %vm5982_vm12, 1, %v5933_v50  ;;  %vm5983_vm11 = vcmp.eq.s32.totalorder %v5921_v25, 5  ;;  %v1289_v18 = vsel %vm1273_vm14, 1, %v5933_v50 }
  0xe3   :  { %v1288_v63 = vsel %vm5983_vm11, 1, %v5933_v50  ;;  %vm5984_vm5 = vcmp.eq.s32.totalorder %v5923_v7, 5  ;;  %vm5985_vm2 = vcmp.eq.s32.totalorder %v5924_v47, 5  ;;  %v1292_v27 = vsel %vm1276_vm13, 1, %v5933_v50 }
  0xe4   :  { %v1290_v11 = vsel %vm5984_vm5, 1, %v5933_v50  ;;  %v1291_v36 = vsel %vm5985_vm2, 1, %v5933_v50  ;;  %vm5986_vm12 = vcmp.eq.s32.totalorder %v5926_v58, 5  ;;  %v1294_v31 = vsel %vm1278_vm4, 1, %v5933_v50 }
  0xe5   :  { %v1293_v34 = vsel %vm5986_vm12, 1, %v5933_v50  ;;  %v1295_v7 = vsel %vm1279_vm15, 1, %v5933_v50  ;;  %vm5987_vm14 = vcmp.eq.s32.totalorder %v5929_v56, 5  ;;  %v1297_v28 = vsel %vm1281_vm1, 1, %v5933_v50 }
  0xe6   :  { %v1296_v47 = vsel %vm5987_vm14, 1, %v5933_v50  ;;  %vm5988_vm13 = vcmp.eq.s32.totalorder %v5932_v12, 5  ;;  %v1302_v49 = vrot.slane %v1283_v33, %v5935_v39  ;;  %v1306_v25 = vrot.slane %v1284_v35, %v5935_v39  ;;  %v6071_v12 = vld [vmem:[#allocation52_spill] sm:$0xff] }
  0xe7   :  { %v1298_v58 = vsel %vm5988_vm13, 1, %v5933_v50  ;;  %v1310_v32 = vrot.slane %v1285_v10, %v5935_v39  ;;  %v1314_v56 = vrot.slane %v1286_v60, %v5935_v39  ;;  %v1318_v20 = vrot.slane %v1287_v57, %v5935_v39 }
  0xe8   :  { %v1322_v22 = vrot.slane %v1288_v63, %v5935_v39  ;;  %v1326_v21 = vrot.slane %v1289_v18, %v5935_v39  ;;  %v1330_v16 = vrot.slane %v1290_v11, %v5935_v39  ;;  %v1334_v50 = vrot.slane %v1291_v36, %v5935_v39 }
  0xe9   :  { %v1338_v33 = vrot.slane %v1292_v27, %v5935_v39  ;;  %v1342_v35 = vrot.slane %v1293_v34, %v5935_v39  ;;  %v1346_v10 = vrot.slane %v1294_v31, %v5935_v39  ;;  %v1350_v60 = vrot.slane %v1295_v7, %v5935_v39 }
  0xea   :  { %v1354_v57 = vrot.slane %v1296_v47, %v5935_v39  ;;  %v1358_v63 = vrot.slane %v1297_v28, %v5935_v39  ;;  %v1362_v36 = vrot.slane %v1298_v58, %v5935_v39  ;;  %vm4015_vm1 = vcmp.eq.s32.totalorder %v1302_v49, 1 }
  0xeb   :  { %vm4019_vm4 = vcmp.eq.s32.totalorder %v1306_v25, 1  ;;  %vm4023_vm15 = vcmp.eq.s32.totalorder %v1310_v32, 1  ;;  %vm4027_vm10 = vcmp.eq.s32.totalorder %v1314_v56, 1  ;;  %vm4031_vm11 = vcmp.eq.s32.totalorder %v1318_v20, 1 }
  0xec   :  { %vm4035_vm5 = vcmp.eq.s32.totalorder %v1322_v22, 1  ;;  %v5999_v28 = vmov 0  ;;  %vm4039_vm2 = vcmp.eq.s32.totalorder %v1326_v21, 1  ;;  %v6001_v25 = vmov 0 }
  0xed   :  { %v6000_v28 = vsel %vm4035_vm5, 4294967295, %v5999_v28  ;;  %v6002_v25 = vsel %vm4039_vm2, 4294967295, %v6001_v25  ;;  %v1396_v58 = vstv %s3945_s10  ;;  %v1399_v49 = vstv %s3959_s11 }
  0xee   :  { %v1402_v32 = vstv %s3973_s2  ;;  %vm4048_vm12 = vcmp.eq.s32.totalorder %v1330_v16, 1  ;;  %v6003_v56 = vmov 0  ;;  %vm4052_vm14 = vcmp.eq.s32.totalorder %v1334_v50, 1 }
  0xef   :  { %v6004_v56 = vsel %vm4048_vm12, 4294967295, %v6003_v56  ;;  %v6005_v20 = vmov 0  ;;  %vm6007_vm13 = vcmp.eq.s32.totalorder %v2143_v4, 0  ;;  %v1405_v21 = vstv %s3987_s12 }
  0xf0   :  { %v6006_v20 = vsel %vm4052_vm14, 4294967295, %v6005_v20  ;;  %v1397_v22 = vsel %vm6007_vm13, %v1396_v58, 0.0  ;;  %vm4061_vm2 = vcmp.eq.s32.totalorder %v1338_v33, 1  ;;  %v6008_v27 = vmov 0 }
  0xf1   :  { %v6009_v27 = vsel %vm4061_vm2, 4294967295, %v6008_v27  ;;  %vm4065_vm5 = vcmp.eq.s32.totalorder %v1342_v35, 1  ;;  %v6010_v16 = vmov 0  ;;  %vm6012_vm12 = vcmp.eq.s32.totalorder %v2143_v4, 1 }
  0xf2   :  { %v6011_v16 = vsel %vm4065_vm5, 4294967295, %v6010_v16  ;;  %v1400_v50 = vsel %vm6012_vm12, %v1399_v49, %v1397_v22  ;;  %v1408_v18 = vstv %s3997_s13  ;;  %vm4072_vm14 = vcmp.eq.s32.totalorder %v1346_v10, 1  ;;  %v6079_v49 = vld [vmem:[#allocation55_spill] sm:$0xff]  ;;  %v6083_v22 = vld [vmem:[#allocation56_spill] sm:$0xff] }
  0xf3   :  { %vm4076_vm13 = vcmp.eq.s32.totalorder %v1350_v60, 1  ;;  %vm4080_vm9 = vcmp.eq.s32.totalorder %v1354_v57, 1  ;;  %vm6019_vm2 = vcmp.eq.s32.totalorder %v2143_v4, 2  ;;  %vm4086_vm5 = vcmp.eq.s32.totalorder %v1358_v63, 1 }
  0xf4   :  { %v1403_v35 = vsel %vm6019_vm2, %v1402_v32, %v1400_v50  ;;  %vm4090_vm12 = vcmp.eq.s32.totalorder %v1362_v36, 1  ;;  %v6024_v60 = vsel %vm3765_vm7, %v3686_v52, %v3506_v41  ;;  %vm6025_vm2 = vcmp.eq.s32.totalorder %v2143_v4, 3  ;;  %v6080_v32 = vld [vmem:[#allocation57_spill] sm:$0xff] }
  0xf5   :  { %v4102_v57 = vsel %vm4015_vm1, %v3936_v51, %v6024_v60  ;;  %v1406_v63 = vsel %vm6025_vm2, %v1405_v21, %v1403_v35  ;;  %v6026_v36 = vsel %vm3769_vm8, %v3686_v52, %v3518_v59  ;;  %v6027_v41 = vsel %vm3773_vm3, %v3686_v52, %v3528_v9 }
  0xf6   :  { %v4114_v38 = vsel %vm4019_vm4, %v3936_v51, %v6026_v36  ;;  %v4124_v11 = vsel %vm4023_vm15, %v3936_v51, %v6027_v41  ;;  %vm6028_vm7 = vcmp.eq.s32.totalorder %v2143_v4, 4  ;;  %v1411_v59 = vstv %s4011_s14 }
  0xf7   :  { %v1409_v61 = vsel %vm6028_vm7, %v1408_v18, %v1406_v63  ;;  %v6029_v34 = vsel %vm3777_vm6, %v3686_v52, %v3541_v5  ;;  %v6030_v9 = vsel %vm3781_vm0, %v3686_v52, %v3551_v55  ;;  %vm6032_vm8 = vnez %v5947_v44 }
  0xf8   :  { %v4137_v54 = vsel %vm4027_vm10, %v3936_v51, %v6029_v34  ;;  %v4147_v31 = vsel %vm4031_vm11, %v3936_v51, %v6030_v9  ;;  %v6033_v5 = vsel %vm6032_vm8, %v3686_v52, %v3561_v1  ;;  %vm6034_vm3 = vnez %v6000_v28  ;;  %v6077_v28 = vld [vmem:[#allocation46_spill] sm:$0xff] }
  0xf9   :  { %6031 = vst [vmem:[#allocation59_spill] sm:$0xff] %v4147_v31  ;;  %v4157_v30 = vsel %vm6034_vm3, %v3936_v51, %v6033_v5  ;;  %vm6035_vm6 = vnez %v5949_v45  ;;  %vm6037_vm0 = vnez %v6002_v25  ;;  %vm6038_vm1 = vnez %v5951_v13  ;;  %v6078_v25 = vld [vmem:[#allocation51_spill] sm:$0xff] }
  0xfa   :  { %v6036_v55 = vsel %vm6035_vm6, %v3686_v52, %v3571_v15  ;;  %v6039_v1 = vsel %vm6038_vm1, %v3686_v52, %v3581_v43  ;;  %vm6040_vm4 = vnez %v6004_v56  ;;  %vm6042_vm15 = vnez %v5953_v62  ;;  %v6081_v56 = vld [vmem:[#allocation47_spill] sm:$0xff] }
  0xfb   :  { %v4167_v17 = vsel %vm6037_vm0, %v3936_v51, %v6036_v55  ;;  %v4177_v44 = vsel %vm6040_vm4, %v3936_v51, %v6039_v1  ;;  %v6043_v15 = vsel %vm6042_vm15, %v3686_v52, %v3591_v6  ;;  %vm6044_vm10 = vnez %v6006_v20  ;;  %v6082_v20 = vld [vmem:[#allocation53_spill] sm:$0xff]  ;;  %v6088_v1 = vld [vmem:[#allocation14_spill] sm:$0xff] }
  0xfc   :  { %6041 = vst [vmem:[#allocation60_spill] sm:$0xff] %v4177_v44  ;;  %v4187_v45 = vsel %vm6044_vm10, %v3936_v51, %v6043_v15  ;;  %vm6046_vm11 = vnez %v5956_v23  ;;  %vm6048_vm2 = vnez %v6009_v27  ;;  %vm6050_vm7 = vnez %v5958_v0  ;;  %v6085_v27 = vld [vmem:[#allocation58_spill] sm:$0xff] }
  0xfd   :  { %6045 = vst [vmem:[#allocation61_spill] sm:$0xff] %v4187_v45  ;;  %v6047_v43 = vsel %vm6046_vm11, %v3686_v52, %v3601_v42  ;;  %v6051_v6 = vsel %vm6050_vm7, %v3686_v52, %v3611_v40  ;;  %vm6052_vm8 = vnez %v6011_v16  ;;  %vm6054_vm3 = vnez %v5961_v19  ;;  %v6243_v44 = vld [vmem:[#allocation34_spill] sm:$0xff] }
  0xfe   :  { %v4197_v13 = vsel %vm6048_vm2, %v3936_v51, %v6047_v43  ;;  %v4207_v62 = vsel %vm6052_vm8, %v3936_v51, %v6051_v6  ;;  %v6055_v42 = vsel %vm6054_vm3, %v3686_v52, %v3621_v2  ;;  %vm6057_vm6 = vnez %v5963_v24 }
  0xff   :  { %6049 = vst [vmem:[#allocation62_spill] sm:$0xff] %v4197_v13  ;;  %6053 = vst [vmem:[#allocation63_spill] sm:$0xff] %v4207_v62  ;;  %v4217_v23 = vsel %vm4072_vm14, %v3936_v51, %v6055_v42  ;;  %v6058_v40 = vsel %vm6057_vm6, %v3686_v52, %v3631_v14  ;;  %vm6060_vm0 = vcmp.eq.s32.totalorder %v2143_v4, 5  ;;  %v1414_v7 = vstv %s4046_s15 }
 0x100   :  { %6056 = vst [vmem:[#allocation64_spill] sm:$0xff] %v4217_v23  ;;  %v4227_v0 = vsel %vm4076_vm13, %v3936_v51, %v6058_v40  ;;  %v1412_v19 = vsel %vm6060_vm0, %v1411_v59, %v1409_v61  ;;  %vm6061_vm1 = vnez %v5965_v8  ;;  %vm6064_vm14 = vnez %v5968_v26 }
 0x101   :  { %6059 = vst [vmem:[#allocation65_spill] sm:$0xff] %v4227_v0  ;;  %v6062_v2 = vsel %vm6061_vm1, %v3686_v52, %v3644_v37  ;;  %v6065_v14 = vsel %vm6064_vm14, %v3686_v52, %v3654_v29  ;;  %vm6067_vm13 = vnez %v5970_v46  ;;  %v1417_v47 = vstv %s4059_s16  ;;  %v6070_v29 = vld [vmem:[#allocation49_spill] sm:$0xff] }
 0x102   :  { %v4240_v39 = vsel %vm4080_vm9, %v3936_v51, %v6062_v2  ;;  %v4250_v24 = vsel %vm4086_vm5, %v3936_v51, %v6065_v14  ;;  %v6068_v37 = vsel %vm6067_vm13, %v3686_v52, %v3664_v3  ;;  %vm1419_vm9 = vcmp.eq.s32.totalorder %v2421_v53, 6  ;;  %v6073_v46 = vld [vmem:[#allocation45_spill] sm:$0xff]  ;;  %v6074_v3 = vld [vmem:[#allocation48_spill] sm:$0xff]  ;;  %v6075_v52 = vld [vmem:[#allocation50_spill] sm:$0xff] }
 0x103   :  { %6063 = vst [vmem:[#allocation66_spill] sm:$0xff] %v4240_v39  ;;  %6066 = vst [vmem:[#allocation67_spill] sm:$0xff] %v4250_v24  ;;  %v4260_v8 = vsel %vm4090_vm12, %v3936_v51, %v6068_v37  ;;  %vm1420_vm4 = vcmp.eq.s32.totalorder %v2452_v48, 6  ;;  %vm1421_vm15 = vcmp.eq.s32.totalorder %v6070_v29, 6  ;;  %vm1422_vm5 = vcmp.eq.s32.totalorder %v6071_v12, 6  ;;  %v6076_v51 = vld [vmem:[#allocation54_spill] sm:$0xff] }
 0x104   :  { %6069 = vst [vmem:[#allocation68_spill] sm:$0xff] %v4260_v8  ;;  %vm6072_vm10 = vcmp.eq.s32.totalorder %v2143_v4, 6  ;;  %vm1423_vm11 = vcmp.eq.s32.totalorder %v6073_v46, 6  ;;  %vm1424_vm2 = vcmp.eq.s32.totalorder %v6074_v3, 6  ;;  %vm1425_vm7 = vcmp.eq.s32.totalorder %v6075_v52, 6 }
 0x105   :  { %v1415_v26 = vsel %vm6072_vm10, %v1414_v7, %v1412_v19  ;;  %vm1427_vm8 = vcmp.eq.s32.totalorder %v6077_v28, 6  ;;  %vm1428_vm3 = vcmp.eq.s32.totalorder %v6078_v25, 6  ;;  %vm1429_vm6 = vcmp.eq.s32.totalorder %v6079_v49, 6 }
 0x106   :  { %vm1430_vm0 = vcmp.eq.s32.totalorder %v6080_v32, 6  ;;  %vm1431_vm1 = vcmp.eq.s32.totalorder %v6081_v56, 6  ;;  %vm1432_vm14 = vcmp.eq.s32.totalorder %v6082_v20, 6  ;;  %vm1433_vm13 = vcmp.eq.s32.totalorder %v6083_v22, 6 }
 0x107   :  { %vm6084_vm10 = vcmp.eq.s32.totalorder %v2143_v4, 7  ;;  %vm1434_vm12 = vcmp.eq.s32.totalorder %v6085_v27, 6  ;;  %v6086_v16 = vmov 0   ;;  %v6149_v31 = vmov 0 }
 0x108   :  { %v4282_v21 = vsel %vm6084_vm10, %v1417_v47, %v1415_v26  ;;  %v1435_v50 = vsel %vm1419_vm9, 1, %v6086_v16  ;;  %v1436_v18 = vsel %vm1420_vm4, 1, %v6086_v16  ;;  %v1437_v58 = vsel %vm1421_vm15, 1, %v6086_v16 }
 0x109   :  { %v1438_v33 = vsel %vm1422_vm5, 1, %v6086_v16  ;;  %v1439_v35 = vsel %vm1423_vm11, 1, %v6086_v16  ;;  %v1440_v10 = vsel %vm1424_vm2, 1, %v6086_v16  ;;  %v1441_v60 = vsel %vm1425_vm7, 1, %v6086_v16 }
 0x10a   :  { %vm6087_vm9 = vcmp.eq.s32.totalorder %v6076_v51, 6  ;;  %v1443_v36 = vsel %vm1427_vm8, 1, %v6086_v16  ;;  %v1444_v41 = vsel %vm1428_vm3, 1, %v6086_v16  ;;  %v1445_v61 = vsel %vm1429_vm6, 1, %v6086_v16 }
 0x10b   :  { %v1442_v63 = vsel %vm6087_vm9, 1, %v6086_v16  ;;  %v1446_v59 = vsel %vm1430_vm0, 1, %v6086_v16  ;;  %v1447_v34 = vsel %vm1431_vm1, 1, %v6086_v16  ;;  %v1448_v9 = vsel %vm1432_vm14, 1, %v6086_v16 }
 0x10c   :  { %v1449_v5 = vsel %vm1433_vm13, 1, %v6086_v16  ;;  %v1450_v55 = vsel %vm1434_vm12, 1, %v6086_v16  ;;  %v1454_v15 = vrot.slane %v1435_v50, %v6088_v1  ;;  %v1458_v43 = vrot.slane %v1436_v18, %v6088_v1 }
 0x10d   :  { %v1462_v6 = vrot.slane %v1437_v58, %v6088_v1  ;;  %v1466_v42 = vrot.slane %v1438_v33, %v6088_v1  ;;  %v1470_v40 = vrot.slane %v1439_v35, %v6088_v1  ;;  %v1474_v19 = vrot.slane %v1440_v10, %v6088_v1 }
 0x10e   :  { %v1478_v7 = vrot.slane %v1441_v60, %v6088_v1  ;;  %v1482_v2 = vrot.slane %v1442_v63, %v6088_v1  ;;  %v1486_v14 = vrot.slane %v1443_v36, %v6088_v1  ;;  %v1490_v37 = vrot.slane %v1444_v41, %v6088_v1 }
 0x10f   :  { %v1494_v47 = vrot.slane %v1445_v61, %v6088_v1  ;;  %v1498_v26 = vrot.slane %v1446_v59, %v6088_v1  ;;  %v1502_v50 = vrot.slane %v1447_v34, %v6088_v1  ;;  %v1506_v18 = vrot.slane %v1448_v9, %v6088_v1 }
 0x110   :  { %v1510_v58 = vrot.slane %v1449_v5, %v6088_v1  ;;  %v1514_v33 = vrot.slane %v1450_v55, %v6088_v1  ;;  %vm4361_vm4 = vcmp.eq.s32.totalorder %v1454_v15, 1  ;;  %v6089_v35 = vmov 0 }
 0x111   :  { %v6090_v35 = vsel %vm4361_vm4, 4294967295, %v6089_v35  ;;  %vm4365_vm15 = vcmp.eq.s32.totalorder %v1458_v43, 1  ;;  %v6091_v10 = vmov 0  ;;  %vm4369_vm5 = vcmp.eq.s32.totalorder %v1462_v6, 1 }
 0x112   :  { %v6092_v10 = vsel %vm4365_vm15, 4294967295, %v6091_v10  ;;  %v6093_v60 = vmov 0  ;;  %vm4373_vm11 = vcmp.eq.s32.totalorder %v1466_v42, 1  ;;  %v6095_v63 = vmov 0 }
 0x113   :  { %v6094_v60 = vsel %vm4369_vm5, 4294967295, %v6093_v60  ;;  %v6096_v63 = vsel %vm4373_vm11, 4294967295, %v6095_v63  ;;  %vm4377_vm2 = vcmp.eq.s32.totalorder %v1470_v40, 1  ;;  %v6097_v36 = vmov 0 }
 0x114   :  { %v6098_v36 = vsel %vm4377_vm2, 4294967295, %v6097_v36  ;;  %vm4381_vm7 = vcmp.eq.s32.totalorder %v1474_v19, 1  ;;  %v6099_v41 = vmov 0  ;;  %vm4385_vm12 = vcmp.eq.s32.totalorder %v1478_v7, 1 }
 0x115   :  { %v6100_v41 = vsel %vm4381_vm7, 4294967295, %v6099_v41  ;;  %v6101_v61 = vmov 0  ;;  %v1548_v59 = vstv %s4291_s17  ;;  %v1551_v34 = vstv %s4305_s18 }
 0x116   :  { %v6102_v61 = vsel %vm4385_vm12, 4294967295, %v6101_v61  ;;  %v1554_v9 = vstv %s4319_s19  ;;  %vm4394_vm8 = vcmp.eq.s32.totalorder %v1482_v2, 1  ;;  %v6103_v5 = vmov 0 }
 0x117   :  { %v6104_v5 = vsel %vm4394_vm8, 4294967295, %v6103_v5  ;;  %vm4398_vm3 = vcmp.eq.s32.totalorder %v1486_v14, 1  ;;  %v6106_v55 = vmov 0  ;;  %vm6109_vm6 = vcmp.eq.s32.totalorder %v2143_v4, 0 }
 0x118   :  { %6105 = vst [vmem:[#allocation49_spill] sm:$0xff] %v6104_v5  ;;  %v6107_v55 = vsel %vm4398_vm3, 4294967295, %v6106_v55  ;;  %v1549_v15 = vsel %vm6109_vm6, %v1548_v59, 0.0  ;;  %v1557_v43 = vstv %s4333_s20  ;;  %vm4407_vm0 = vcmp.eq.s32.totalorder %v1490_v37, 1 }
 0x119   :  { %6108 = vst [vmem:[#allocation52_spill] sm:$0xff] %v6107_v55  ;;  %v6110_v6 = vmov 0  ;;  %vm4411_vm1 = vcmp.eq.s32.totalorder %v1494_v47, 1  ;;  %v6113_v42 = vmov 0  ;;  %vm6116_vm14 = vcmp.eq.s32.totalorder %v2143_v4, 1  ;;  %v6156_v55 = vld [vmem:[#allocation31_spill] sm:$0xff] }
 0x11a   :  { %v6111_v6 = vsel %vm4407_vm0, 4294967295, %v6110_v6  ;;  %v6114_v42 = vsel %vm4411_vm1, 4294967295, %v6113_v42  ;;  %v1552_v40 = vsel %vm6116_vm14, %v1551_v34, %v1549_v15  ;;  %v1560_v19 = vstv %s4343_s21  ;;  %v6135_v15 = vld [vmem:[#allocation12_spill] sm:$0xff] }
 0x11b   :  { %6112 = vst [vmem:[#allocation45_spill] sm:$0xff] %v6111_v6  ;;  %6115 = vst [vmem:[#allocation48_spill] sm:$0xff] %v6114_v42  ;;  %vm4418_vm13 = vcmp.eq.s32.totalorder %v1498_v26, 1  ;;  %v6117_v7 = vmov 0  ;;  %vm4422_vm10 = vcmp.eq.s32.totalorder %v1502_v50, 1  ;;  %v6120_v2 = vmov 0 }
 0x11c   :  { %v6118_v7 = vsel %vm4418_vm13, 4294967295, %v6117_v7  ;;  %v6121_v2 = vsel %vm4422_vm10, 4294967295, %v6120_v2  ;;  %vm4426_vm9 = vcmp.eq.s32.totalorder %v1506_v18, 1  ;;  %v6123_v14 = vmov 0  ;;  %v6147_v50 = vld [vmem:[#allocation30_spill] sm:$0xff]  ;;  %v6167_v42 = vld [vmem:[#allocation32_spill] sm:$0xff] }
 0x11d   :  { %6119 = vst [vmem:[#allocation50_spill] sm:$0xff] %v6118_v7  ;;  %6122 = vst [vmem:[#allocation54_spill] sm:$0xff] %v6121_v2  ;;  %v6124_v14 = vsel %vm4426_vm9, 4294967295, %v6123_v14  ;;  %vm6126_vm6 = vcmp.eq.s32.totalorder %v2143_v4, 2  ;;  %vm4432_vm1 = vcmp.eq.s32.totalorder %v1510_v58, 1  ;;  %v6127_v47 = vmov 0 }
 0x11e   :  { %6125 = vst [vmem:[#allocation46_spill] sm:$0xff] %v6124_v14  ;;  %v1555_v37 = vsel %vm6126_vm6, %v1554_v9, %v1552_v40  ;;  %v6128_v47 = vsel %vm4432_vm1, 4294967295, %v6127_v47  ;;  %vm4436_vm14 = vcmp.eq.s32.totalorder %v1514_v33, 1  ;;  %v6130_v26 = vmov 0  ;;  %v4460_v9 = vld [vmem:[%s5419_s1 + $0x10] sm:$0xff] }
 0x11f   :  { %6129 = vst [vmem:[#allocation51_spill] sm:$0xff] %v6128_v47  ;;  %v6131_v26 = vsel %vm4436_vm14, 4294967295, %v6130_v26  ;;  %vm6133_vm10 = vcmp.eq.s32.totalorder %v2143_v4, 3  ;;  %vm6134_vm6 = vcmp.eq.s32.totalorder %v2143_v4, 4  ;;  %v1563_v34 = vstv %s4357_s24 }
 0x120   :  { %6132 = vst [vmem:[#allocation55_spill] sm:$0xff] %v6131_v26  ;;  %v1558_v18 = vsel %vm6133_vm10, %v1557_v43, %v1555_v37  ;;  %v6136_v43 = vrot.slane %v6135_v15, %v6088_v1  ;;  %v6139_v37 = vld [vmem:[#allocation29_spill] sm:$0xff]  ;;  %v6158_v45 = vmov 0  ;;  %vm6161_vm0 = vcmp.eq.s32.totalorder %v2143_v4, 5 }
 0x121   :  { %v1561_v59 = vsel %vm6134_vm6, %v1560_v19, %v1558_v18  ;;  %v6140_v33 = vrot.slane %v6139_v37, %v6088_v1  ;;  %v6148_v18 = vrot.slane %v6147_v50, %v6088_v1  ;;  %v1566_v50 = vstv %s4392_s25  ;;  %v6344_v19 = vld [vmem:[#allocation28_spill] sm:$0xff] }
 0x122   :  { %vm4466_vm10 = vcmp.eq.s32.totalorder %v6136_v43, %v4460_v9  ;;  %v6143_v43 = vld [vmem:[#allocation16_spill] sm:$0xff]  ;;  %v6164_v62 = vmov 0  ;;  %v6169_v23 = vmov 0  ;;  %v6178_v47 = vmov 0 }
 0x123   :  { %vm4473_vm5 = vcmp.eq.s32.totalorder %v6140_v33, 1  ;;  %v6144_v37 = vrot.slane %v6143_v43, %v6088_v1  ;;  %vm4504_vm2 = vcmp.eq.s32.totalorder %v6148_v18, 1  ;;  %v6154_v33 = vmov 0 }
 0x124   :  { %v6150_v31 = vsel %vm4504_vm2, 4294967295, %v6149_v31  ;;  %v6157_v43 = vrot.slane %v6156_v55, %v6088_v1  ;;  %v6162_v55 = vld [vmem:[#allocation23_spill] sm:$0xff]  ;;  %v6168_v18 = vrot.slane %v6167_v42, %v6088_v1  ;;  %v1569_v42 = vstv %s4405_s26 }
 0x125   :  { %vm4497_vm6 = vcmp.eq.s32.totalorder %v6144_v37, %v4460_v9  ;;  %v6152_v37 = vld [vmem:[#allocation19_spill] sm:$0xff]  ;;  %v6186_v8 = vmov 0  ;;  %vm6188_vm11 = vcmp.eq.s32.totalorder %v2143_v4, 6  ;;  %v6191_v24 = vmov 0 }
 0x126   :  { %v6153_v15 = vrot.slane %v6152_v37, %v6088_v1  ;;  %vm4535_vm3 = vcmp.eq.s32.totalorder %v6157_v43, 1  ;;  %v1564_v37 = vsel %vm6161_vm0, %v1563_v34, %v1561_v59  ;;  %v6163_v43 = vrot.slane %v6162_v55, %v6088_v1  ;;  %v6176_v59 = vld [vmem:[#allocation33_spill] sm:$0xff] }
 0x127   :  { %v6159_v45 = vsel %vm4535_vm3, 4294967295, %v6158_v45  ;;  %vm4561_vm13 = vcmp.eq.s32.totalorder %v6168_v18, 1  ;;  %v6172_v18 = vld [vmem:[#allocation15_spill] sm:$0xff]  ;;  %v6177_v39 = vrot.slane %v6176_v59, %v6088_v1  ;;  %v6182_v59 = vmov 0  ;;  %v6184_v55 = vld [vmem:[#allocation37_spill] sm:$0xff] }
 0x128   :  { %vm4528_vm8 = vcmp.eq.s32.totalorder %v6153_v15, %v4460_v9  ;;  %vm4554_vm7 = vcmp.eq.s32.totalorder %v6163_v43, %v4460_v9  ;;  %v6170_v23 = vsel %vm4561_vm13, 4294967295, %v6169_v23  ;;  %v6173_v43 = vrot.slane %v6172_v18, %v6088_v1  ;;  %v4600_v18 = vld [vmem:[%s5419_s1 + $0x18] sm:$0xff]  ;;  %s2095_s1 = smov [#allocation7]  }
 0x129   :  { %v6155_v33 = vsel %vm4528_vm8, 4294967295, %v6154_v33  ;;  %v6165_v62 = vsel %vm4554_vm7, 4294967295, %v6164_v62  ;;  %6171 = vst [vmem:[#allocation47_spill] sm:$0xff] %v6170_v23  ;;  %v6174_v15 = vmov 0  ;;  %vm4589_vm9 = vcmp.eq.s32.totalorder %v6177_v39, 1  ;;  %s1936_s4 = sshll.u32 %s2095_s1, 4  ;;  %s1937_s4 = int_to_ptr.vmem [resolvable:$true] %s1936_s4 }
 0x12a   :  { %6166 = vst [vmem:[#allocation57_spill] sm:$0xff] %v6165_v62  ;;  %vm4582_vm0 = vcmp.eq.s32.totalorder %v6173_v43, %v4460_v9  ;;  %v6179_v47 = vsel %vm4589_vm9, 4294967295, %v6178_v47  ;;  %v6180_v43 = vld [vmem:[#allocation13_spill] sm:$0xff]  ;;  %v6185_v34 = vrot.slane %v6184_v55, %v6088_v1  ;;  %v1567_v26 = vsel %vm6188_vm11, %v1566_v50, %v1564_v37  ;;  %s2061_s5 = scalar_lea.vmem %s1937_s4, 256  ;;  %p2066_p12 = scmp.lt.s32.totalorder %s1937_s4, %s1937_s4 }
 0x12b   :  { %v6175_v15 = vsel %vm4582_vm0, 4294967295, %v6174_v15  ;;  %v6181_v39 = vrot.slane %v6180_v43, %v6088_v1  ;;  %v6189_v43 = vld [vmem:[#allocation21_spill] sm:$0xff]  ;;  %v6195_v14 = vmov 0  ;;  %v6207_v0 = vmov 0  ;;  %p2062_p11 = scmp.ne.s32.totalorder %s1937_s4, %s2061_s5  ;;  %p2067_p13 = scmp.lt.s32.totalorder %s2061_s5, %s2061_s5 }
 0x12c   :  { %vm4613_vm14 = vcmp.eq.s32.totalorder %v6185_v34, 1  ;;  %v6193_v34 = vld [vmem:[#allocation38_spill] sm:$0xff]  ;;  %v6197_v50 = vld [vmem:[#allocation25_spill] sm:$0xff]  ;;  %v6211_v2 = vmov 0  ;;  %vm6214_vm4 = vcmp.eq.s32.totalorder %v2143_v4, 7  ;;  %vm6215_vm12 = vcmp.eq.s32.totalorder %v2421_v53, 7 }
 0x12d   :  { %vm4606_vm15 = vcmp.eq.s32.totalorder %v6181_v39, %v4600_v18  ;;  %v6187_v8 = vsel %vm4613_vm14, 4294967295, %v6186_v8  ;;  %v6190_v39 = vrot.slane %v6189_v43, %v6088_v1  ;;  %v6194_v55 = vrot.slane %v6193_v34, %v6088_v1  ;;  %v6221_v4 = vld [vmem:[#allocation41_spill] sm:$0xff]  ;;  %p2068_p0 = por %p2067_p13, %p2066_p12 }
 0x12e   :  { %v6183_v59 = vsel %vm4606_vm15, 4294967295, %v6182_v59  ;;  %v6198_v37 = vrot.slane %v6197_v50, %v6088_v1  ;;  %v6199_v43 = vmov 0  ;;  %v6205_v50 = vld [vmem:[#allocation27_spill] sm:$0xff]  ;;  %v4677_v7 = vsel %vm6214_vm4, %v1569_v42, %v1567_v26 }
 0x12f   :  { %vm4626_vm15 = vcmp.eq.s32.totalorder %v6190_v39, %v4600_v18  ;;  %vm4633_vm14 = vcmp.eq.s32.totalorder %v6194_v55, 1  ;;  %v6201_v39 = vld [vmem:[#allocation39_spill] sm:$0xff]  ;;  %v6203_v55 = vmov 0  ;;  %vm6216_vm1 = vcmp.eq.s32.totalorder %v2452_v48, 7  ;;  %p2069_p1 = pnand %p2068_p0, %p2062_p11 }
 0x130   :  { %v6192_v24 = vsel %vm4626_vm15, 4294967295, %v6191_v24  ;;  %v6196_v14 = vsel %vm4633_vm14, 4294967295, %v6195_v14  ;;  %vm4645_vm15 = vcmp.eq.s32.totalorder %v6198_v37, %v4600_v18  ;;  %v6202_v34 = vrot.slane %v6201_v39, %v6088_v1  ;;  %v6209_v39 = vld [vmem:[#allocation40_spill] sm:$0xff] }
 0x131   :  { %v6200_v43 = vsel %vm4645_vm15, 4294967295, %v6199_v43  ;;  %v6206_v37 = vrot.slane %v6205_v50, %v6088_v1  ;;  %v1587_v50 = vsel %vm6215_vm12, 1, %v6086_v16  ;;  %v6219_v13 = vmov 0 }
 0x132   :  { %vm4652_vm14 = vcmp.eq.s32.totalorder %v6202_v34, 1  ;;  %v6210_v34 = vrot.slane %v6209_v39, %v6088_v1  ;;  %v6217_v39 = vld [vmem:[#allocation18_spill] sm:$0xff]  ;;  %v6222_v26 = vrot.slane %v6221_v4, %v6088_v1  ;;  %v6223_v42 = vmov 0 }
 0x133   :  { %v6204_v55 = vsel %vm4652_vm14, 4294967295, %v6203_v55  ;;  %vm4664_vm15 = vcmp.eq.s32.totalorder %v6206_v37, %v4600_v18  ;;  %v1588_v37 = vsel %vm6216_vm1, 1, %v6086_v16  ;;  %vm6225_vm12 = vcmp.eq.s32.totalorder %v6070_v29, 7 }
 0x134   :  { %v6208_v0 = vsel %vm4664_vm15, 4294967295, %v6207_v0  ;;  %vm4671_vm14 = vcmp.eq.s32.totalorder %v6210_v34, 1  ;;  %v6218_v34 = vrot.slane %v6217_v39, %v6088_v1  ;;  %vm4697_vm4 = vcmp.eq.s32.totalorder %v6222_v26, 1 }
 0x135   :  { %v6212_v2 = vsel %vm4671_vm14, 4294967295, %v6211_v2  ;;  %v6224_v42 = vsel %vm4697_vm4, 4294967295, %v6223_v42  ;;  %v1589_v53 = vsel %vm6225_vm12, 1, %v6086_v16  ;;  %vm6226_vm1 = vcmp.eq.s32.totalorder %v6071_v12, 7 }
 0x136   :  { %6213 = vst [vmem:[#allocation53_spill] sm:$0xff] %v6212_v2  ;;  %vm4690_vm15 = vcmp.eq.s32.totalorder %v6218_v34, %v4600_v18  ;;  %v1590_v48 = vsel %vm6226_vm1, 1, %v6086_v16  ;;  %vm6227_vm11 = vcmp.eq.s32.totalorder %v6073_v46, 7  ;;  %vm6229_vm4 = vcmp.eq.s32.totalorder %v6075_v52, 7 }
 0x137   :  { %v6220_v13 = vsel %vm4690_vm15, 4294967295, %v6219_v13  ;;  %v1591_v39 = vsel %vm6227_vm11, 1, %v6086_v16  ;;  %vm6228_vm15 = vcmp.eq.s32.totalorder %v6074_v3, 7  ;;  %v1593_v4 = vsel %vm6229_vm4, 1, %v6086_v16 }
 0x138   :  { %v1592_v34 = vsel %vm6228_vm15, 1, %v6086_v16  ;;  %vm6230_vm12 = vcmp.eq.s32.totalorder %v6076_v51, 7  ;;  %vm6231_vm1 = vcmp.eq.s32.totalorder %v6077_v28, 7  ;;  %vm6232_vm11 = vcmp.eq.s32.totalorder %v6078_v25, 7 }
 0x139   :  { %v1594_v29 = vsel %vm6230_vm12, 1, %v6086_v16  ;;  %v1595_v12 = vsel %vm6231_vm1, 1, %v6086_v16  ;;  %v1596_v46 = vsel %vm6232_vm11, 1, %v6086_v16  ;;  %vm6233_vm4 = vcmp.eq.s32.totalorder %v6079_v49, 7 }
 0x13a   :  { %v1597_v3 = vsel %vm6233_vm4, 1, %v6086_v16  ;;  %vm6234_vm12 = vcmp.eq.s32.totalorder %v6080_v32, 7  ;;  %vm6235_vm1 = vcmp.eq.s32.totalorder %v6081_v56, 7  ;;  %vm6236_vm11 = vcmp.eq.s32.totalorder %v6082_v20, 7  ;;  %v6239_v20 = vld [vmem:[#allocation17_spill] sm:$0xff] }
 0x13b   :  { %v1598_v52 = vsel %vm6234_vm12, 1, %v6086_v16  ;;  %v1599_v51 = vsel %vm6235_vm1, 1, %v6086_v16  ;;  %v1600_v28 = vsel %vm6236_vm11, 1, %v6086_v16  ;;  %vm6237_vm4 = vcmp.eq.s32.totalorder %v6083_v22, 7 }
 0x13c   :  { %v1601_v25 = vsel %vm6237_vm4, 1, %v6086_v16  ;;  %vm6238_vm12 = vcmp.eq.s32.totalorder %v6085_v27, 7  ;;  %v1606_v32 = vrot.slane %v1587_v50, %v6088_v1  ;;  %v1610_v56 = vrot.slane %v1588_v37, %v6088_v1 }
 0x13d   :  { %v1602_v49 = vsel %vm6238_vm12, 1, %v6086_v16  ;;  %v6240_v26 = vrot.slane %v6239_v20, %v6088_v1  ;;  %v6241_v6 = vmov 0  ;;  %v6244_v22 = vrot.slane %v6243_v44, %v6088_v1 }
 0x13e   :  { %v6245_v5 = vmov 0  ;;  %v1614_v27 = vrot.slane %v1589_v53, %v6088_v1  ;;  %v1618_v16 = vrot.slane %v1590_v48, %v6088_v1  ;;  %v1622_v50 = vrot.slane %v1591_v39, %v6088_v1  ;;  %v6247_v53 = vld [vmem:[#allocation20_spill] sm:$0xff] }
 0x13f   :  { %vm4758_vm1 = vcmp.eq.s32.totalorder %v6240_v26, %v4460_v9  ;;  %vm4765_vm11 = vcmp.eq.s32.totalorder %v6244_v22, 1  ;;  %v1626_v37 = vrot.slane %v1592_v34, %v6088_v1  ;;  %v1630_v44 = vrot.slane %v1593_v4, %v6088_v1  ;;  %v6251_v34 = vld [vmem:[#allocation35_spill] sm:$0xff] }
 0x140   :  { %v6242_v6 = vsel %vm4758_vm1, 4294967295, %v6241_v6  ;;  %v6246_v5 = vsel %vm4765_vm11, 4294967295, %v6245_v5  ;;  %v1634_v20 = vrot.slane %v1594_v29, %v6088_v1  ;;  %v1638_v26 = vrot.slane %v1595_v12, %v6088_v1 }
 0x141   :  { %v1642_v22 = vrot.slane %v1596_v46, %v6088_v1  ;;  %v6248_v48 = vrot.slane %v6247_v53, %v6088_v1  ;;  %v6249_v39 = vmov 0  ;;  %v6252_v23 = vrot.slane %v6251_v34, %v6088_v1 }
 0x142   :  { %v6253_v62 = vmov 0  ;;  %v1646_v4 = vrot.slane %v1597_v3, %v6088_v1  ;;  %v1650_v29 = vrot.slane %v1598_v52, %v6088_v1  ;;  %v1654_v12 = vrot.slane %v1599_v51, %v6088_v1 }
 0x143   :  { %vm4789_vm4 = vcmp.eq.s32.totalorder %v6248_v48, %v4460_v9  ;;  %vm4796_vm12 = vcmp.eq.s32.totalorder %v6252_v23, 1  ;;  %v1658_v46 = vrot.slane %v1600_v28, %v6088_v1  ;;  %v1662_v23 = vrot.slane %v1601_v25, %v6088_v1  ;;  %v6313_v48 = vld [vmem:[#allocation42_spill] sm:$0xff]  ;;  %v6334_v28 = vld [vmem:[#allocation43_spill] sm:$0xff] }
 0x144   :  { %v6250_v39 = vsel %vm4789_vm4, 4294967295, %v6249_v39  ;;  %v6254_v62 = vsel %vm4796_vm12, 4294967295, %v6253_v62  ;;  %v1666_v53 = vrot.slane %v1602_v49, %v6088_v1  ;;  %vm4815_vm15 = vcmp.eq.s32.totalorder %v1606_v32, 1 }
 0x145   :  { %vm4819_vm14 = vcmp.eq.s32.totalorder %v1610_v56, 1  ;;  %vm4827_vm1 = vcmp.eq.s32.totalorder %v1614_v27, 1  ;;  %vm4831_vm12 = vcmp.eq.s32.totalorder %v1618_v16, 1  ;;  %vm4835_vm4 = vcmp.eq.s32.totalorder %v1622_v50, 1  ;;  %v4863_v16 = vld [vmem:[#allocation2] sm:$0xff]  ;;  %v4865_v50 = vld [vmem:[#allocation2 + $0x8] sm:$0xff] }
 0x146   :  { %vm4839_vm13 = vcmp.eq.s32.totalorder %v1626_v37, 1  ;;  %vm4847_vm0 = vcmp.eq.s32.totalorder %v1630_v44, 1  ;;  %v6273_v49 = vmov 0  ;;  %vm4851_vm3 = vcmp.eq.s32.totalorder %v1634_v20, 1 }
 0x147   :  { %v6274_v49 = vsel %vm4847_vm0, 4294967295, %v6273_v49  ;;  %v6275_v32 = vmov 0  ;;  %vm4855_vm8 = vcmp.eq.s32.totalorder %v1638_v26, 1  ;;  %v6277_v56 = vmov 0 }
 0x148   :  { %v6276_v32 = vsel %vm4851_vm3, 4294967295, %v6275_v32  ;;  %v6278_v56 = vsel %vm4855_vm8, 4294967295, %v6277_v56  ;;  %vm4859_vm2 = vcmp.eq.s32.totalorder %v1642_v22, 1  ;;  %v6279_v27 = vmov 0  ;;  %v6291_v22 = vld [vmem:[#allocation24_spill] sm:$0xff] }
 0x149   :  { %v6280_v27 = vsel %vm4859_vm2, 4294967295, %v6279_v27  ;;  %vm4871_vm0 = vcmp.eq.s32.totalorder %v1646_v4, 1  ;;  %v6283_v37 = vmov 0  ;;  %vm4875_vm3 = vcmp.eq.s32.totalorder %v1650_v29, 1  ;;  %v6295_v29 = vld [vmem:[#allocation36_spill] sm:$0xff] }
 0x14a   :  { %v6284_v37 = vsel %vm4871_vm0, 4294967295, %v6283_v37  ;;  %v6285_v44 = vmov 0  ;;  %vm4879_vm8 = vcmp.eq.s32.totalorder %v1654_v12, 1  ;;  %v6287_v20 = vmov 0 }
 0x14b   :  { %v6286_v44 = vsel %vm4875_vm3, 4294967295, %v6285_v44  ;;  %v6288_v20 = vsel %vm4879_vm8, 4294967295, %v6287_v20  ;;  %vm4883_vm2 = vcmp.eq.s32.totalorder %v1658_v46, 1  ;;  %v6289_v26 = vmov 0 }
 0x14c   :  { %v6290_v26 = vsel %vm4883_vm2, 4294967295, %v6289_v26  ;;  %v6292_v34 = vrot.slane %v6291_v22, %v6088_v1  ;;  %v6293_v4 = vmov 0  ;;  %v6296_v2 = vrot.slane %v6295_v29, %v6088_v1 }
 0x14d   :  { %v6297_v12 = vmov 0  ;;  %vm4906_vm3 = vcmp.eq.s32.totalorder %v1662_v23, 1  ;;  %vm4910_vm0 = vcmp.eq.s32.totalorder %v1666_v53, 1  ;;  %vm6307_vm2 = vnez %v6092_v10 }
 0x14e   :  { %vm4891_vm7 = vcmp.eq.s32.totalorder %v6292_v34, %v4460_v9  ;;  %vm4898_vm9 = vcmp.eq.s32.totalorder %v6296_v2, 1  ;;  %v6308_v23 = vsel %vm6307_vm2, %v4282_v21, %v4114_v38  ;;  %v6315_v10 = vmov 0 }
 0x14f   :  { %v6294_v4 = vsel %vm4891_vm7, 4294967295, %v6293_v4  ;;  %v6298_v12 = vsel %vm4898_vm9, 4294967295, %v6297_v12  ;;  %vm6305_vm7 = vnez %v6090_v35  ;;  %v4932_v53 = vsel %vm4819_vm14, %v4677_v7, %v6308_v23  ;;  %v6309_v35 = vld [vmem:[#allocation22_spill] sm:$0xff]  ;;  %vm6318_vm14 = vmand %vm4466_vm10, %vm4473_vm5 }
 0x150   :  { %v6306_v2 = vsel %vm6305_vm7, %v4282_v21, %v4102_v57  ;;  %v6310_v29 = vrot.slane %v6309_v35, %v6088_v1  ;;  %v6311_v57 = vmov 0  ;;  %vm6317_vm2 = vcmp.ne.s32.totalorder %v4460_v9, 0 }
 0x151   :  { %v4922_v34 = vsel %vm4815_vm15, %v4677_v7, %v6306_v2  ;;  %v6314_v2 = vrot.slane %v6313_v48, %v6088_v1  ;;  %vm4956_vm9 = vmand %vm6318_vm14, %vm6317_vm2  ;;  %vm6325_vm5 = vnez %v6098_v36  ;;  %vm6328_vm10 = vnez %v6100_v41  ;;  %v6330_v36 = vld [vmem:[#allocation26_spill] sm:$0xff]  ;;  %v6343_v48 = vld [vmem:[#allocation11_spill] sm:$0xff] }
 0x152   :  { %vm4938_vm7 = vcmp.eq.s32.totalorder %v6310_v29, %v4600_v18  ;;  %v6331_v51 = vrot.slane %v6330_v36, %v6088_v1  ;;  %v6332_v35 = vmov 0  ;;  %v6335_v29 = vrot.slane %v6334_v28, %v6088_v1 }
 0x153   :  { %v6312_v57 = vsel %vm4938_vm7, 4294967295, %v6311_v57  ;;  %vm4945_vm15 = vcmp.eq.s32.totalorder %v6314_v2, 1  ;;  %vm6321_vm7 = vnez %v6094_v60  ;;  %v6326_v60 = vld [vmem:[#allocation59_spill] sm:$0xff]  ;;  %v6336_v41 = vmov 0 }
 0x154   :  { %v6316_v10 = vsel %vm4945_vm15, 4294967295, %v6315_v10  ;;  %v6322_v3 = vsel %vm6321_vm7, %v4282_v21, %v4124_v11  ;;  %vm6323_vm15 = vnez %v6096_v63  ;;  %v6327_v11 = vsel %vm6325_vm5, %v4282_v21, %v6326_v60 }
 0x155   :  { %v4968_v23 = vsel %vm4827_vm1, %v4677_v7, %v6322_v3  ;;  %v6324_v58 = vsel %vm6323_vm15, %v4282_v21, %v4137_v54  ;;  %v4988_v52 = vsel %vm4835_vm4, %v4677_v7, %v6327_v11  ;;  %v6329_v54 = vsel %vm6328_vm10, %v4282_v21, %v4157_v30  ;;  %v6348_v11 = vld [vmem:[#allocation44_spill] sm:$0xff] }
 0x156   :  { %v4978_v40 = vsel %vm4831_vm12, %v4677_v7, %v6324_v58  ;;  %v4998_v63 = vsel %vm4839_vm13, %v4677_v7, %v6329_v54  ;;  %vm5004_vm1 = vcmp.eq.s32.totalorder %v6331_v51, %v4600_v18  ;;  %vm5011_vm4 = vcmp.eq.s32.totalorder %v6335_v29, 1  ;;  %vm6338_vm12 = vmmov %vm6317_vm2 }
 0x157   :  { %v6333_v35 = vsel %vm5004_vm1, 4294967295, %v6332_v35  ;;  %v6337_v41 = vsel %vm5011_vm4, 4294967295, %v6336_v41  ;;  %vm6339_vm13 = vnez %v6150_v31  ;;  %v1717_v25 = vcombine.high %v4863_v16, %v4863_v16  ;;  %vm6352_vm14 = vmmov %vm6338_vm12 }
 0x158   :  { %vm6340_vm7 = vmand %vm4497_vm6, %vm6339_vm13  ;;  %v1724_v2 = vrot.slane %v4863_v16, %v6343_v48  ;;  %v1766_v3 = vcombine.high %v4865_v50, %v4865_v50  ;;  %v1773_v58 = vrot.slane %v4865_v50, %v6343_v48  ;;  %v6345_v31 = vrot.slane %v6344_v19, %v6088_v1  ;;  %v6361_v19 = vld [vmem:[#allocation49_spill] sm:$0xff] }
 0x159   :  { %vm5022_vm15 = vmand %vm6340_vm7, %vm6338_vm12  ;;  %v6346_v60 = vmov 0  ;;  %v6349_v54 = vrot.slane %v6348_v11, %v6088_v1  ;;  %v6350_v36 = vmov 0  ;;  %vm6353_vm5 = vnez %v6155_v33  ;;  %v6363_v33 = vld [vmem:[#allocation60_spill] sm:$0xff] }
 0x15a   :  { %vm5038_vm6 = vcmp.eq.s32.totalorder %v6345_v31, %v4600_v18  ;;  %vm6354_vm10 = vnez %v6159_v45  ;;  %vm6358_vm7 = vnez %v6102_v61  ;;  %v6366_v11 = vld [vmem:[#allocation52_spill] sm:$0xff]  ;;  %v6368_v61 = vld [vmem:[#allocation61_spill] sm:$0xff] }
 0x15b   :  { %v6347_v60 = vsel %vm5038_vm6, 4294967295, %v6346_v60  ;;  %vm5045_vm2 = vcmp.eq.s32.totalorder %v6349_v54, 1  ;;  %vm6355_vm12 = vmand %vm6353_vm5, %vm6354_vm10  ;;  %v6359_v28 = vsel %vm6358_vm7, %v4282_v21, %v4167_v17  ;;  %vm6360_vm6 = vnez %v6274_v49  ;;  %v6371_v54 = vld [vmem:[#allocation45_spill] sm:$0xff] }
 0x15c   :  { %v6351_v36 = vsel %vm5045_vm2, 4294967295, %v6350_v36  ;;  %vm5056_vm13 = vmand %vm6355_vm12, %vm6352_vm14  ;;  %v5068_v29 = vsel %vm6360_vm6, %v4677_v7, %v6359_v28  ;;  %vm6362_vm2 = vnez %v6361_v19  ;;  %vm6365_vm14 = vnez %v6276_v32  ;;  %v6373_v28 = vld [vmem:[#allocation62_spill] sm:$0xff] }
 0x15d   :  { %v6364_v45 = vsel %vm6362_vm2, %v4282_v21, %v6363_v33  ;;  %vm6367_vm5 = vnez %v6366_v11  ;;  %vm6370_vm10 = vnez %v6278_v56  ;;  %vm6372_vm6 = vnez %v6371_v54  ;;  %v6379_v56 = vld [vmem:[#allocation57_spill] sm:$0xff]  ;;  %v6381_v33 = vld [vmem:[#allocation47_spill] sm:$0xff]  ;;  %v6386_v11 = vld [vmem:[#allocation48_spill] sm:$0xff] }
 0x15e   :  { %v5078_v31 = vsel %vm6365_vm14, %v4677_v7, %v6364_v45  ;;  %v6369_v17 = vsel %vm6367_vm5, %v4282_v21, %v6368_v61  ;;  %v6374_v19 = vsel %vm6372_vm6, %v4282_v21, %v6373_v28  ;;  %vm6375_vm2 = vnez %v6280_v27  ;;  %v6388_v27 = vld [vmem:[#allocation63_spill] sm:$0xff]  ;;  %v6391_v54 = vld [vmem:[#allocation50_spill] sm:$0xff]  ;;  %v6393_v28 = vld [vmem:[#allocation64_spill] sm:$0xff] }
 0x15f   :  { %v5088_v49 = vsel %vm6370_vm10, %v4677_v7, %v6369_v17  ;;  %v5098_v32 = vsel %vm6375_vm2, %v4677_v7, %v6374_v19  ;;  %vm6378_vm5 = vcmp.ne.s32.totalorder %v4460_v9, 0  ;;  %vm6380_vm10 = vnez %v6379_v56 }
 0x160   :  { %vm6382_vm1 = vnez %v6381_v33  ;;  %vm6387_vm6 = vnez %v6386_v11  ;;  %vm6390_vm2 = vnez %v6284_v37  ;;  %vm6392_vm14 = vnez %v6391_v54 }
 0x161   :  { %vm6383_vm4 = vmand %vm6380_vm10, %vm6382_vm1  ;;  %v6389_v61 = vsel %vm6387_vm6, %v4282_v21, %v6388_v27  ;;  %v6394_v19 = vsel %vm6392_vm14, %v4282_v21, %v6393_v28  ;;  %vm6395_vm1 = vnez %v6286_v44  ;;  %v1732_v33 = vcombine.high %v1724_v2, %v1724_v2 }
 0x162   :  { %vm5111_vm11 = vmand %vm6383_vm4, %vm6378_vm5  ;;  %v5123_v17 = vsel %vm6390_vm2, %v4677_v7, %v6389_v61  ;;  %v5133_v56 = vsel %vm6395_vm1, %v4677_v7, %v6394_v19  ;;  %v1740_v11 = vrot.slane %v1724_v2, %v6343_v48  ;;  %vm6398_vm10 = vnez %v6179_v47  ;;  %v6420_v19 = vld [vmem:[#allocation51_spill] sm:$0xff] }
 0x163   :  { %vm6396_vm4 = vmmov %vm6378_vm5  ;;  %vm6397_vm5 = vnez %v6175_v15  ;;  %v6400_v37 = vmov 0  ;;  %v1731_v27 = vrot.slane %v1717_v25, %v6343_v48  ;;  %v1780_v44 = vrot.slane %v1766_v3, %v6343_v48  ;;  %v6410_v15 = vld [vmem:[#allocation54_spill] sm:$0xff]  ;;  %v6412_v25 = vld [vmem:[#allocation65_spill] sm:$0xff] }
 0x164   :  { %vm6399_vm6 = vmand %vm6397_vm5, %vm6398_vm10  ;;  %v1781_v61 = vcombine.high %v1773_v58, %v1773_v58  ;;  %v1789_v54 = vrot.slane %v1773_v58, %v6343_v48  ;;  %vm6402_vm14 = vnez %v6254_v62  ;;  %vm6403_vm1 = vnez %v6250_v39  ;;  %v6415_v58 = vld [vmem:[#allocation46_spill] sm:$0xff] }
 0x165   :  { %vm5143_vm2 = vmand %vm6399_vm6, %vm6396_vm4  ;;  %vm6404_vm7 = vcmp.ne.s32.totalorder %v4600_v18, 0  ;;  %vm6405_vm5 = vnez %v6183_v59  ;;  %vm6406_vm4 = vnez %v6187_v8  ;;  %vm6411_vm8 = vnez %v6410_v15  ;;  %v6417_v59 = vld [vmem:[#allocation66_spill] sm:$0xff]  ;;  %v6422_v15 = vld [vmem:[#allocation67_spill] sm:$0xff] }
 0x166   :  { %v6401_v37 = vsel %vm5143_vm2, 4294967295, %v6400_v37  ;;  %vm6407_vm10 = vmand %vm6405_vm5, %vm6406_vm4  ;;  %v6413_v2 = vsel %vm6411_vm8, %v4282_v21, %v6412_v25  ;;  %vm6414_vm2 = vnez %v6288_v20  ;;  %vm6416_vm12 = vnez %v6415_v58  ;;  %v6430_v58 = vld [vmem:[#allocation55_spill] sm:$0xff] }
 0x167   :  { %vm5161_vm6 = vmand %vm6407_vm10, %vm6404_vm7  ;;  %v5173_v3 = vsel %vm6414_vm2, %v4677_v7, %v6413_v2  ;;  %v6418_v8 = vsel %vm6416_vm12, %v4282_v21, %v6417_v59  ;;  %vm6419_vm7 = vnez %v6290_v26  ;;  %vm6421_vm5 = vnez %v6420_v19  ;;  %v6432_v59 = vld [vmem:[#allocation68_spill] sm:$0xff] }
 0x168   :  { %v5183_v28 = vsel %vm6419_vm7, %v4677_v7, %v6418_v8  ;;  %v6423_v25 = vsel %vm6421_vm5, %v4282_v21, %v6422_v15  ;;  %v1754_v2 = vrot.slane %v1732_v33, %v6343_v48  ;;  %vm6424_vm8 = vcmp.ne.s32.totalorder %v4600_v18, 0 }
 0x169   :  { %v5193_v20 = vsel %vm4906_vm3, %v4677_v7, %v6423_v25  ;;  %vm6425_vm12 = vnez %v6192_v24  ;;  %vm6426_vm2 = vnez %v6196_v14  ;;  %vm6431_vm7 = vnez %v6430_v58  ;;  %vm6434_vm3 = vmmov %vm6424_vm8 }
 0x16a   :  { %vm6427_vm4 = vmand %vm6425_vm12, %vm6426_vm2  ;;  %v6433_v46 = vsel %vm6431_vm7, %v4282_v21, %v6432_v59  ;;  %v1699_v24 = vsel %vm4956_vm9, %v4922_v34, 0.0  ;;  %v1700_v14 = vsel %vm5022_vm15, %v4932_v53, 0.0  ;;  %v1701_v8 = vsel %vm5056_vm13, %v4968_v23, 0.0 }
 0x16b   :  { %vm5203_vm10 = vmand %vm6427_vm4, %vm6424_vm8  ;;  %v5215_v33 = vsel %vm4910_vm0, %v4677_v7, %v6433_v46  ;;  %vm6435_vm5 = vnez %v6200_v43  ;;  %vm6436_vm8 = vnez %v6204_v55  ;;  %v1702_v7 = vsel %vm5111_vm11, %v4978_v40, 0.0  ;;  %v6442_v43 = vld [vmem:[#allocation53_spill] sm:$0xff] }
 0x16c   :  { %vm6437_vm0 = vmand %vm6435_vm5, %vm6436_vm8  ;;  %v1762_v22 = vcombine.high %v1740_v11, %v1740_v11  ;;  %v1803_v34 = vrot.slane %v1781_v61, %v6343_v48  ;;  %v1811_v53 = vcombine.high %v1789_v54, %v1789_v54  ;;  %vm6441_vm15 = vnez %v6208_v0 }
 0x16d   :  { %vm5233_vm12 = vmand %vm6437_vm0, %vm6434_vm3  ;;  %vm6443_vm13 = vnez %v6442_v43  ;;  %vm6447_vm7 = vnez %v6401_v37  ;;  %v1707_v23 = vsel %vm5161_vm6, %v5088_v49, 0.0  ;;  %v1733_v40 = vcombine.high %v1731_v27, %v1731_v27 }
 0x16e   :  { %vm6440_vm9 = vmmov %vm6434_vm3  ;;  %v1703_v38 = vsel %vm6447_vm7, %v4988_v52, 0.0  ;;  %v1782_v30 = vcombine.high %v1780_v44, %v1780_v44  ;;  %vm6450_vm5 = vnez %v6224_v42  ;;  %v1764_v51 = vcombine.high %v1754_v2, %v1754_v2 }
 0x16f   :  { %vm6444_vm2 = vmand %vm6441_vm15, %vm6443_vm13  ;;  %v1813_v45 = vcombine.high %v1803_v34, %v1803_v34  ;;  %v1818_v52 = vrot.slane %v1740_v11, %v6088_v1  ;;  %v1822_v37 = vrot.slane %v1754_v2, %v6088_v1  ;;  %vm6454_vm6 = vnez %v6298_v12 }
 0x170   :  { %vm5248_vm4 = vmand %vm6444_vm2, %vm6440_vm9  ;;  %vm6455_vm9 = vnez %v6294_v4  ;;  %v1709_v42 = vsel %vm5233_vm12, %v5123_v17, 0.0  ;;  %v1747_v49 = vrot.slane %v1731_v27, %v6343_v48  ;;  %v1796_v61 = vrot.slane %v1780_v44, %v6343_v48 }
 0x171   :  { %vm6448_vm11 = vmmov %vm6434_vm3  ;;  %vm6449_vm3 = vnez %v6220_v13  ;;  %v1708_v13 = vsel %vm5203_vm10, %v5098_v32, 0.0  ;;  %vm6456_vm13 = vnez %v6316_v10  ;;  %vm6457_vm2 = vnez %v6312_v57 }
 0x172   :  { %vm6451_vm8 = vmand %vm6449_vm3, %vm6450_vm5  ;;  %v1826_v11 = vrot.slane %v1762_v22, %v6088_v1  ;;  %v1850_v47 = vrot.slane %v1789_v54, %v6088_v1  ;;  %v1854_v19 = vrot.slane %v1803_v34, %v6088_v1  ;;  %v1858_v32 = vrot.slane %v1811_v53, %v6088_v1 }
 0x173   :  { %vm5265_vm0 = vmand %vm6451_vm8, %vm6448_vm11  ;;  %vm6458_vm10 = vnez %v6337_v41  ;;  %vm6459_vm12 = vnez %v6333_v35  ;;  %v1710_v17 = vsel %vm5248_vm4, %v5133_v56, 0.0  ;;  %v1761_v44 = vrot.slane %v1733_v40, %v6343_v48 }
 0x174   :  { %v1711_v27 = vsel %vm5265_vm0, %v5173_v3, 0.0  ;;  %v1810_v54 = vrot.slane %v1782_v30, %v6343_v48  ;;  %v1830_v15 = vrot.slane %v1764_v51, %v6088_v1  ;;  %v1862_v25 = vrot.slane %v1813_v45, %v6088_v1  ;;  %vm6469_vm3 = vmand %vm6457_vm2, %vm6456_vm13 }
 0x175   :  { %v1895_v2 = vmul.f32 %v1818_v52, %v1699_v24  ;;  %v1896_v26 = vmul.f32 %v1822_v37, %v1700_v14  ;;  %vm6462_vm4 = vcmp.ne.s32.totalorder %v4460_v9, 0  ;;  %vm6463_vm15 = vnez %v6242_v6  ;;  %vm6477_vm2 = vmand %vm6459_vm12, %vm6458_vm10 }
 0x176   :  { %vm6464_vm0 = vnez %v6246_v5  ;;  %v1763_v56 = vcombine.high %v1747_v49, %v1747_v49  ;;  %v1812_v3 = vcombine.high %v1796_v61, %v1796_v61  ;;  %v1834_v58 = vrot.slane %v1747_v49, %v6088_v1 }
 0x177   :  { %vm6465_vm11 = vmand %vm6463_vm15, %vm6464_vm0  ;;  %v1866_v59 = vrot.slane %v1796_v61, %v6088_v1  ;;  %vm6468_vm8 = vcmp.ne.s32.totalorder %v4600_v18, 0  ;;  %v1897_v6 = vmul.f32 %v1826_v11, %v1701_v8  ;;  %v1903_v46 = vmul.f32 %v1850_v47, %v1707_v23 }
 0x178   :  { %vm5316_vm7 = vmand %vm6465_vm11, %vm6462_vm4  ;;  %v1904_v24 = vmul.f32 %v1854_v19, %v1708_v13  ;;  %v1905_v14 = vmul.f32 %v1858_v32, %v1709_v42  ;;  %v1765_v10 = vcombine.high %v1761_v44, %v1761_v44  ;;  %v1814_v21 = vcombine.high %v1810_v54, %v1810_v54 }
 0x179   :  { %vm5329_vm5 = vmand %vm6469_vm3, %vm6468_vm8  ;;  %v1838_v22 = vrot.slane %v1761_v44, %v6088_v1  ;;  %v1870_v8 = vrot.slane %v1810_v54, %v6088_v1  ;;  %v1898_v39 = vmul.f32 %v1830_v15, %v1702_v7  ;;  %v1906_v34 = vmul.f32 %v1862_v25, %v1710_v17 }
 0x17a   :  { %vm6472_vm15 = vmmov %vm6462_vm4  ;;  %v1911_v53 = vadd.f32 %v1896_v26, %v1895_v2  ;;  %v1918_v43 = vadd.f32 %v1904_v24, %v1903_v46  ;;  %v1704_v41 = vsel %vm5316_vm7, %v4998_v63, 0.0  ;;  %v1712_v7 = vsel %vm5329_vm5, %v5183_v28, 0.0 }
 0x17b   :  { %vm6473_vm11 = vmand %vm6403_vm1, %vm6402_vm14  ;;  %v1842_v55 = vrot.slane %v1763_v56, %v6088_v1  ;;  %v1874_v9 = vrot.slane %v1812_v3, %v6088_v1  ;;  %v1899_v12 = vmul.f32 %v1834_v58, %v1703_v38  ;;  %v1907_v63 = vmul.f32 %v1866_v59, %v1711_v27 }
 0x17c   :  { %vm5340_vm4 = vmand %vm6473_vm11, %vm6472_vm15  ;;  %v1912_v23 = vadd.f32 %v1911_v53, %v1897_v6  ;;  %v1919_v40 = vadd.f32 %v1918_v43, %v1905_v14  ;;  %v1900_v30 = vmul.f32 %v1838_v22, %v1704_v41  ;;  %v1908_v0 = vmul.f32 %v1870_v8, %v1712_v7 }
 0x17d   :  { %vm6476_vm13 = vmmov %vm6468_vm8  ;;  %v1705_v28 = vsel %vm5340_vm4, %v5068_v29, 0.0 }
 0x17e   :  { %vm5353_vm3 = vmand %vm6477_vm2, %vm6476_vm13  ;;  %v1913_v51 = vadd.f32 %v1912_v23, %v1898_v39  ;;  %v1920_v45 = vadd.f32 %v1919_v40, %v1906_v34  ;;  %v1901_v52 = vmul.f32 %v1842_v55, %v1705_v28 }
 0x17f   :  { %vm6480_vm14 = vmmov %vm6472_vm15  ;;  %v1713_v18 = vsel %vm5353_vm3, %v5193_v20, 0.0 }
 0x180   :  { %vm6481_vm1 = vmand %vm6455_vm9, %vm6454_vm6  ;;  %vm6485_vm6 = vnez %v6347_v60  ;;  %vm6486_vm9 = vnez %v6351_v36  ;;  %v1846_v60 = vrot.slane %v1765_v10, %v6088_v1  ;;  %v1878_v36 = vrot.slane %v1814_v21, %v6088_v1 }
 0x181   :  { %vm5364_vm8 = vmand %vm6481_vm1, %vm6480_vm14  ;;  %v1909_v37 = vmul.f32 %v1874_v9, %v1713_v18  ;;  %v1914_v13 = vadd.f32 %v1913_v51, %v1899_v12  ;;  %v1921_v20 = vadd.f32 %v1920_v45, %v1907_v63 }
 0x182   :  { %vm6484_vm10 = vmmov %vm6476_vm13  ;;  %v1706_v38 = vsel %vm5364_vm8, %v5078_v31, 0.0 }
 0x183   :  { %vm6487_vm12 = vmand %vm6485_vm6, %vm6486_vm9  ;;  %v1902_v42 = vmul.f32 %v1846_v60, %v1706_v38  ;;  %v1915_v61 = vadd.f32 %v1914_v13, %v1900_v30  ;;  %v1922_v1 = vadd.f32 %v1921_v20, %v1908_v0 }
 0x184   :  { %vm5383_vm0 = vmand %vm6487_vm12, %vm6484_vm10 }
 0x185   :  { %v1714_v29 = vsel %vm5383_vm0, %v5215_v33, 0.0  ;;  %v1916_v11 = vadd.f32 %v1915_v61, %v1901_v52  ;;  %v1923_v47 = vadd.f32 %v1922_v1, %v1909_v37 }
 0x186   :  { %v1910_v49 = vmul.f32 %v1878_v36, %v1714_v29 }
 0x187   :  { %v1917_v19 = vadd.f32 %v1916_v11, %v1902_v42 }
 0x188   :  { %v1924_v32 = vadd.f32 %v1923_v47, %v1910_v49 }
 0x189   :  { %v1925_v17 = vmax.f32 %v1917_v19, 0.0 }
 0x18a   :  { %v1926_v31 = vmax.f32 %v1924_v32, 0.0 }
 0x18b   :  { %v1927_v27 = vadd.f32 %v1925_v17, %v4863_v16 }
 0x18c   :  { %v1928_v33 = vadd.f32 %v1926_v31, %v4865_v50 }
 0x18d   :  { %1929 = vst [vmem:[#allocation7] sm:$0xff] %v1927_v27 }
 0x18e   :  { %1930 = vst [vmem:[#allocation7 + $0x8] sm:$0xff] %v1928_v33 }
 0x18f   :  { %2072 = shalt.err (!%p2069_p1)
}
 0x190   :  { %s2073_s8 = scalar_lea.hbm %s5421_s3, 256 }
 0x191   :  { %p2074_p2 = scmp.ne.s32.totalorder %s5421_s3, %s2073_s8  ;;  %p2077_p3 = scmp.lt.u32.totalorder %s2073_s8, %s5421_s3 }
 0x193   :  { %p2079_p4 = pnand %p2077_p3, %p2074_p2 }
 0x195   :  { %2082 = shalt.err (!%p2079_p4)
}
 0x196   :  { %1942 = dma.vmem_to_hbm [thread:$0]  %s1937_s4, 256, %s5421_s3, [#allocation4], %s2090_s22, %s2090_s22, %s2091_s23  }
 0x197   :  { %2087 = dma.done.wait [#allocation4], 256  }
 0x198   :  { %2088 = vsyncadd [#allocation4], 4294967040 }
 0x199   :  { %1946 = vsyncpa [#allocation3], 1 }
 0x19a   :  { %1947 = vsyncpa [#allocation4], 1 }
 0x19b   :  { %1948 = vsyncpa [#allocation5], 1 }

</bundles_post_ra>
